<compile_context>
chip_gen: v6e
topology: v6e:2x2x1
jax: 0.10.0
libtpu: 0.0.40
codegen_flags: <defaults>
</compile_context>

<pallas_src>
import numpy as np
import jax
import jax.numpy as jnp
from jax.experimental import pallas as pl
from jax.experimental.pallas import tpu as pltpu


# ----------------------------- interpolation setup -----------------------------

def _linear_interp_matrix(in_size: int, out_size: int, align_corners: bool = True) -> np.ndarray:
    """1-D linear interpolation matrix (out_size, in_size), PyTorch semantics. Rows sum to 1."""
    A = np.zeros((out_size, in_size), np.float32)
    for i in range(out_size):
        if align_corners:
            src = i * (in_size - 1) / (out_size - 1) if out_size > 1 else 0.0
        else:
            src = max((i + 0.5) * in_size / out_size - 0.5, 0.0)
        lo = min(int(np.floor(src)), in_size - 1)
        hi = min(lo + 1, in_size - 1)
        f = src - lo
        A[i, lo] += 1.0 - f
        A[i, hi] += f
    return A


# ----------------------------------- kernel -----------------------------------

def _make_kernel(TC, D, HW, has_skip):
    def kernel(x_ref, w_ref, b_ref, mhw_ref, ad_ref, *rest):
        # x_ref:   (Cin, D*H*W)     one batch element, lane-dense channels-major view
        # w_ref:   (TC, Cin)        1x1x1 conv weights for this output-channel block (VMEM)
        # b_ref:   (TC, 1)          conv bias (f32)
        # mhw_ref: (H*W, Ho*Wo)     combined separable H/W interpolation matrix
        # ad_ref:  (Do, D)          depth interpolation matrix (f32)
        # skip?:   (TC, Do, Ho*Wo)  optional residual block
        # o_ref:   (TC, Do, Ho*Wo)
        # up_scr:  (TC, D, Ho*Wo)   VMEM scratch for the H/W-upsampled intermediate (f32)
        if has_skip:
            skip_ref, o_ref, up_scr = rest
        else:
            o_ref, up_scr = rest

        # --- 1x1x1 conv: single MXU matmul over channels; bias folded in pre-interp -------
        # (exact, since every interpolation row sums to 1) as a (TC, 1) lane-broadcast.
        y = jnp.dot(w_ref[...], x_ref[...], preferred_element_type=jnp.float32)
        y = y + b_ref[...]                                    # (TC, D*HW) f32

        # --- H/W upsample: one matmul per input depth plane on an aligned lane slice ------
        mhw = mhw_ref[...]                                    # (HW, HoWo)
        for d in range(D):
            y_d = y[:, d * HW:(d + 1) * HW].astype(mhw.dtype)  # (TC, HW) static lane slice
            up_scr[:, d, :] = jnp.dot(y_d, mhw, preferred_element_type=jnp.float32)

        # --- depth upsample (+ skip) per output channel: contiguous (Do, HoWo) tiles ------
        ad = ad_ref[...]                                      # (Do, D) f32
        for t in range(TC):
            plane = jnp.dot(ad, up_scr[t], preferred_element_type=jnp.float32)  # (Do, HoWo)
            if has_skip:
                plane = plane + skip_ref[t].astype(jnp.float32)
            o_ref[t] = plane.astype(o_ref.dtype)

    return kernel


# ---------------------------------- wrapper ------------------------------------

def linear_upsampling(x, conv_w, conv_b, skipx=None, scale_factor=2,
                      align_corners=True, channel_tile=8,
                      compute_dtype=jnp.float32):
    """x: (N, Cin, D, H, W); conv_w: (Cout, Cin, 1, 1, 1); conv_b: (Cout,)."""
    N, Cin, D, H, W = (int(s) for s in x.shape)
    Cout = int(conv_w.shape[0])
    Do, Ho, Wo = D * scale_factor, H * scale_factor, W * scale_factor
    HW, HoWo, DHW = H * W, Ho * Wo, D * H * W
    cdt = jnp.dtype(compute_dtype)

    # Output-channel tile: sublane-friendly (multiple of 8) divisor of Cout, else full Cout.
    TC = min(channel_tile, Cout)
    if Cout % TC != 0 or (TC % 8 != 0 and TC != Cout):
        TC = Cout
    n_cblk = Cout // TC

    # Trace-time interpolation operators (tiny; rows sum to 1).
    A_D = _linear_interp_matrix(D, Do, align_corners)                      # (Do, D)
    A_H = _linear_interp_matrix(H, Ho, align_corners)                      # (Ho, H)
    A_W = _linear_interp_matrix(W, Wo, align_corners)                      # (Wo, W)
    M_hw = np.kron(A_H, A_W).T.astype(np.float32)                          # (H*W, Ho*Wo)

    # Pure reshapes only (no transposes): merge spatial dims into the lane axis.
    x2 = x.reshape(N, Cin, DHW).astype(cdt)
    wmat = conv_w.reshape(Cout, Cin).astype(cdt)
    bvec = conv_b.reshape(Cout, 1).astype(jnp.float32)
    mhw = jnp.asarray(M_hw).astype(cdt)
    ad = jnp.asarray(A_D)                                                  # keep f32 (exact)

    has_skip = skipx is not None
    kernel = _make_kernel(TC, D, HW, has_skip)

    in_specs = [
        # x depends only on n: with n as the slow grid axis the block is fetched once per
        # batch element and reused across channel blocks.
        pl.BlockSpec((None, Cin, DHW), lambda n, c: (n, 0, 0)),
        pl.BlockSpec((TC, Cin), lambda n, c: (c, 0)),       # conv weights (per channel block)
        pl.BlockSpec((TC, 1), lambda n, c: (c, 0)),         # conv bias
        pl.BlockSpec((HW, HoWo), lambda n, c: (0, 0)),      # combined H/W interp matrix
        pl.BlockSpec((Do, D), lambda n, c: (0, 0)),         # depth interp matrix
    ]
    inputs = [x2, wmat, bvec, mhw, ad]
    if has_skip:
        in_specs.append(pl.BlockSpec((None, TC, Do, HoWo), lambda n, c: (n, c, 0, 0)))
        inputs.append(skipx.reshape(N, Cout, Do, HoWo).astype(cdt))

    esz = lambda dt: jnp.dtype(dt).itemsize
    # Per-step block bytes (double-buffered) + scratch, with headroom; clamped for v7x.
    blk_bytes = (Cin * DHW * esz(cdt) + TC * Cin * esz(cdt) + TC * 4
                 + HW * HoWo * esz(cdt) + Do * D * 4
                 + TC * Do * HoWo * esz(cdt) * (2 if has_skip else 1))
    scratch_bytes = TC * D * HoWo * 4
    vmem_limit = int(min(max(2 * blk_bytes + scratch_bytes + (4 << 20), 16 << 20), 96 << 20))

    flops = int(2 * N * Cout * Cin * DHW                # conv
                + 2 * N * Cout * D * HW * HoWo          # H/W upsample
                + 2 * N * Cout * Do * D * HoWo)         # depth upsample
    bytes_accessed = int(x2.size * esz(cdt) + Cout * Cin * esz(cdt) + Cout * 4
                         + HW * HoWo * esz(cdt) + Do * D * 4
                         + N * Cout * Do * HoWo * esz(cdt) * (2 if has_skip else 1))

    out = pl.pallas_call(
        kernel,
        out_shape=jax.ShapeDtypeStruct((N, Cout, Do, HoWo), cdt),
        grid=(N, n_cblk),
        in_specs=in_specs,
        out_specs=pl.BlockSpec((None, TC, Do, HoWo), lambda n, c: (n, c, 0, 0)),
        scratch_shapes=[pltpu.VMEM((TC, D, HoWo), jnp.float32)],
        compiler_params=pltpu.CompilerParams(
            dimension_semantics=("parallel", "parallel"),
            vmem_limit_bytes=vmem_limit,
        ),
        cost_estimate=pl.CostEstimate(flops=flops, transcendentals=0,
                                      bytes_accessed=bytes_accessed),
    )(*inputs)
    return out.reshape(N, Cout, Do, Ho, Wo)


# --------------------------------- reference -----------------------------------

def _reference(x, conv_w, conv_b, skipx, scale_factor=2, align_corners=True):
    """Plain-JAX reference (separable einsums) for a sanity check."""
    N, Cin, D, H, W = x.shape
    Cout = conv_w.shape[0]
    Do, Ho, Wo = D * scale_factor, H * scale_factor, W * scale_factor
    A_D = jnp.asarray(_linear_interp_matrix(D, Do, align_corners))
    A_H = jnp.asarray(_linear_interp_matrix(H, Ho, align_corners))
    A_W = jnp.asarray(_linear_interp_matrix(W, Wo, align_corners))
    y = jnp.einsum('ncdhw,oc->nodhw', x, conv_w.reshape(Cout, Cin),
                   precision='highest') + conv_b.reshape(1, Cout, 1, 1, 1)
    y = jnp.einsum('Dd,nodhw->noDhw', A_D, y, precision='highest')
    y = jnp.einsum('Hh,noDhw->noDHw', A_H, y, precision='highest')
    y = jnp.einsum('Ww,noDHw->noDHW', A_W, y, precision='highest')
    if skipx is not None:
        y = y + skipx
    return y


# ------------------------------------ main -------------------------------------

if __name__ == "__main__":
    # Small shapes consistent with the module (decoder up-sampling stage, scaled down):
    # N=2, inChans=32, outChans=16, volume 8x8x16 -> 16x16x32.
    N, Cin, Cout = 2, 32, 16
    D, H, W = 8, 8, 16
    scale = 2

    key = jax.random.PRNGKey(0)
    kx, kw, kb, ks = jax.random.split(key, 4)
    x = jax.random.normal(kx, (N, Cin, D, H, W), dtype=jnp.float32)
    conv_w = jax.random.normal(kw, (Cout, Cin, 1, 1, 1), dtype=jnp.float32) * 0.1
    conv_b = jax.random.normal(kb, (Cout,), dtype=jnp.float32) * 0.1
    skipx = jax.random.normal(
        ks, (N, Cout, D * scale, H * scale, W * scale), dtype=jnp.float32)

    # with skip connection (de_up2 / de_up1 / de_up0 path)
    out = jax.block_until_ready(
        linear_upsampling(x, conv_w, conv_b, skipx=skipx, scale_factor=scale))
    ref = _reference(x, conv_w, conv_b, skipx, scale_factor=scale)
    assert out.shape == (N, Cout, D * scale, H * scale, W * scale)
    assert jnp.allclose(out, ref, rtol=1e-2, atol=1e-2), \
        float(jnp.max(jnp.abs(out - ref)))

    # without skip connection (de_up22 / de_up12 / de_up02 path) -- no zero tensor DMA'd
    out_ns = jax.block_until_ready(
        linear_upsampling(x, conv_w, conv_b, skipx=None, scale_factor=scale))
    ref_ns = _reference(x, conv_w, conv_b, None, scale_factor=scale)
    assert jnp.allclose(out_ns, ref_ns, rtol=1e-2, atol=1e-2), \
        float(jnp.max(jnp.abs(out_ns - ref_ns)))

    # bf16 operand path (f32 accumulation) -- bandwidth-oriented variant (loose tolerance)
    out_bf = jax.block_until_ready(
        linear_upsampling(x, conv_w, conv_b, skipx=skipx, scale_factor=scale,
                          compute_dtype=jnp.bfloat16))
    assert jnp.allclose(out_bf.astype(jnp.float32), ref, rtol=1e-1, atol=1e-1), \
        float(jnp.max(jnp.abs(out_bf.astype(jnp.float32) - ref)))

    print("KERNEL_OK")
</pallas_src>

<mosaic_0001>
module attributes {stable_mosaic.version = 11 : i64} {
  func.func @kernel(%arg0: i32, %arg1: i32, %arg2: memref<1x32x1024xf32, #tpu.memory_space<vmem>>, %arg3: memref<8x32xf32, #tpu.memory_space<vmem>>, %arg4: memref<8x1xf32, #tpu.memory_space<vmem>>, %arg5: memref<128x512xf32, #tpu.memory_space<vmem>>, %arg6: memref<16x8xf32, #tpu.memory_space<vmem>>, %arg7: memref<1x8x16x512xf32, #tpu.memory_space<vmem>>, %arg8: memref<1x8x16x512xf32, #tpu.memory_space<vmem>>, %arg9: memref<8x8x512xf32, #tpu.memory_space<vmem>>) attributes {dimension_semantics = [#tpu.dimension_semantics<parallel>, #tpu.dimension_semantics<parallel>], iteration_bounds = array<i64: 2, 2>, scalar_prefetch = 0 : i64, scratch_operands = 1 : i64, tpu.core_type = #tpu.core_type<tc>, window_params = [{transform_indices = @transform_0, window_bounds = array<i64: 1, 32, 1024>}, {transform_indices = @transform_1, window_bounds = array<i64: 8, 32>}, {transform_indices = @transform_2, window_bounds = array<i64: 8, 1>}, {pipeline_mode = #tpu.pipeline_mode<synchronous>, transform_indices = @transform_3, window_bounds = array<i64: 128, 512>}, {pipeline_mode = #tpu.pipeline_mode<synchronous>, transform_indices = @transform_4, window_bounds = array<i64: 16, 8>}, {transform_indices = @transform_5, window_bounds = array<i64: 1, 8, 16, 512>}, {transform_indices = @transform_6, window_bounds = array<i64: 1, 8, 16, 512>}]} {
    %c0 = arith.constant 0 : index
    %c0_0 = arith.constant 0 : index
    %0 = vector.load %arg3[%c0, %c0_0] : memref<8x32xf32, #tpu.memory_space<vmem>>, vector<8x32xf32>
    %c0_1 = arith.constant 0 : index
    %c0_2 = arith.constant 0 : index
    %c0_3 = arith.constant 0 : index
    %1 = vector.load %arg2[%c0_1, %c0_2, %c0_3] : memref<1x32x1024xf32, #tpu.memory_space<vmem>>, vector<1x32x1024xf32>
    %2 = vector.shape_cast %1 : vector<1x32x1024xf32> to vector<32x1024xf32>
    %cst = arith.constant dense<0.000000e+00> : vector<8x1024xf32>
    %3 = tpu.matmul %0, %2, %cst {dimension_numbers = #tpu.dot_dimension_numbers<[1], [0], [0], [1], [0, 0, 1, 1], [], []>} : vector<8x32xf32>, vector<32x1024xf32>, vector<8x1024xf32> -> vector<8x1024xf32>
    %c0_4 = arith.constant 0 : index
    %c0_5 = arith.constant 0 : index
    %4 = vector.load %arg4[%c0_4, %c0_5] : memref<8x1xf32, #tpu.memory_space<vmem>>, vector<8x1xf32>
    %5 = vector.broadcast %4 : vector<8x1xf32> to vector<8x1024xf32>
    %6 = arith.addf %3, %5 : vector<8x1024xf32>
    %c0_6 = arith.constant 0 : index
    %c0_7 = arith.constant 0 : index
    %7 = vector.load %arg5[%c0_6, %c0_7] : memref<128x512xf32, #tpu.memory_space<vmem>>, vector<128x512xf32>
    %8 = vector.extract_strided_slice %6 {offsets = [0, 0], sizes = [8, 128], strides = [1, 1]} : vector<8x1024xf32> to vector<8x128xf32>
    %cst_8 = arith.constant dense<0.000000e+00> : vector<8x512xf32>
    %9 = tpu.matmul %8, %7, %cst_8 {dimension_numbers = #tpu.dot_dimension_numbers<[1], [0], [0], [1], [0, 0, 1, 1], [], []>} : vector<8x128xf32>, vector<128x512xf32>, vector<8x512xf32> -> vector<8x512xf32>
    %c0_9 = arith.constant 0 : index
    %c0_10 = arith.constant 0 : index
    %c0_11 = arith.constant 0 : index
    %10 = vector.load %arg9[%c0_9, %c0_10, %c0_11] : memref<8x8x512xf32, #tpu.memory_space<vmem>>, vector<8x1x512xf32>
    %11 = vector.shape_cast %10 : vector<8x1x512xf32> to vector<8x512xf32>
    %12 = vector.shape_cast %9 : vector<8x512xf32> to vector<8x1x512xf32>
    tpu.vector_store %arg9[%c0_9, %c0_10, %c0_11], %12 {strides = array<i32>} : memref<8x8x512xf32, #tpu.memory_space<vmem>>, vector<8x1x512xf32>,
    %13 = vector.extract_strided_slice %6 {offsets = [0, 128], sizes = [8, 128], strides = [1, 1]} : vector<8x1024xf32> to vector<8x128xf32>
    %cst_12 = arith.constant dense<0.000000e+00> : vector<8x512xf32>
    %14 = tpu.matmul %13, %7, %cst_12 {dimension_numbers = #tpu.dot_dimension_numbers<[1], [0], [0], [1], [0, 0, 1, 1], [], []>} : vector<8x128xf32>, vector<128x512xf32>, vector<8x512xf32> -> vector<8x512xf32>
    %c0_13 = arith.constant 0 : index
    %c1 = arith.constant 1 : index
    %c0_14 = arith.constant 0 : index
    %15 = vector.load %arg9[%c0_13, %c1, %c0_14] : memref<8x8x512xf32, #tpu.memory_space<vmem>>, vector<8x1x512xf32>
    %16 = vector.shape_cast %15 : vector<8x1x512xf32> to vector<8x512xf32>
    %17 = vector.shape_cast %14 : vector<8x512xf32> to vector<8x1x512xf32>
    tpu.vector_store %arg9[%c0_13, %c1, %c0_14], %17 {strides = array<i32>} : memref<8x8x512xf32, #tpu.memory_space<vmem>>, vector<8x1x512xf32>,
    %18 = vector.extract_strided_slice %6 {offsets = [0, 256], sizes = [8, 128], strides = [1, 1]} : vector<8x1024xf32> to vector<8x128xf32>
    %cst_15 = arith.constant dense<0.000000e+00> : vector<8x512xf32>
    %19 = tpu.matmul %18, %7, %cst_15 {dimension_numbers = #tpu.dot_dimension_numbers<[1], [0], [0], [1], [0, 0, 1, 1], [], []>} : vector<8x128xf32>, vector<128x512xf32>, vector<8x512xf32> -> vector<8x512xf32>
    %c0_16 = arith.constant 0 : index
    %c2 = arith.constant 2 : index
    %c0_17 = arith.constant 0 : index
    %20 = vector.load %arg9[%c0_16, %c2, %c0_17] : memref<8x8x512xf32, #tpu.memory_space<vmem>>, vector<8x1x512xf32>
    %21 = vector.shape_cast %20 : vector<8x1x512xf32> to vector<8x512xf32>
    %22 = vector.shape_cast %19 : vector<8x512xf32> to vector<8x1x512xf32>
    tpu.vector_store %arg9[%c0_16, %c2, %c0_17], %22 {strides = array<i32>} : memref<8x8x512xf32, #tpu.memory_space<vmem>>, vector<8x1x512xf32>,
    %23 = vector.extract_strided_slice %6 {offsets = [0, 384], sizes = [8, 128], strides = [1, 1]} : vector<8x1024xf32> to vector<8x128xf32>
    %cst_18 = arith.constant dense<0.000000e+00> : vector<8x512xf32>
    %24 = tpu.matmul %23, %7, %cst_18 {dimension_numbers = #tpu.dot_dimension_numbers<[1], [0], [0], [1], [0, 0, 1, 1], [], []>} : vector<8x128xf32>, vector<128x512xf32>, vector<8x512xf32> -> vector<8x512xf32>
    %c0_19 = arith.constant 0 : index
    %c3 = arith.constant 3 : index
    %c0_20 = arith.constant 0 : index
    %25 = vector.load %arg9[%c0_19, %c3, %c0_20] : memref<8x8x512xf32, #tpu.memory_space<vmem>>, vector<8x1x512xf32>
    %26 = vector.shape_cast %25 : vector<8x1x512xf32> to vector<8x512xf32>
    %27 = vector.shape_cast %24 : vector<8x512xf32> to vector<8x1x512xf32>
    tpu.vector_store %arg9[%c0_19, %c3, %c0_20], %27 {strides = array<i32>} : memref<8x8x512xf32, #tpu.memory_space<vmem>>, vector<8x1x512xf32>,
    %28 = vector.extract_strided_slice %6 {offsets = [0, 512], sizes = [8, 128], strides = [1, 1]} : vector<8x1024xf32> to vector<8x128xf32>
    %cst_21 = arith.constant dense<0.000000e+00> : vector<8x512xf32>
    %29 = tpu.matmul %28, %7, %cst_21 {dimension_numbers = #tpu.dot_dimension_numbers<[1], [0], [0], [1], [0, 0, 1, 1], [], []>} : vector<8x128xf32>, vector<128x512xf32>, vector<8x512xf32> -> vector<8x512xf32>
    %c0_22 = arith.constant 0 : index
    %c4 = arith.constant 4 : index
    %c0_23 = arith.constant 0 : index
    %30 = vector.load %arg9[%c0_22, %c4, %c0_23] : memref<8x8x512xf32, #tpu.memory_space<vmem>>, vector<8x1x512xf32>
    %31 = vector.shape_cast %30 : vector<8x1x512xf32> to vector<8x512xf32>
    %32 = vector.shape_cast %29 : vector<8x512xf32> to vector<8x1x512xf32>
    tpu.vector_store %arg9[%c0_22, %c4, %c0_23], %32 {strides = array<i32>} : memref<8x8x512xf32, #tpu.memory_space<vmem>>, vector<8x1x512xf32>,
    %33 = vector.extract_strided_slice %6 {offsets = [0, 640], sizes = [8, 128], strides = [1, 1]} : vector<8x1024xf32> to vector<8x128xf32>
    %cst_24 = arith.constant dense<0.000000e+00> : vector<8x512xf32>
    %34 = tpu.matmul %33, %7, %cst_24 {dimension_numbers = #tpu.dot_dimension_numbers<[1], [0], [0], [1], [0, 0, 1, 1], [], []>} : vector<8x128xf32>, vector<128x512xf32>, vector<8x512xf32> -> vector<8x512xf32>
    %c0_25 = arith.constant 0 : index
    %c5 = arith.constant 5 : index
    %c0_26 = arith.constant 0 : index
    %35 = vector.load %arg9[%c0_25, %c5, %c0_26] : memref<8x8x512xf32, #tpu.memory_space<vmem>>, vector<8x1x512xf32>
    %36 = vector.shape_cast %35 : vector<8x1x512xf32> to vector<8x512xf32>
    %37 = vector.shape_cast %34 : vector<8x512xf32> to vector<8x1x512xf32>
    tpu.vector_store %arg9[%c0_25, %c5, %c0_26], %37 {strides = array<i32>} : memref<8x8x512xf32, #tpu.memory_space<vmem>>, vector<8x1x512xf32>,
    %38 = vector.extract_strided_slice %6 {offsets = [0, 768], sizes = [8, 128], strides = [1, 1]} : vector<8x1024xf32> to vector<8x128xf32>
    %cst_27 = arith.constant dense<0.000000e+00> : vector<8x512xf32>
    %39 = tpu.matmul %38, %7, %cst_27 {dimension_numbers = #tpu.dot_dimension_numbers<[1], [0], [0], [1], [0, 0, 1, 1], [], []>} : vector<8x128xf32>, vector<128x512xf32>, vector<8x512xf32> -> vector<8x512xf32>
    %c0_28 = arith.constant 0 : index
    %c6 = arith.constant 6 : index
    %c0_29 = arith.constant 0 : index
    %40 = vector.load %arg9[%c0_28, %c6, %c0_29] : memref<8x8x512xf32, #tpu.memory_space<vmem>>, vector<8x1x512xf32>
    %41 = vector.shape_cast %40 : vector<8x1x512xf32> to vector<8x512xf32>
    %42 = vector.shape_cast %39 : vector<8x512xf32> to vector<8x1x512xf32>
    tpu.vector_store %arg9[%c0_28, %c6, %c0_29], %42 {strides = array<i32>} : memref<8x8x512xf32, #tpu.memory_space<vmem>>, vector<8x1x512xf32>,
    %43 = vector.extract_strided_slice %6 {offsets = [0, 896], sizes = [8, 128], strides = [1, 1]} : vector<8x1024xf32> to vector<8x128xf32>
    %cst_30 = arith.constant dense<0.000000e+00> : vector<8x512xf32>
    %44 = tpu.matmul %43, %7, %cst_30 {dimension_numbers = #tpu.dot_dimension_numbers<[1], [0], [0], [1], [0, 0, 1, 1], [], []>} : vector<8x128xf32>, vector<128x512xf32>, vector<8x512xf32> -> vector<8x512xf32>
    %c0_31 = arith.constant 0 : index
    %c7 = arith.constant 7 : index
    %c0_32 = arith.constant 0 : index
    %45 = vector.load %arg9[%c0_31, %c7, %c0_32] : memref<8x8x512xf32, #tpu.memory_space<vmem>>, vector<8x1x512xf32>
    %46 = vector.shape_cast %45 : vector<8x1x512xf32> to vector<8x512xf32>
    %47 = vector.shape_cast %44 : vector<8x512xf32> to vector<8x1x512xf32>
    tpu.vector_store %arg9[%c0_31, %c7, %c0_32], %47 {strides = array<i32>} : memref<8x8x512xf32, #tpu.memory_space<vmem>>, vector<8x1x512xf32>,
    %c0_33 = arith.constant 0 : index
    %c0_34 = arith.constant 0 : index
    %48 = vector.load %arg6[%c0_33, %c0_34] : memref<16x8xf32, #tpu.memory_space<vmem>>, vector<16x8xf32>
    %c0_35 = arith.constant 0 : index
    %c0_36 = arith.constant 0 : index
    %c0_37 = arith.constant 0 : index
    %49 = vector.load %arg9[%c0_35, %c0_36, %c0_37] : memref<8x8x512xf32, #tpu.memory_space<vmem>>, vector<1x8x512xf32>
    %50 = vector.shape_cast %49 : vector<1x8x512xf32> to vector<8x512xf32>
    %cst_38 = arith.constant dense<0.000000e+00> : vector<16x512xf32>
    %51 = tpu.matmul %48, %50, %cst_38 {dimension_numbers = #tpu.dot_dimension_numbers<[1], [0], [0], [1], [0, 0, 1, 1], [], []>} : vector<16x8xf32>, vector<8x512xf32>, vector<16x512xf32> -> vector<16x512xf32>
    %c0_39 = arith.constant 0 : index
    %c0_40 = arith.constant 0 : index
    %c0_41 = arith.constant 0 : index
    %c0_42 = arith.constant 0 : index
    %52 = vector.load %arg7[%c0_39, %c0_40, %c0_41, %c0_42] : memref<1x8x16x512xf32, #tpu.memory_space<vmem>>, vector<1x1x16x512xf32>
    %53 = vector.shape_cast %52 : vector<1x1x16x512xf32> to vector<16x512xf32>
    %54 = arith.addf %51, %53 : vector<16x512xf32>
    %c0_43 = arith.constant 0 : index
    %c0_44 = arith.constant 0 : index
    %c0_45 = arith.constant 0 : index
    %c0_46 = arith.constant 0 : index
    %55 = vector.load %arg8[%c0_43, %c0_44, %c0_45, %c0_46] : memref<1x8x16x512xf32, #tpu.memory_space<vmem>>, vector<1x1x16x512xf32>
    %56 = vector.shape_cast %55 : vector<1x1x16x512xf32> to vector<16x512xf32>
    %57 = vector.shape_cast %54 : vector<16x512xf32> to vector<1x1x16x512xf32>
    tpu.vector_store %arg8[%c0_43, %c0_44, %c0_45, %c0_46], %57 {strides = array<i32>} : memref<1x8x16x512xf32, #tpu.memory_space<vmem>>, vector<1x1x16x512xf32>,
    %c1_47 = arith.constant 1 : index
    %c0_48 = arith.constant 0 : index
    %c0_49 = arith.constant 0 : index
    %58 = vector.load %arg9[%c1_47, %c0_48, %c0_49] : memref<8x8x512xf32, #tpu.memory_space<vmem>>, vector<1x8x512xf32>
    %59 = vector.shape_cast %58 : vector<1x8x512xf32> to vector<8x512xf32>
    %cst_50 = arith.constant dense<0.000000e+00> : vector<16x512xf32>
    %60 = tpu.matmul %48, %59, %cst_50 {dimension_numbers = #tpu.dot_dimension_numbers<[1], [0], [0], [1], [0, 0, 1, 1], [], []>} : vector<16x8xf32>, vector<8x512xf32>, vector<16x512xf32> -> vector<16x512xf32>
    %c0_51 = arith.constant 0 : index
    %c1_52 = arith.constant 1 : index
    %c0_53 = arith.constant 0 : index
    %c0_54 = arith.constant 0 : index
    %61 = vector.load %arg7[%c0_51, %c1_52, %c0_53, %c0_54] : memref<1x8x16x512xf32, #tpu.memory_space<vmem>>, vector<1x1x16x512xf32>
    %62 = vector.shape_cast %61 : vector<1x1x16x512xf32> to vector<16x512xf32>
    %63 = arith.addf %60, %62 : vector<16x512xf32>
    %c0_55 = arith.constant 0 : index
    %c1_56 = arith.constant 1 : index
    %c0_57 = arith.constant 0 : index
    %c0_58 = arith.constant 0 : index
    %64 = vector.load %arg8[%c0_55, %c1_56, %c0_57, %c0_58] : memref<1x8x16x512xf32, #tpu.memory_space<vmem>>, vector<1x1x16x512xf32>
    %65 = vector.shape_cast %64 : vector<1x1x16x512xf32> to vector<16x512xf32>
    %66 = vector.shape_cast %63 : vector<16x512xf32> to vector<1x1x16x512xf32>
    tpu.vector_store %arg8[%c0_55, %c1_56, %c0_57, %c0_58], %66 {strides = array<i32>} : memref<1x8x16x512xf32, #tpu.memory_space<vmem>>, vector<1x1x16x512xf32>,
    %c2_59 = arith.constant 2 : index
    %c0_60 = arith.constant 0 : index
    %c0_61 = arith.constant 0 : index
    %67 = vector.load %arg9[%c2_59, %c0_60, %c0_61] : memref<8x8x512xf32, #tpu.memory_space<vmem>>, vector<1x8x512xf32>
    %68 = vector.shape_cast %67 : vector<1x8x512xf32> to vector<8x512xf32>
    %cst_62 = arith.constant dense<0.000000e+00> : vector<16x512xf32>
    %69 = tpu.matmul %48, %68, %cst_62 {dimension_numbers = #tpu.dot_dimension_numbers<[1], [0], [0], [1], [0, 0, 1, 1], [], []>} : vector<16x8xf32>, vector<8x512xf32>, vector<16x512xf32> -> vector<16x512xf32>
    %c0_63 = arith.constant 0 : index
    %c2_64 = arith.constant 2 : index
    %c0_65 = arith.constant 0 : index
    %c0_66 = arith.constant 0 : index
    %70 = vector.load %arg7[%c0_63, %c2_64, %c0_65, %c0_66] : memref<1x8x16x512xf32, #tpu.memory_space<vmem>>, vector<1x1x16x512xf32>
    %71 = vector.shape_cast %70 : vector<1x1x16x512xf32> to vector<16x512xf32>
    %72 = arith.addf %69, %71 : vector<16x512xf32>
    %c0_67 = arith.constant 0 : index
    %c2_68 = arith.constant 2 : index
    %c0_69 = arith.constant 0 : index
    %c0_70 = arith.constant 0 : index
    %73 = vector.load %arg8[%c0_67, %c2_68, %c0_69, %c0_70] : memref<1x8x16x512xf32, #tpu.memory_space<vmem>>, vector<1x1x16x512xf32>
    %74 = vector.shape_cast %73 : vector<1x1x16x512xf32> to vector<16x512xf32>
    %75 = vector.shape_cast %72 : vector<16x512xf32> to vector<1x1x16x512xf32>
    tpu.vector_store %arg8[%c0_67, %c2_68, %c0_69, %c0_70], %75 {strides = array<i32>} : memref<1x8x16x512xf32, #tpu.memory_space<vmem>>, vector<1x1x16x512xf32>,
    %c3_71 = arith.constant 3 : index
    %c0_72 = arith.constant 0 : index
    %c0_73 = arith.constant 0 : index
    %76 = vector.load %arg9[%c3_71, %c0_72, %c0_73] : memref<8x8x512xf32, #tpu.memory_space<vmem>>, vector<1x8x512xf32>
    %77 = vector.shape_cast %76 : vector<1x8x512xf32> to vector<8x512xf32>
    %cst_74 = arith.constant dense<0.000000e+00> : vector<16x512xf32>
    %78 = tpu.matmul %48, %77, %cst_74 {dimension_numbers = #tpu.dot_dimension_numbers<[1], [0], [0], [1], [0, 0, 1, 1], [], []>} : vector<16x8xf32>, vector<8x512xf32>, vector<16x512xf32> -> vector<16x512xf32>
    %c0_75 = arith.constant 0 : index
    %c3_76 = arith.constant 3 : index
    %c0_77 = arith.constant 0 : index
    %c0_78 = arith.constant 0 : index
    %79 = vector.load %arg7[%c0_75, %c3_76, %c0_77, %c0_78] : memref<1x8x16x512xf32, #tpu.memory_space<vmem>>, vector<1x1x16x512xf32>
    %80 = vector.shape_cast %79 : vector<1x1x16x512xf32> to vector<16x512xf32>
    %81 = arith.addf %78, %80 : vector<16x512xf32>
    %c0_79 = arith.constant 0 : index
    %c3_80 = arith.constant 3 : index
    %c0_81 = arith.constant 0 : index
    %c0_82 = arith.constant 0 : index
    %82 = vector.load %arg8[%c0_79, %c3_80, %c0_81, %c0_82] : memref<1x8x16x512xf32, #tpu.memory_space<vmem>>, vector<1x1x16x512xf32>
    %83 = vector.shape_cast %82 : vector<1x1x16x512xf32> to vector<16x512xf32>
    %84 = vector.shape_cast %81 : vector<16x512xf32> to vector<1x1x16x512xf32>
    tpu.vector_store %arg8[%c0_79, %c3_80, %c0_81, %c0_82], %84 {strides = array<i32>} : memref<1x8x16x512xf32, #tpu.memory_space<vmem>>, vector<1x1x16x512xf32>,
    %c4_83 = arith.constant 4 : index
    %c0_84 = arith.constant 0 : index
    %c0_85 = arith.constant 0 : index
    %85 = vector.load %arg9[%c4_83, %c0_84, %c0_85] : memref<8x8x512xf32, #tpu.memory_space<vmem>>, vector<1x8x512xf32>
    %86 = vector.shape_cast %85 : vector<1x8x512xf32> to vector<8x512xf32>
    %cst_86 = arith.constant dense<0.000000e+00> : vector<16x512xf32>
    %87 = tpu.matmul %48, %86, %cst_86 {dimension_numbers = #tpu.dot_dimension_numbers<[1], [0], [0], [1], [0, 0, 1, 1], [], []>} : vector<16x8xf32>, vector<8x512xf32>, vector<16x512xf32> -> vector<16x512xf32>
    %c0_87 = arith.constant 0 : index
    %c4_88 = arith.constant 4 : index
    %c0_89 = arith.constant 0 : index
    %c0_90 = arith.constant 0 : index
    %88 = vector.load %arg7[%c0_87, %c4_88, %c0_89, %c0_90] : memref<1x8x16x512xf32, #tpu.memory_space<vmem>>, vector<1x1x16x512xf32>
    %89 = vector.shape_cast %88 : vector<1x1x16x512xf32> to vector<16x512xf32>
    %90 = arith.addf %87, %89 : vector<16x512xf32>
    %c0_91 = arith.constant 0 : index
    %c4_92 = arith.constant 4 : index
    %c0_93 = arith.constant 0 : index
    %c0_94 = arith.constant 0 : index
    %91 = vector.load %arg8[%c0_91, %c4_92, %c0_93, %c0_94] : memref<1x8x16x512xf32, #tpu.memory_space<vmem>>, vector<1x1x16x512xf32>
    %92 = vector.shape_cast %91 : vector<1x1x16x512xf32> to vector<16x512xf32>
    %93 = vector.shape_cast %90 : vector<16x512xf32> to vector<1x1x16x512xf32>
    tpu.vector_store %arg8[%c0_91, %c4_92, %c0_93, %c0_94], %93 {strides = array<i32>} : memref<1x8x16x512xf32, #tpu.memory_space<vmem>>, vector<1x1x16x512xf32>,
    %c5_95 = arith.constant 5 : index
    %c0_96 = arith.constant 0 : index
    %c0_97 = arith.constant 0 : index
    %94 = vector.load %arg9[%c5_95, %c0_96, %c0_97] : memref<8x8x512xf32, #tpu.memory_space<vmem>>, vector<1x8x512xf32>
    %95 = vector.shape_cast %94 : vector<1x8x512xf32> to vector<8x512xf32>
    %cst_98 = arith.constant dense<0.000000e+00> : vector<16x512xf32>
    %96 = tpu.matmul %48, %95, %cst_98 {dimension_numbers = #tpu.dot_dimension_numbers<[1], [0], [0], [1], [0, 0, 1, 1], [], []>} : vector<16x8xf32>, vector<8x512xf32>, vector<16x512xf32> -> vector<16x512xf32>
    %c0_99 = arith.constant 0 : index
    %c5_100 = arith.constant 5 : index
    %c0_101 = arith.constant 0 : index
    %c0_102 = arith.constant 0 : index
    %97 = vector.load %arg7[%c0_99, %c5_100, %c0_101, %c0_102] : memref<1x8x16x512xf32, #tpu.memory_space<vmem>>, vector<1x1x16x512xf32>
    %98 = vector.shape_cast %97 : vector<1x1x16x512xf32> to vector<16x512xf32>
    %99 = arith.addf %96, %98 : vector<16x512xf32>
    %c0_103 = arith.constant 0 : index
    %c5_104 = arith.constant 5 : index
    %c0_105 = arith.constant 0 : index
    %c0_106 = arith.constant 0 : index
    %100 = vector.load %arg8[%c0_103, %c5_104, %c0_105, %c0_106] : memref<1x8x16x512xf32, #tpu.memory_space<vmem>>, vector<1x1x16x512xf32>
    %101 = vector.shape_cast %100 : vector<1x1x16x512xf32> to vector<16x512xf32>
    %102 = vector.shape_cast %99 : vector<16x512xf32> to vector<1x1x16x512xf32>
    tpu.vector_store %arg8[%c0_103, %c5_104, %c0_105, %c0_106], %102 {strides = array<i32>} : memref<1x8x16x512xf32, #tpu.memory_space<vmem>>, vector<1x1x16x512xf32>,
    %c6_107 = arith.constant 6 : index
    %c0_108 = arith.constant 0 : index
    %c0_109 = arith.constant 0 : index
    %103 = vector.load %arg9[%c6_107, %c0_108, %c0_109] : memref<8x8x512xf32, #tpu.memory_space<vmem>>, vector<1x8x512xf32>
    %104 = vector.shape_cast %103 : vector<1x8x512xf32> to vector<8x512xf32>
    %cst_110 = arith.constant dense<0.000000e+00> : vector<16x512xf32>
    %105 = tpu.matmul %48, %104, %cst_110 {dimension_numbers = #tpu.dot_dimension_numbers<[1], [0], [0], [1], [0, 0, 1, 1], [], []>} : vector<16x8xf32>, vector<8x512xf32>, vector<16x512xf32> -> vector<16x512xf32>
    %c0_111 = arith.constant 0 : index
    %c6_112 = arith.constant 6 : index
    %c0_113 = arith.constant 0 : index
    %c0_114 = arith.constant 0 : index
    %106 = vector.load %arg7[%c0_111, %c6_112, %c0_113, %c0_114] : memref<1x8x16x512xf32, #tpu.memory_space<vmem>>, vector<1x1x16x512xf32>
    %107 = vector.shape_cast %106 : vector<1x1x16x512xf32> to vector<16x512xf32>
    %108 = arith.addf %105, %107 : vector<16x512xf32>
    %c0_115 = arith.constant 0 : index
    %c6_116 = arith.constant 6 : index
    %c0_117 = arith.constant 0 : index
    %c0_118 = arith.constant 0 : index
    %109 = vector.load %arg8[%c0_115, %c6_116, %c0_117, %c0_118] : memref<1x8x16x512xf32, #tpu.memory_space<vmem>>, vector<1x1x16x512xf32>
    %110 = vector.shape_cast %109 : vector<1x1x16x512xf32> to vector<16x512xf32>
    %111 = vector.shape_cast %108 : vector<16x512xf32> to vector<1x1x16x512xf32>
    tpu.vector_store %arg8[%c0_115, %c6_116, %c0_117, %c0_118], %111 {strides = array<i32>} : memref<1x8x16x512xf32, #tpu.memory_space<vmem>>, vector<1x1x16x512xf32>,
    %c7_119 = arith.constant 7 : index
    %c0_120 = arith.constant 0 : index
    %c0_121 = arith.constant 0 : index
    %112 = vector.load %arg9[%c7_119, %c0_120, %c0_121] : memref<8x8x512xf32, #tpu.memory_space<vmem>>, vector<1x8x512xf32>
    %113 = vector.shape_cast %112 : vector<1x8x512xf32> to vector<8x512xf32>
    %cst_122 = arith.constant dense<0.000000e+00> : vector<16x512xf32>
    %114 = tpu.matmul %48, %113, %cst_122 {dimension_numbers = #tpu.dot_dimension_numbers<[1], [0], [0], [1], [0, 0, 1, 1], [], []>} : vector<16x8xf32>, vector<8x512xf32>, vector<16x512xf32> -> vector<16x512xf32>
    %c0_123 = arith.constant 0 : index
    %c7_124 = arith.constant 7 : index
    %c0_125 = arith.constant 0 : index
    %c0_126 = arith.constant 0 : index
    %115 = vector.load %arg7[%c0_123, %c7_124, %c0_125, %c0_126] : memref<1x8x16x512xf32, #tpu.memory_space<vmem>>, vector<1x1x16x512xf32>
    %116 = vector.shape_cast %115 : vector<1x1x16x512xf32> to vector<16x512xf32>
    %117 = arith.addf %114, %116 : vector<16x512xf32>
    %c0_127 = arith.constant 0 : index
    %c7_128 = arith.constant 7 : index
    %c0_129 = arith.constant 0 : index
    %c0_130 = arith.constant 0 : index
    %118 = vector.load %arg8[%c0_127, %c7_128, %c0_129, %c0_130] : memref<1x8x16x512xf32, #tpu.memory_space<vmem>>, vector<1x1x16x512xf32>
    %119 = vector.shape_cast %118 : vector<1x1x16x512xf32> to vector<16x512xf32>
    %120 = vector.shape_cast %117 : vector<16x512xf32> to vector<1x1x16x512xf32>
    tpu.vector_store %arg8[%c0_127, %c7_128, %c0_129, %c0_130], %120 {strides = array<i32>} : memref<1x8x16x512xf32, #tpu.memory_space<vmem>>, vector<1x1x16x512xf32>,
    return
  }
  func.func @transform_0(%arg0: i32, %arg1: i32) -> (i32, i32, i32) {
    %c0_i32 = arith.constant 0 : i32
    %c0_i32_0 = arith.constant 0 : i32
    %c0_i32_1 = arith.constant 0 : i32
    return %arg0, %c0_i32, %c0_i32_0 : i32, i32, i32
  }
  func.func @transform_1(%arg0: i32, %arg1: i32) -> (i32, i32) {
    %c0_i32 = arith.constant 0 : i32
    %c0_i32_0 = arith.constant 0 : i32
    return %arg1, %c0_i32 : i32, i32
  }
  func.func @transform_2(%arg0: i32, %arg1: i32) -> (i32, i32) {
    %c0_i32 = arith.constant 0 : i32
    %c0_i32_0 = arith.constant 0 : i32
    return %arg1, %c0_i32 : i32, i32
  }
  func.func @transform_3(%arg0: i32, %arg1: i32) -> (i32, i32) {
    %c0_i32 = arith.constant 0 : i32
    %c0_i32_0 = arith.constant 0 : i32
    %c0_i32_1 = arith.constant 0 : i32
    return %c0_i32, %c0_i32_0 : i32, i32
  }
  func.func @transform_4(%arg0: i32, %arg1: i32) -> (i32, i32) {
    %c0_i32 = arith.constant 0 : i32
    %c0_i32_0 = arith.constant 0 : i32
    %c0_i32_1 = arith.constant 0 : i32
    return %c0_i32, %c0_i32_0 : i32, i32
  }
  func.func @transform_5(%arg0: i32, %arg1: i32) -> (i32, i32, i32, i32) {
    %c0_i32 = arith.constant 0 : i32
    %c0_i32_0 = arith.constant 0 : i32
    %c0_i32_1 = arith.constant 0 : i32
    return %arg0, %arg1, %c0_i32, %c0_i32_0 : i32, i32, i32, i32
  }
  func.func @transform_6(%arg0: i32, %arg1: i32) -> (i32, i32, i32, i32) {
    %c0_i32 = arith.constant 0 : i32
    %c0_i32_0 = arith.constant 0 : i32
    %c0_i32_1 = arith.constant 0 : i32
    return %arg0, %arg1, %c0_i32, %c0_i32_0 : i32, i32, i32, i32
  }
}

</mosaic_0001>

<bundles_post_ra>
// kernel: tpu_custom_call.1
= control target key start
LH: loop header
LB: loop body
LE: loop exit
PB: predicated region body
PF: predicated region fallthrough
CT: control target
= control target key end

     0   :  { %s6342_s0 = inlined_call_operand.hbm [shape: f32[2,32,1024], index: 0, kind: input, shape index: {}]   ;;  %s6343_s1 = inlined_call_operand.vmem [shape: f32[16,32], index: 1, kind: input, shape index: {}]   ;;  %s6344_s2 = inlined_call_operand.vmem [shape: f32[16,1], index: 2, kind: input, shape index: {}]   ;;  %s6345_s3 = inlined_call_operand.hbm [shape: f32[128,512], index: 3, kind: input, shape index: {}]   ;;  %s6346_s4 = inlined_call_operand.vmem [shape: f32[16,8], index: 4, kind: input, shape index: {}]   ;;  %s6347_s5 = inlined_call_operand.hbm [shape: f32[2,16,16,512], index: 5, kind: input, shape index: {}]   ;;  %s6348_s6 = inlined_call_operand.hbm [shape: f32[2,16,16,512], index: 6, kind: output, shape index: {}]  }
   0x1   :  { %6386 = sst [smem:[#allocation31_spill]] %s6342_s0 }
   0x2   :  { %6387 = sst [smem:[#allocation32_spill]] %s6343_s1 }
   0x3   :  { %6388 = sst [smem:[#allocation33_spill]] %s6344_s2 }
   0x4   :  { %6389 = sst [smem:[#allocation34_spill]] %s6345_s3 }
   0x5   :  { %6390 = sst [smem:[#allocation35_spill]] %s6346_s4 }
   0x6   :  { %6391 = sst [smem:[#allocation36_spill]] %s6348_s6 }
   0x7   :  { %11 = vsyncpa [#allocation4], 0 }
   0x8   :  { %13 = vsyncpa [#allocation4 + $0x1], 0 }
   0x9   :  { %14 = vsyncpa [#allocation7], 0 }
   0xa   :  { %15 = vsyncpa [#allocation5], 0 }
   0xb   :  { %17 = vsyncpa [#allocation5 + $0x1], 0  ;;  %s4952_s21 = smov 0   ;;  %s4954_s22 = smov 0  }
   0xc   :  { %s4956_s23 = smov 0   ;;  %s4958_s24 = smov 0  }
   0xd   :  { %s4960_s25 = smov 0   ;;  %s4962_s26 = smov 0  }
   0xe   :  { %s4964_s27 = smov 0   ;;  %s4966_s28 = smov 0  }
   0xf   :  { %s4968_s29 = smov 0   ;;  %s4970_s30 = smov 0  }
  0x10   :  { %s4972_s7 = smov 0  }
  0x11 LB: > { %6392 = sst [smem:[#allocation14_spill]] %s4862_s21  ;;  %p49_p0 = scmp.ne.s32.totalorder %s4882_s26, %s4878_s25  ;;  %s4902_s7 = sphi %s4972_s7, %s23_s7   ;;  %s4898_s30 = sphi %s4970_s30, %s6473_s30   ;;  %s4894_s29 = sphi %s4968_s29, %s6465_s29   ;;  %s4890_s28 = sphi %s4966_s28, %s6472_s28   ;;  %s4886_s27 = sphi %s4964_s27, %s6464_s27   ;;  %s4882_s26 = sphi %s4962_s26, %s6471_s26   ;;  %s4878_s25 = sphi %s4960_s25, %s6470_s25   ;;  %s4874_s24 = sphi %s4958_s24, %s6469_s24   ;;  %s4870_s23 = sphi %s4956_s23, %s6468_s23   ;;  %s4866_s22 = sphi %s4954_s22, %s6467_s22   ;;  %s4862_s21 = sphi %s4952_s21, %s6466_s21  }
  0x12   : > { %6393 = sst [smem:[#allocation15_spill]] %s4890_s28  ;;  %p6350_p1 = scmp.eq.s32.totalorder %s4902_s7, 0 }
  0x13   : > { %6394 = sst [smem:[#allocation16_spill]] %s4894_s29  ;;  %p6349_p2 = scmp.lt.s32.totalorder %s4902_s7, 4 }
  0x14   : > { %p51_p3 = por %p6350_p1, %p49_p0  ;;  %s245_s10 = sand.u32 1, %s4902_s7  }
  0x15   : > { %s247_s11 = sand.u32 1, %s4882_s26   ;;  %s4497_s13 = sshll.u32 %s4898_s30, 12 }
  0x16   : > { %s4327_s12 = sshll.u32 %s247_s11, 8  ;;  %s6395_s0 = sld [smem:[#allocation31_spill]] }
  0x17   : > { %s249_s17 = scalar_lea.vmem [#allocation3], %s4327_s12  ;;  %p5023_p4 = pnand %p6349_p2, %p51_p3 }
  0x18   : > { %s256_s18 = sshll.u32 %s249_s17, 4  ;;  %s5027_s20 = scalar_lea.sflag [#allocation4], %s245_s10  ;;  %s257_s18 = int_to_ptr.vmem [resolvable:$true] %s256_s18 }
  0x19   : > { %p4694_p5 = pneg %p5023_p4  ;;  %s4705_s9 = scalar_lea.vmem %s257_s18, 4096 }
  0x1a   : > { %p4706_p6 = scmp.ne.s32.totalorder %s257_s18, %s4705_s9  ;;  %s4904_s11 = smov [#allocation3]  }
  0x1b   : > { %s4710_s14 = sshll.u32 %s4904_s11, 4  ;;  %s4711_s14 = int_to_ptr.vmem [resolvable:$false] %s4710_s14 }
  0x1c   : > { %s255_s16 = scalar_lea.hbm %s6395_s0, %s4497_s13  ;;  %p4708_p7 = pnand %p4706_p6, %p4694_p5 }
  0x1d   : > { %s4712_s12 = scalar_lea.vmem %s4711_s14, 8192  ;;  %p4713_p9 = scmp.lt.s32.totalorder %s257_s18, %s4711_s14 }
  0x1e   : > { %p4709_p8 = pneg %p4708_p7  ;;  %p4714_p10 = scmp.lt.s32.totalorder %s4712_s12, %s4705_s9 }
  0x20   : > { %p4715_p11 = por %p4714_p10, %p4713_p9 }
  0x22   : > { %p4716_p12 = pnand %p4715_p11, %p4709_p8 }
  0x24   : > { %4719 = shalt.err (!%p4716_p12)
}
  0x25   : > { %s4905_s13 = smov 1024   ;;  %s4906_s10 = smov 64  }
  0x26   : > { %4517 = dma.hbm_to_vmem [thread:$0]  (!%p5023_p4), %s255_s16, 4096, %s257_s18, %s5027_s20, %s4905_s13, %s4905_s13, %s4906_s10  }
  0x27   : > { %s5035_s15 = sadd.s32 4294967295, %s4902_s7   ;;  %s4323_s9 = sadd.s32 4294967294, %s4902_s7  }
  0x28   : > { %p55_p13 = scmp.ne.s32.totalorder %s4878_s25, %s4874_s24  ;;  %p56_p0 = scmp.eq.s32.totalorder %s5035_s15, 0 }
  0x29   : > { %p177_p3 = scmp.ne.s32.totalorder %s4866_s22, %s4862_s21  ;;  %p209_p7 = scmp.eq.s32.totalorder %s4323_s9, 3 }
  0x2a   : > { %p5046_p6 = por %p56_p0, %p55_p13  ;;  %p4324_p8 = scmp.ge.s32.totalorder %s4902_s7, 1 }
  0x2b   : > { %p5052_p4 = por %p177_p3, %p56_p0  ;;  %p5057_p9 = por %p209_p7, %p177_p3 }
  0x2c   : > { %p216_p10 = scmp.lt.s32.totalorder %s4902_s7, 5  ;;  %s4907_s19 = smov [#allocation6]  }
  0x2d   : > { %s6398_s16 = scalar_select %p5052_p4, 1, 0 }
  0x2e   : > { %s6399_s18 = scalar_select %p5057_p9, 1, 0 }
  0x2f   : > { %p5062_p11 = pnand %p4324_p8, %p216_p10  ;;  %s228_s11 = sshll.u32 %s4907_s19, 4  ;;  %s229_s11 = int_to_ptr.vmem [resolvable:$true] %s228_s11 }
  0x30   : > { %6400 = sst [smem:[#allocation17_spill]] %s6399_s18  ;;  %s32_s12 = sadd.s32 1, %s4894_s29 }
  0x31   : > { %p4510_p12 = pneg %p5062_p11  ;;  %p5075_p3 = scmp.ge.s32.totalorder %s32_s12, 2 }
  0x32   : > { %s4731_s10 = scalar_lea.vmem %s229_s11, 8192  ;;  %p4739_p5 = scmp.lt.s32.totalorder %s229_s11, %s229_s11 }
  0x33   : > { %p5070_p13 = pnand %p4510_p12, %p56_p0  ;;  %p4732_p8 = scmp.ne.s32.totalorder %s229_s11, %s4731_s10 }
  0x34   : > { %p4740_p1 = scmp.lt.s32.totalorder %s4731_s10, %s4731_s10 }
  0x35   : > { %p4722_p7 = pneg %p5070_p13 }
  0x36   : > { %p4741_p9 = por %p4740_p1, %p4739_p5 }
  0x37   : > { %p4734_p10 = pnand %p4732_p8, %p4722_p7 }
  0x39   : > { %p4735_p2 = pneg %p4734_p10 }
  0x3b   : > { %p4742_p4 = pnand %p4741_p9, %p4735_p2 }
  0x3d   : > { %4745 = shalt.err (!%p4742_p4)
}
  0x3e   : > { %s6355_s9 = smov 512   ;;  %s6356_s19 = smov 32  }
  0x3f   : > { %s6404_s3 = sld [smem:[#allocation34_spill]]  ;;  %s6475_s12 = smov (%p5075_p3, %s32_s12), 0 }
  0x40   : > { %6405 = sst [smem:[#allocation18_spill]] %s6475_s12  ;;  %s6406_s0 = sadd.s32 1, %s4898_s30 }
  0x41   : > { %s6477_s0 = smov (!%p5075_p3, %s6406_s0), %s4898_s30  ;;  %s160_s18 = ssub.s32 %s4894_s29, %s6475_s12 }
  0x42   : > { %s164_s14 = sadd.s32 1, %s4870_s23  ;;  %p37_p1 = scmp.ge.s32.totalorder %s6477_s0, 2 }
  0x43   : > { %p171_p2 = scmp.ne.s32.totalorder %s4870_s23, %s4866_s22  ;;  %s282_s21 = sand.u32 1, %s4870_s23  }
  0x44   : > { %s4498_s6 = sshll.u32 %s4894_s29, 6  ;;  %s6479_s0 = smov (%p37_p1, %s6477_s0), 0 }
  0x45   : > { %4513 = dma.hbm_to_vmem [thread:$0]  (!%p5070_p13), %s6404_s3, 8192, %s229_s11, [#allocation7], %s6355_s9, %s6355_s9, %s6356_s19  }
  0x46   : > { %p6407_p5 = scmp.eq.s32.totalorder %s4902_s7, 0  ;;  %p6409_p9 = scmp.eq.s32.totalorder %s5035_s15, 3 }
  0x47   : > { %s39_s13 = ssub.s32 %s4898_s30, %s6479_s0  ;;  %s4330_s10 = sshll.u32 %s282_s21, 9 }
  0x48   : > { %p5109_p4 = por %p171_p2, %p6407_p5  ;;  %p5115_p12 = por %p6409_p9, %p171_p2 }
  0x49   : > { %p40_p13 = scmp.eq.s32.totalorder %s39_s13, 0  ;;  %s161_s9 = sor.u32 %s160_s18, %s39_s13 }
  0x4a   : > { %s6410_s11 = scalar_select %p5115_p12, 1, 0 }
  0x4b   : > { %p162_p3 = scmp.eq.s32.totalorder %s161_s9, 0  ;;  %s6412_s19 = sadd.s32 1, %s4882_s26 }
  0x4c   : > { %6411 = sst [smem:[#allocation19_spill]] %s6410_s11  ;;  %s4333_s29 = sshll.u32 %s4898_s30, 7 }
  0x4d   : > { %s5124_s3 = scalar_select %p40_p13, %s4882_s26, %s6412_s19  }
  0x4e   : > { %s5127_s12 = scalar_select %p162_p3, %s4870_s23, %s164_s14  }
  0x4f   : > { %s284_s28 = scalar_lea.vmem [#allocation8], %s4330_s10  ;;  %s291_s2 = sadd.s32 %s4498_s6, %s4333_s29 }
  0x50   : > { %s294_s4 = sshll.u32 %s284_s28, 4  ;;  %s4334_s1 = sshll.u32 %s291_s2, 7  ;;  %s295_s4 = int_to_ptr.vmem [resolvable:$true] %s294_s4 }
  0x51   : > { %p6413_p7 = scmp.lt.s32.totalorder %s4902_s7, 4  ;;  %s293_s9 = scalar_lea.hbm %s6347_s5, %s4334_s1 }
  0x52   : > { %s4759_s19 = scalar_lea.vmem %s295_s4, 8192  ;;  %s4910_s6 = smov [#allocation8]  }
  0x53   : > { %p5134_p8 = pnand %p6413_p7, %p5109_p4  ;;  %p4760_p1 = scmp.ne.s32.totalorder %s295_s4, %s4759_s19 }
  0x54   : > { %s4764_s28 = sshll.u32 %s4910_s6, 4  ;;  %s4765_s28 = int_to_ptr.vmem [resolvable:$false] %s4764_s28 }
  0x55   : > { %p4748_p10 = pneg %p5134_p8  ;;  %s4766_s2 = scalar_lea.vmem %s4765_s28, 16384 }
  0x56   : > { %p4767_p9 = scmp.lt.s32.totalorder %s295_s4, %s4765_s28  ;;  %p4768_p4 = scmp.lt.s32.totalorder %s4766_s2, %s4759_s19 }
  0x57   : > { %p4762_p2 = pnand %p4760_p1, %p4748_p10 }
  0x58   : > { %p4769_p13 = por %p4768_p4, %p4767_p9 }
  0x59   : > { %p4763_p5 = pneg %p4762_p2 }
  0x5b   : > { %p4770_p3 = pnand %p4769_p13, %p4763_p5 }
  0x5d   : > { %4773 = shalt.err (!%p4770_p3)
}
  0x5e   : > { %s6415_s29 = smov 32   ;;  %s6416_s14 = smov 512  }
  0x5f   : > { %4520 = dma.hbm_to_vmem [thread:$0]  (!%p5134_p8), %s293_s9, 8192, %s295_s4, %s5027_s20, %s6416_s14, %s6416_s14, %s6415_s29  }
  0x60   : > { %306 = sbr.rel (%p5062_p11) target bundleno = 1038 (0x40e), region = 44 }
  0x65   : > { %s308_s1 = sand.u32 1, %s5035_s15   ;;  %s310_s8 = sand.u32 1, %s4878_s25  }
  0x66   : > { %s4336_s13 = sshll.u32 %s310_s8, 8  ;;  %s309_s10 = scalar_lea.sflag [#allocation4], %s308_s1 }
  0x67   : > { %s5153_s21 = scalar_lea.vmem [#allocation3], %s4336_s13 }
  0x68   : > { %4845 = dma.done.wait (%p5046_p6), %s309_s10, 4096  }
  0x69   : > { %4847 = vsyncadd (%p5046_p6), %s309_s10, 4294963200 }
  0x6a   : > { %4849 = dma.done.wait (%p56_p0), [#allocation7], 8192  }
  0x6b   : > { %4851 = vsyncadd (%p56_p0), [#allocation7], 4294959104  ;;  %s323_s4 = sand.u32 1, %s4866_s22   ;;  %p6417_p11 = scmp.ne.s32.totalorder %s6398_s16, 0 }
  0x6c   : > { %s5166_s20 = sshll.u32 %s323_s4, 9 }
  0x6d   : > { %s5169_s24 = scalar_lea.vmem [#allocation8], %s5166_s20 }
  0x6e   : > { %4853 = dma.done.wait (%p6417_p11), %s309_s10, 8192  }
  0x6f   : > { %4855 = vsyncadd (%p6417_p11), %s309_s10, 4294959104  ;;  %p367_p0 = scmp.lt.s32.totalorder %s4886_s27, 1  ;;  %v6364_v0 = vmov 0.0   ;;  %v4912_v1 = vmov 0   ;;  %v403_v2 = vld [vmem:[%s5153_s21 + $0xc8] sm:$0xff]  ;;  %v405_v3 = vld [vmem:[%s5153_s21 + $0xd8] sm:$0xff] }
  0x70   : > { %484 = vmatprep.mubr.f32.mxu0 %v6364_v0  ;;  %555 = vmatprep.mubr.f32.mxu1 %v6364_v0  ;;  %v402_v4 = vld [vmem:[%s5153_s21 + $0xc0] sm:$0xff]  ;;  %v404_v5 = vld [vmem:[%s5153_s21 + $0xd0] sm:$0xff]  ;;  %v395_v6 = vld [vmem:[%s5153_s21 + $0x88] sm:$0xff]  ;;  %s6418_s18 = sld [smem:[#allocation32_spill]]  ;;  %vm416_vm0 = vcmask 261120   ;;  %vm2753_vm2 = vcmask 64512  }
  0x71   : > { %4627 = vset.pattern.permute.xlu0 %v4912_v1  ;;  %s5179_s15 = scalar_select %p367_p0, %s4886_s27, 1  ;;  %444 = vmatprep.subr.mxu0 %v403_v2  ;;  %v397_v7 = vld [vmem:[%s5153_s21 + $0x98] sm:$0xff]  ;;  %v394_v8 = vld [vmem:[%s5153_s21 + $0x80] sm:$0xff]  ;;  %v396_v9 = vld [vmem:[%s5153_s21 + $0x90] sm:$0xff] }
  0x72   : > { %515 = vmatprep.subr.mxu1 %v405_v3  ;;  %445 = vmatpush1.msra.mxu0 %v402_v4  ;;  %v387_v10 = vld [vmem:[%s5153_s21 + $0x48] sm:$0xff]  ;;  %v389_v11 = vld [vmem:[%s5153_s21 + $0x58] sm:$0xff]  ;;  %v386_v12 = vld [vmem:[%s5153_s21 + $0x40] sm:$0xff]  ;;  %s6419_s28 = sld [smem:[#allocation33_spill]]  ;;  %s6144_s10 = scalar_lea.vmem [#allocation9], %s5166_s20 }
  0x73   : > { %s4340_s17 = sshll.u32 %s5179_s15, 3  ;;  %516 = vmatpush1.msra.mxu1 %v404_v5  ;;  %446 = vmatprep.subr.mxu0 %v395_v6  ;;  %v388_v13 = vld [vmem:[%s5153_s21 + $0x50] sm:$0xff]  ;;  %v379_v14 = vld [vmem:[%s5153_s21 + $0x8] sm:$0xff]  ;;  %v381_v15 = vld [vmem:[%s5153_s21 + $0x18] sm:$0xff]  ;;  %s6457_s1 = sld [smem:[#allocation35_spill]] }
  0x74   : > { %517 = vmatprep.subr.mxu1 %v397_v7  ;;  %447 = vmatpush1.msra.mxu0 %v394_v8  ;;  %v378_v16 = vld [vmem:[%s5153_s21] sm:$0xff]  ;;  %v380_v17 = vld [vmem:[%s5153_s21 + $0x10] sm:$0xff]  ;;  %v407_v19 = vld [vmem:[%s5153_s21 + $0xe8] sm:$0xff]  ;;  %s4499_s20 = sshll.u32 %s4886_s27, 6  ;;  %s6282_s6 = scalar_lea.sflag [#allocation5], %s323_s4 }
  0x75   : > { %518 = vmatpush1.msra.mxu1 %v396_v9  ;;  %448 = vmatprep.subr.mxu0 %v387_v10  ;;  %v409_v20 = vld [vmem:[%s5153_s21 + $0xf8] sm:$0xff]  ;;  %v406_v21 = vld [vmem:[%s5153_s21 + $0xe0] sm:$0xff]  ;;  %v408_v22 = vld [vmem:[%s5153_s21 + $0xf0] sm:$0xff] }
  0x76   : > { %s370_s9 = scalar_lea.vmem %s6418_s18, %s4340_s17  ;;  %519 = vmatprep.subr.mxu1 %v389_v11  ;;  %449 = vmatpush1.msra.mxu0 %v386_v12  ;;  %v399_v23 = vld [vmem:[%s5153_s21 + $0xa8] sm:$0xff]  ;;  %v401_v24 = vld [vmem:[%s5153_s21 + $0xb8] sm:$0xff]  ;;  %v398_v25 = vld [vmem:[%s5153_s21 + $0xa0] sm:$0xff] }
  0x77   : > { %520 = vmatpush1.msra.mxu1 %v388_v13  ;;  %v377_v18 = vld [vmem:[%s370_s9] sm:$0xff]  ;;  %450 = vmatprep.subr.mxu0 %v379_v14  ;;  %v400_v26 = vld [vmem:[%s5153_s21 + $0xb0] sm:$0xff]  ;;  %v391_v27 = vld [vmem:[%s5153_s21 + $0x68] sm:$0xff]  ;;  %s6460_s9 = sld [smem:[#allocation36_spill]] }
  0x78   : > { %521 = vmatprep.subr.mxu1 %v381_v15  ;;  %451 = vmatpush1.msra.mxu0 %v378_v16  ;;  %v393_v28 = vld [vmem:[%s5153_s21 + $0x78] sm:$0xff]  ;;  %v390_v29 = vld [vmem:[%s5153_s21 + $0x60] sm:$0xff]  ;;  %v392_v30 = vld [vmem:[%s5153_s21 + $0x70] sm:$0xff]  ;;  %s374_s2 = scalar_lea.vmem %s6419_s28, %s4340_s17  ;;  %s4178_s17 = sshll.u32 %s6144_s10, 4  ;;  %s6269_s17 = int_to_ptr.vmem [resolvable:$true] %s4178_s17 }
  0x79   : > { %522 = vmatpush1.msra.mxu1 %v380_v17  ;;  %4342 = vmatmul.mubr.msk.f32.vlgmr.msra.gmra.mxu0 %vm416_vm0, %v377_v18  ;;  %v383_v31 = vld [vmem:[%s5153_s21 + $0x28] sm:$0xff]  ;;  %v385_v32 = vld [vmem:[%s5153_s21 + $0x38] sm:$0xff]  ;;  %v382_v33 = vld [vmem:[%s5153_s21 + $0x20] sm:$0xff]  ;;  %s4774_s28 = scalar_lea.vmem %s6269_s17, 8192 }
  0x7a   : > { %4343 = vmatmul.mubr.msk.f32.vlgmr.msra.gmra.mxu1 %vm416_vm0, %v377_v18  ;;  %586 = vmatprep.subr.mxu0 %v407_v19  ;;  %v384_v34 = vld [vmem:[%s5153_s21 + $0x30] sm:$0xff]  ;;  %v410_v35 = vld [vmem:[%s374_s2] sm:$0xff]  ;;  %v5227_v36 = vld [vmem:[#allocation6 + $0x1e8] sm:$0xff]  ;;  %s6458_s21 = sld [smem:[#allocation15_spill]]  ;;  %p4775_p6 = scmp.ne.s32.totalorder %s6269_s17, %s4774_s28 }
  0x7b   : > { %657 = vmatprep.subr.mxu1 %v409_v20  ;;  %587 = vmatpush1.msra.mxu0 %v406_v21  ;;  %v5230_v37 = vld [vmem:[#allocation6 + $0x1f8] sm:$0xff]  ;;  %v5232_v38 = vld [vmem:[#allocation6 + $0x1e0] sm:$0xff]  ;;  %v5236_v39 = vld [vmem:[#allocation6 + $0x1f0] sm:$0xff]  ;;  %s4914_s2 = smov [#allocation9]  }
  0x7c   : > { %658 = vmatpush1.msra.mxu1 %v408_v22  ;;  %588 = vmatprep.subr.mxu0 %v399_v23  ;;  %v5238_v40 = vld [vmem:[#allocation6 + $0x1c8] sm:$0xff]  ;;  %v5241_v41 = vld [vmem:[#allocation6 + $0x1d8] sm:$0xff]  ;;  %v5243_v42 = vld [vmem:[#allocation6 + $0x1c0] sm:$0xff]  ;;  %p4776_p7 = pnand %p4775_p6, %p5115_p12  ;;  %s4778_s29 = sshll.u32 %s4914_s2, 4  ;;  %s4779_s29 = int_to_ptr.vmem [resolvable:$false] %s4778_s29 }
  0x7d   : > { %659 = vmatprep.subr.mxu1 %v401_v24  ;;  %589 = vmatpush1.msra.mxu0 %v398_v25  ;;  %v5247_v43 = vld [vmem:[#allocation6 + $0x1d0] sm:$0xff]  ;;  %v5249_v44 = vld [vmem:[#allocation6 + $0x1a8] sm:$0xff]  ;;  %v5253_v45 = vld [vmem:[#allocation6 + $0x1b8] sm:$0xff]  ;;  %s4780_s14 = scalar_lea.vmem %s4779_s29, 16384  ;;  %p4781_p10 = scmp.lt.s32.totalorder %s6269_s17, %s4779_s29 }
  0x7e   : > { %660 = vmatpush1.msra.mxu1 %v400_v26  ;;  %590 = vmatprep.subr.mxu0 %v391_v27  ;;  %v5255_v46 = vld [vmem:[#allocation6 + $0x1a0] sm:$0xff]  ;;  %v5259_v47 = vld [vmem:[#allocation6 + $0x1b0] sm:$0xff]  ;;  %v5261_v48 = vld [vmem:[#allocation6 + $0x188] sm:$0xff]  ;;  %p4777_p8 = pneg %p4776_p7  ;;  %p4782_p1 = scmp.lt.s32.totalorder %s4780_s14, %s4774_s28 }
  0x7f   : > { %661 = vmatprep.subr.mxu1 %v393_v28  ;;  %591 = vmatpush1.msra.mxu0 %v390_v29  ;;  %v5265_v49 = vld [vmem:[#allocation6 + $0x198] sm:$0xff]  ;;  %v5267_v50 = vld [vmem:[#allocation6 + $0x180] sm:$0xff]  ;;  %v5271_v51 = vld [vmem:[#allocation6 + $0x190] sm:$0xff] }
  0x80   : > { %662 = vmatpush1.msra.mxu1 %v392_v30  ;;  %592 = vmatprep.subr.mxu0 %v383_v31  ;;  %v5273_v52 = vld [vmem:[#allocation6 + $0x168] sm:$0xff]  ;;  %v5277_v53 = vld [vmem:[#allocation6 + $0x178] sm:$0xff]  ;;  %v5279_v54 = vld [vmem:[#allocation6 + $0x160] sm:$0xff]  ;;  %s4493_s15 = sshll.u32 %s6458_s21, 7  ;;  %p4783_p2 = por %p4782_p1, %p4781_p10 }
  0x81   : > { %663 = vmatprep.subr.mxu1 %v385_v32  ;;  %593 = vmatpush1.msra.mxu0 %v382_v33  ;;  %v5283_v55 = vld [vmem:[#allocation6 + $0x170] sm:$0xff]  ;;  %v5285_v56 = vld [vmem:[#allocation6 + $0x148] sm:$0xff]  ;;  %v5289_v57 = vld [vmem:[#allocation6 + $0x158] sm:$0xff]  ;;  %s4175_s27 = sadd.s32 %s4499_s20, %s4493_s15 }
  0x82   : > { %626 = vmatprep.mubr.f32.mxu0 %v6364_v0  ;;  %664 = vmatpush1.msra.mxu1 %v384_v34  ;;  %v5291_v58 = vld [vmem:[#allocation6 + $0x140] sm:$0xff]  ;;  %v5295_v59 = vld [vmem:[#allocation6 + $0x150] sm:$0xff]  ;;  %v5297_v60 = vld [vmem:[#allocation6 + $0x128] sm:$0xff]  ;;  %s4494_s16 = sshll.u32 %s4175_s27, 7  ;;  %p4784_p5 = pnand %p4783_p2, %p4777_p8 }
  0x83   : > { %697 = vmatprep.mubr.f32.mxu1 %v6364_v0  ;;  %4344 = vmatmul.mubr.msk.f32.vlgmr.msra.gmra.mxu0 %vm416_vm0, %v377_v18  ;;  %v5301_v61 = vld [vmem:[#allocation6 + $0x138] sm:$0xff]  ;;  %v5303_v62 = vld [vmem:[#allocation6 + $0x120] sm:$0xff]  ;;  %v5307_v63 = vld [vmem:[#allocation6 + $0x130] sm:$0xff]  ;;  %s6276_s19 = scalar_lea.hbm %s6460_s9, %s4494_s16 }
  0x84   : > { %4345 = vmatmul.mubr.msk.f32.vlgmr.msra.gmra.mxu1 %vm416_vm0, %v377_v18  ;;  %413 = vperm.xlu0 %4627, %v410_v35   ;;  %v5309_v1 = vld [vmem:[#allocation6 + $0x108] sm:$0xff]  ;;  %v5313_v2 = vld [vmem:[#allocation6 + $0x118] sm:$0xff]  ;;  %v5315_v3 = vld [vmem:[#allocation6 + $0x100] sm:$0xff] }
  0x85   : > { %768 = vmatprep.subr.mxu0 %v5227_v36  ;;  %839 = vmatprep.subr.mxu1 %v5230_v37  ;;  %v5319_v4 = vld [vmem:[#allocation6 + $0x110] sm:$0xff]  ;;  %v5321_v5 = vld [vmem:[#allocation6 + $0xe8] sm:$0xff]  ;;  %v5325_v6 = vld [vmem:[#allocation6 + $0xf8] sm:$0xff] }
  0x86   : > { %769 = vmatpush1.msra.mxu0 %v5232_v38  ;;  %840 = vmatpush1.msra.mxu1 %v5236_v39  ;;  %v5327_v7 = vld [vmem:[#allocation6 + $0xe0] sm:$0xff]  ;;  %v5331_v8 = vld [vmem:[#allocation6 + $0xf0] sm:$0xff]  ;;  %v5333_v9 = vld [vmem:[#allocation6 + $0xc8] sm:$0xff] }
  0x87   : > { %770 = vmatprep.subr.mxu0 %v5238_v40  ;;  %841 = vmatprep.subr.mxu1 %v5241_v41  ;;  %6420 = vst [vmem:[#allocation20_spill] sm:$0xff] %v5327_v7  ;;  %v5337_v10 = vld [vmem:[#allocation6 + $0xd8] sm:$0xff]  ;;  %v5339_v11 = vld [vmem:[#allocation6 + $0xc0] sm:$0xff]  ;;  %v5343_v12 = vld [vmem:[#allocation6 + $0xd0] sm:$0xff] }
  0x88   : > { %771 = vmatpush1.msra.mxu0 %v5243_v42  ;;  %842 = vmatpush1.msra.mxu1 %v5247_v43  ;;  %v5345_v13 = vld [vmem:[#allocation6 + $0xa8] sm:$0xff]  ;;  %v5349_v14 = vld [vmem:[#allocation6 + $0xb8] sm:$0xff]  ;;  %v5351_v15 = vld [vmem:[#allocation6 + $0xa0] sm:$0xff] }
  0x89   : > { %772 = vmatprep.subr.mxu0 %v5249_v44  ;;  %843 = vmatprep.subr.mxu1 %v5253_v45  ;;  %6421 = vst [vmem:[#allocation21_spill] sm:$0xff] %v5349_v14  ;;  %v5355_v16 = vld [vmem:[#allocation6 + $0xb0] sm:$0xff]  ;;  %v5357_v17 = vld [vmem:[#allocation6 + $0x88] sm:$0xff]  ;;  %v5361_v18 = vld [vmem:[#allocation6 + $0x98] sm:$0xff] }
  0x8a   : > { %773 = vmatpush1.msra.mxu0 %v5255_v46  ;;  %844 = vmatpush1.msra.mxu1 %v5259_v47  ;;  %6422 = vst [vmem:[#allocation22_spill] sm:$0xff] %v5355_v16  ;;  %6423 = vst [vmem:[#allocation23_spill] sm:$0xff] %v5361_v18  ;;  %v5363_v19 = vld [vmem:[#allocation6 + $0x80] sm:$0xff]  ;;  %v5367_v20 = vld [vmem:[#allocation6 + $0x90] sm:$0xff] }
  0x8b   : > { %774 = vmatprep.subr.mxu0 %v5261_v48  ;;  %845 = vmatprep.subr.mxu1 %v5265_v49  ;;  %v5369_v21 = vld [vmem:[#allocation6 + $0x68] sm:$0xff]  ;;  %v5373_v22 = vld [vmem:[#allocation6 + $0x78] sm:$0xff]  ;;  %v5375_v23 = vld [vmem:[#allocation6 + $0x60] sm:$0xff] }
  0x8c   : > { %775 = vmatpush1.msra.mxu0 %v5267_v50  ;;  %846 = vmatpush1.msra.mxu1 %v5271_v51  ;;  %6424 = vst [vmem:[#allocation24_spill] sm:$0xff] %v5369_v21  ;;  %6425 = vst [vmem:[#allocation25_spill] sm:$0xff] %v5373_v22  ;;  %v5379_v24 = vld [vmem:[#allocation6 + $0x70] sm:$0xff]  ;;  %v5381_v25 = vld [vmem:[#allocation6 + $0x48] sm:$0xff] }
  0x8d   : > { %776 = vmatprep.subr.mxu0 %v5273_v52  ;;  %847 = vmatprep.subr.mxu1 %v5277_v53  ;;  %6426 = vst [vmem:[#allocation26_spill] sm:$0xff] %v5381_v25  ;;  %v5385_v26 = vld [vmem:[#allocation6 + $0x58] sm:$0xff]  ;;  %v5387_v27 = vld [vmem:[#allocation6 + $0x40] sm:$0xff]  ;;  %v5391_v28 = vld [vmem:[#allocation6 + $0x50] sm:$0xff] }
  0x8e   : > { %777 = vmatpush1.msra.mxu0 %v5279_v54  ;;  %848 = vmatpush1.msra.mxu1 %v5283_v55  ;;  %6427 = vst [vmem:[#allocation27_spill] sm:$0xff] %v5387_v27  ;;  %v5393_v29 = vld [vmem:[#allocation6 + $0x28] sm:$0xff]  ;;  %v5397_v30 = vld [vmem:[#allocation6 + $0x38] sm:$0xff]  ;;  %v5399_v31 = vld [vmem:[#allocation6 + $0x20] sm:$0xff] }
  0x8f   : > { %778 = vmatprep.subr.mxu0 %v5285_v56  ;;  %849 = vmatprep.subr.mxu1 %v5289_v57  ;;  %6428 = vst [vmem:[#allocation28_spill] sm:$0xff] %v5393_v29  ;;  %6429 = vst [vmem:[#allocation29_spill] sm:$0xff] %v5399_v31  ;;  %v5403_v32 = vld [vmem:[#allocation6 + $0x30] sm:$0xff]  ;;  %v5412_v33 = vld [vmem:[#allocation6 + $0x8] sm:$0xff] }
  0x90   : > { %779 = vmatpush1.msra.mxu0 %v5291_v58  ;;  %850 = vmatpush1.msra.mxu1 %v5295_v59  ;;  %6430 = vst [vmem:[#allocation30_spill] sm:$0xff] %v5403_v32  ;;  %v5414_v34 = vld [vmem:[#allocation6 + $0x18] sm:$0xff]  ;;  %v5416_v35 = vld [vmem:[#allocation6] sm:$0xff] }
  0x91   : > { %780 = vmatprep.subr.mxu0 %v5297_v60  ;;  %851 = vmatprep.subr.mxu1 %v5301_v61 }
  0x92   : > { %781 = vmatpush1.msra.mxu0 %v5303_v62  ;;  %852 = vmatpush1.msra.mxu1 %v5307_v63 }
  0x93   : > { %782 = vmatprep.subr.mxu0 %v5309_v1  ;;  %853 = vmatprep.subr.mxu1 %v5313_v2 }
  0x94   : > { %783 = vmatpush1.msra.mxu0 %v5315_v3  ;;  %854 = vmatpush1.msra.mxu1 %v5319_v4 }
  0x95   : > { %784 = vmatprep.subr.mxu0 %v5321_v5  ;;  %855 = vmatprep.subr.mxu1 %v5325_v6 }
  0x96   : > { %785 = vmatpush1.msra.mxu0 %v5327_v7  ;;  %856 = vmatpush1.msra.mxu1 %v5331_v8 }
  0x97   : > { %786 = vmatprep.subr.mxu0 %v5333_v9  ;;  %857 = vmatprep.subr.mxu1 %v5337_v10 }
  0x98   : > { %787 = vmatpush1.msra.mxu0 %v5339_v11  ;;  %858 = vmatpush1.msra.mxu1 %v5343_v12 }
  0x99   : > { %788 = vmatprep.subr.mxu0 %v5345_v13  ;;  %859 = vmatprep.subr.mxu1 %v5349_v14 }
  0x9a   : > { %789 = vmatpush1.msra.mxu0 %v5351_v15  ;;  %860 = vmatpush1.msra.mxu1 %v5355_v16 }
  0x9b   : > { %790 = vmatprep.subr.mxu0 %v5357_v17  ;;  %861 = vmatprep.subr.mxu1 %v5361_v18 }
  0x9c   : > { %791 = vmatpush1.msra.mxu0 %v5363_v19  ;;  %862 = vmatpush1.msra.mxu1 %v5367_v20 }
  0x9d   : > { %792 = vmatprep.subr.mxu0 %v5369_v21  ;;  %863 = vmatprep.subr.mxu1 %v5373_v22 }
  0x9e   : > { %793 = vmatpush1.msra.mxu0 %v5375_v23  ;;  %864 = vmatpush1.msra.mxu1 %v5379_v24 }
  0x9f   : > { %794 = vmatprep.subr.mxu0 %v5381_v25  ;;  %865 = vmatprep.subr.mxu1 %v5385_v26 }
  0xa0   : > { %795 = vmatpush1.msra.mxu0 %v5387_v27  ;;  %866 = vmatpush1.msra.mxu1 %v5391_v28 }
  0xa1   : > { %796 = vmatprep.subr.mxu0 %v5393_v29  ;;  %867 = vmatprep.subr.mxu1 %v5397_v30  ;;  %v5420_v29 = vld [vmem:[#allocation6 + $0x10] sm:$0xff] }
  0xa2   : > { %797 = vmatpush1.msra.mxu0 %v5399_v31  ;;  %868 = vmatpush1.msra.mxu1 %v5403_v32 }
  0xa3   : > { %832 = vmatprep.mubr.f32.mxu0 %v6364_v0  ;;  %903 = vmatprep.mubr.f32.mxu1 %v6364_v0 }
  0xa4   : > { %798 = vmatprep.subr.mxu0 %v5412_v33  ;;  %869 = vmatprep.subr.mxu1 %v5414_v34 }
  0xa5   : > { %799 = vmatpush1.msra.mxu0 %v5416_v35  ;;  %870 = vmatpush1.msra.mxu1 %v5420_v29 }
  0xa6   : > { %1017 = vmatprep.subr.mxu0 %v5227_v36  ;;  %1088 = vmatprep.subr.mxu1 %v5230_v37 }
  0xff   : > { %v5426_v0 = vpop.permute.xlu0 %413 }
 0x139   : > { %v486_v32 = vpop.f32.mrf.mxu0 }
 0x13a   : > { %v487_v31 = vadd.f32 %v486_v32, %v5426_v0  ;;  %v6431_v32 = vld [vmem:[#allocation28_spill] sm:$0xff] }
 0x13c   : > { %833 = vmatmul.mubr.f32.vlgmr.msra.gmra.mxu0 %v487_v31  ;;  %904 = vmatmul.mubr.f32.vlgmr.msra.gmra.mxu1 %v487_v31  ;;  %v488_v31 = vpop.f32.mrf.mxu0 }
 0x13d   : > { %1018 = vmatpush1.msra.mxu0 %v5232_v38  ;;  %1089 = vmatpush1.msra.mxu1 %v5236_v39 }
 0x13e   : > { %1019 = vmatprep.subr.mxu0 %v5238_v40  ;;  %1090 = vmatprep.subr.mxu1 %v5241_v41 }
 0x13f   : > { %1020 = vmatpush1.msra.mxu0 %v5243_v42  ;;  %1091 = vmatpush1.msra.mxu1 %v5247_v43 }
 0x140   : > { %1021 = vmatprep.subr.mxu0 %v5249_v44  ;;  %1092 = vmatprep.subr.mxu1 %v5253_v45 }
 0x141   : > { %1022 = vmatpush1.msra.mxu0 %v5255_v46  ;;  %1093 = vmatpush1.msra.mxu1 %v5259_v47 }
 0x142   : > { %1023 = vmatprep.subr.mxu0 %v5261_v48  ;;  %1094 = vmatprep.subr.mxu1 %v5265_v49 }
 0x143   : > { %1024 = vmatpush1.msra.mxu0 %v5267_v50  ;;  %1095 = vmatpush1.msra.mxu1 %v5271_v51 }
 0x144   : > { %1025 = vmatprep.subr.mxu0 %v5273_v52  ;;  %1096 = vmatprep.subr.mxu1 %v5277_v53 }
 0x145   : > { %1026 = vmatpush1.msra.mxu0 %v5279_v54  ;;  %1097 = vmatpush1.msra.mxu1 %v5283_v55 }
 0x146   : > { %1027 = vmatprep.subr.mxu0 %v5285_v56  ;;  %1098 = vmatprep.subr.mxu1 %v5289_v57 }
 0x147   : > { %1028 = vmatpush1.msra.mxu0 %v5291_v58  ;;  %1099 = vmatpush1.msra.mxu1 %v5295_v59 }
 0x148   : > { %1029 = vmatprep.subr.mxu0 %v5297_v60  ;;  %1100 = vmatprep.subr.mxu1 %v5301_v61 }
 0x149   : > { %1030 = vmatpush1.msra.mxu0 %v5303_v62  ;;  %1101 = vmatpush1.msra.mxu1 %v5307_v63 }
 0x14a   : > { %1031 = vmatprep.subr.mxu0 %v5309_v1  ;;  %1102 = vmatprep.subr.mxu1 %v5313_v2 }
 0x14b   : > { %1032 = vmatpush1.msra.mxu0 %v5315_v3  ;;  %1103 = vmatpush1.msra.mxu1 %v5319_v4 }
 0x14c   : > { %1033 = vmatprep.subr.mxu0 %v5321_v5  ;;  %1104 = vmatprep.subr.mxu1 %v5325_v6 }
 0x14d   : > { %1034 = vmatpush1.msra.mxu0 %v5327_v7  ;;  %1105 = vmatpush1.msra.mxu1 %v5331_v8 }
 0x14e   : > { %1035 = vmatprep.subr.mxu0 %v5333_v9  ;;  %1106 = vmatprep.subr.mxu1 %v5337_v10 }
 0x14f   : > { %1036 = vmatpush1.msra.mxu0 %v5339_v11  ;;  %1107 = vmatpush1.msra.mxu1 %v5343_v12 }
 0x150   : > { %1037 = vmatprep.subr.mxu0 %v5345_v13  ;;  %1108 = vmatprep.subr.mxu1 %v5349_v14 }
 0x151   : > { %1038 = vmatpush1.msra.mxu0 %v5351_v15  ;;  %1109 = vmatpush1.msra.mxu1 %v5355_v16 }
 0x152   : > { %1039 = vmatprep.subr.mxu0 %v5357_v17  ;;  %1110 = vmatprep.subr.mxu1 %v5361_v18 }
 0x153   : > { %1040 = vmatpush1.msra.mxu0 %v5363_v19  ;;  %1111 = vmatpush1.msra.mxu1 %v5367_v20 }
 0x154   : > { %1041 = vmatprep.subr.mxu0 %v5369_v21  ;;  %1112 = vmatprep.subr.mxu1 %v5373_v22  ;;  %v6432_v21 = vld [vmem:[#allocation29_spill] sm:$0xff]  ;;  %v6433_v22 = vld [vmem:[#allocation30_spill] sm:$0xff] }
 0x155   : > { %1042 = vmatpush1.msra.mxu0 %v5375_v23  ;;  %1113 = vmatpush1.msra.mxu1 %v5379_v24 }
 0x156   : > { %1043 = vmatprep.subr.mxu0 %v5381_v25  ;;  %1114 = vmatprep.subr.mxu1 %v5385_v26  ;;  %v489_v25 = vadd.f32 %v488_v31, %v5426_v0  ;;  %v6436_v31 = vld [vmem:[#allocation25_spill] sm:$0xff] }
 0x157   : > { %1044 = vmatpush1.msra.mxu0 %v5387_v27  ;;  %1115 = vmatpush1.msra.mxu1 %v5391_v28  ;;  %v6434_v27 = vmov 0.0  }
 0x158   : > { %1045 = vmatprep.subr.mxu0 %v6431_v32  ;;  %1116 = vmatprep.subr.mxu1 %v5397_v30 }
 0x159   : > { %1046 = vmatpush1.msra.mxu0 %v6432_v21  ;;  %1117 = vmatpush1.msra.mxu1 %v6433_v22 }
 0x15a   : > { %1047 = vmatprep.subr.mxu0 %v5412_v33  ;;  %1118 = vmatprep.subr.mxu1 %v5414_v34 }
 0x15b   : > { %1048 = vmatpush1.msra.mxu0 %v5416_v35  ;;  %1081 = vmatprep.mubr.f32.mxu0 %v6434_v27 }
 0x15c   : > { %1119 = vmatpush1.msra.mxu1 %v5420_v29  ;;  %1152 = vmatprep.mubr.f32.mxu1 %v6434_v27 }
 0x15d   : > { %1082 = vmatmul.mubr.f32.vlgmr.msra.gmra.mxu0 %v489_v25  ;;  %1153 = vmatmul.mubr.f32.vlgmr.msra.gmra.mxu1 %v489_v25  ;;  %v6435_v25 = vld [vmem:[#allocation24_spill] sm:$0xff] }
 0x15e   : > { %1263 = vmatprep.subr.mxu0 %v5227_v36  ;;  %1334 = vmatprep.subr.mxu1 %v5230_v37 }
 0x15f   : > { %1264 = vmatpush1.msra.mxu0 %v5232_v38  ;;  %1335 = vmatpush1.msra.mxu1 %v5236_v39 }
 0x160   : > { %1265 = vmatprep.subr.mxu0 %v5238_v40  ;;  %1336 = vmatprep.subr.mxu1 %v5241_v41 }
 0x161   : > { %1266 = vmatpush1.msra.mxu0 %v5243_v42  ;;  %1337 = vmatpush1.msra.mxu1 %v5247_v43 }
 0x162   : > { %1267 = vmatprep.subr.mxu0 %v5249_v44  ;;  %1338 = vmatprep.subr.mxu1 %v5253_v45 }
 0x163   : > { %1268 = vmatpush1.msra.mxu0 %v5255_v46  ;;  %1339 = vmatpush1.msra.mxu1 %v5259_v47 }
 0x164   : > { %1269 = vmatprep.subr.mxu0 %v5261_v48  ;;  %1340 = vmatprep.subr.mxu1 %v5265_v49 }
 0x165   : > { %1270 = vmatpush1.msra.mxu0 %v5267_v50  ;;  %1341 = vmatpush1.msra.mxu1 %v5271_v51 }
 0x166   : > { %1271 = vmatprep.subr.mxu0 %v5273_v52  ;;  %1342 = vmatprep.subr.mxu1 %v5277_v53 }
 0x167   : > { %1272 = vmatpush1.msra.mxu0 %v5279_v54  ;;  %1343 = vmatpush1.msra.mxu1 %v5283_v55 }
 0x168   : > { %1273 = vmatprep.subr.mxu0 %v5285_v56  ;;  %1344 = vmatprep.subr.mxu1 %v5289_v57 }
 0x169   : > { %1274 = vmatpush1.msra.mxu0 %v5291_v58  ;;  %1345 = vmatpush1.msra.mxu1 %v5295_v59 }
 0x16a   : > { %1275 = vmatprep.subr.mxu0 %v5297_v60  ;;  %1346 = vmatprep.subr.mxu1 %v5301_v61 }
 0x16b   : > { %1276 = vmatpush1.msra.mxu0 %v5303_v62  ;;  %1347 = vmatpush1.msra.mxu1 %v5307_v63 }
 0x16c   : > { %1277 = vmatprep.subr.mxu0 %v5309_v1  ;;  %1348 = vmatprep.subr.mxu1 %v5313_v2 }
 0x16d   : > { %1278 = vmatpush1.msra.mxu0 %v5315_v3  ;;  %1349 = vmatpush1.msra.mxu1 %v5319_v4 }
 0x16e   : > { %1279 = vmatprep.subr.mxu0 %v5321_v5  ;;  %1350 = vmatprep.subr.mxu1 %v5325_v6 }
 0x16f   : > { %1280 = vmatpush1.msra.mxu0 %v5327_v7  ;;  %1351 = vmatpush1.msra.mxu1 %v5331_v8 }
 0x170   : > { %1281 = vmatprep.subr.mxu0 %v5333_v9  ;;  %1352 = vmatprep.subr.mxu1 %v5337_v10 }
 0x171   : > { %1282 = vmatpush1.msra.mxu0 %v5339_v11  ;;  %1353 = vmatpush1.msra.mxu1 %v5343_v12 }
 0x172   : > { %1283 = vmatprep.subr.mxu0 %v5345_v13  ;;  %1354 = vmatprep.subr.mxu1 %v5349_v14  ;;  %v6437_v14 = vld [vmem:[#allocation26_spill] sm:$0xff] }
 0x173   : > { %1284 = vmatpush1.msra.mxu0 %v5351_v15  ;;  %1355 = vmatpush1.msra.mxu1 %v5355_v16  ;;  %v6438_v16 = vld [vmem:[#allocation27_spill] sm:$0xff] }
 0x174   : > { %1285 = vmatprep.subr.mxu0 %v5357_v17  ;;  %1356 = vmatprep.subr.mxu1 %v5361_v18  ;;  %v557_v18 = vpop.f32.mrf.mxu1 }
 0x175   : > { %1286 = vmatpush1.msra.mxu0 %v5363_v19  ;;  %1357 = vmatpush1.msra.mxu1 %v5367_v20 }
 0x176   : > { %1287 = vmatprep.subr.mxu0 %v6435_v25  ;;  %1358 = vmatprep.subr.mxu1 %v6436_v31 }
 0x177   : > { %1288 = vmatpush1.msra.mxu0 %v5375_v23  ;;  %1359 = vmatpush1.msra.mxu1 %v5379_v24 }
 0x178   : > { %1289 = vmatprep.subr.mxu0 %v6437_v14  ;;  %1360 = vmatprep.subr.mxu1 %v5385_v26  ;;  %v558_v14 = vadd.f32 %v557_v18, %v5426_v0  ;;  %v6440_v18 = vld [vmem:[#allocation22_spill] sm:$0xff] }
 0x179   : > { %1290 = vmatpush1.msra.mxu0 %v6438_v16  ;;  %1361 = vmatpush1.msra.mxu1 %v5391_v28 }
 0x17a   : > { %1291 = vmatprep.subr.mxu0 %v6431_v32  ;;  %1362 = vmatprep.subr.mxu1 %v5397_v30 }
 0x17b   : > { %1292 = vmatpush1.msra.mxu0 %v6432_v21  ;;  %1363 = vmatpush1.msra.mxu1 %v6433_v22 }
 0x17c   : > { %1293 = vmatprep.subr.mxu0 %v5412_v33  ;;  %1364 = vmatprep.subr.mxu1 %v5414_v34 }
 0x17d   : > { %1294 = vmatpush1.msra.mxu0 %v5416_v35  ;;  %1327 = vmatprep.mubr.f32.mxu0 %v6434_v27 }
 0x17e   : > { %1365 = vmatpush1.msra.mxu1 %v5420_v29  ;;  %1398 = vmatprep.mubr.f32.mxu1 %v6434_v27 }
 0x17f   : > { %1328 = vmatmul.mubr.f32.vlgmr.msra.gmra.mxu0 %v558_v14  ;;  %1399 = vmatmul.mubr.f32.vlgmr.msra.gmra.mxu1 %v558_v14  ;;  %v6439_v14 = vld [vmem:[#allocation21_spill] sm:$0xff] }
 0x180   : > { %1509 = vmatprep.subr.mxu0 %v5227_v36  ;;  %1580 = vmatprep.subr.mxu1 %v5230_v37 }
 0x181   : > { %1510 = vmatpush1.msra.mxu0 %v5232_v38  ;;  %1581 = vmatpush1.msra.mxu1 %v5236_v39 }
 0x182   : > { %1511 = vmatprep.subr.mxu0 %v5238_v40  ;;  %1582 = vmatprep.subr.mxu1 %v5241_v41 }
 0x183   : > { %1512 = vmatpush1.msra.mxu0 %v5243_v42  ;;  %1583 = vmatpush1.msra.mxu1 %v5247_v43 }
 0x184   : > { %1513 = vmatprep.subr.mxu0 %v5249_v44  ;;  %1584 = vmatprep.subr.mxu1 %v5253_v45 }
 0x185   : > { %1514 = vmatpush1.msra.mxu0 %v5255_v46  ;;  %1585 = vmatpush1.msra.mxu1 %v5259_v47 }
 0x186   : > { %1515 = vmatprep.subr.mxu0 %v5261_v48  ;;  %1586 = vmatprep.subr.mxu1 %v5265_v49 }
 0x187   : > { %1516 = vmatpush1.msra.mxu0 %v5267_v50  ;;  %1587 = vmatpush1.msra.mxu1 %v5271_v51 }
 0x188   : > { %1517 = vmatprep.subr.mxu0 %v5273_v52  ;;  %1588 = vmatprep.subr.mxu1 %v5277_v53 }
 0x189   : > { %1518 = vmatpush1.msra.mxu0 %v5279_v54  ;;  %1589 = vmatpush1.msra.mxu1 %v5283_v55 }
 0x18a   : > { %1519 = vmatprep.subr.mxu0 %v5285_v56  ;;  %1590 = vmatprep.subr.mxu1 %v5289_v57 }
 0x18b   : > { %1520 = vmatpush1.msra.mxu0 %v5291_v58  ;;  %1591 = vmatpush1.msra.mxu1 %v5295_v59 }
 0x18c   : > { %1521 = vmatprep.subr.mxu0 %v5297_v60  ;;  %1592 = vmatprep.subr.mxu1 %v5301_v61 }
 0x18d   : > { %1522 = vmatpush1.msra.mxu0 %v5303_v62  ;;  %1593 = vmatpush1.msra.mxu1 %v5307_v63 }
 0x18e   : > { %1523 = vmatprep.subr.mxu0 %v5309_v1  ;;  %1594 = vmatprep.subr.mxu1 %v5313_v2 }
 0x18f   : > { %1524 = vmatpush1.msra.mxu0 %v5315_v3  ;;  %1595 = vmatpush1.msra.mxu1 %v5319_v4 }
 0x190   : > { %1525 = vmatprep.subr.mxu0 %v5321_v5  ;;  %1596 = vmatprep.subr.mxu1 %v5325_v6 }
 0x191   : > { %1526 = vmatpush1.msra.mxu0 %v5327_v7  ;;  %1597 = vmatpush1.msra.mxu1 %v5331_v8  ;;  %v6441_v7 = vld [vmem:[#allocation23_spill] sm:$0xff] }
 0x192   : > { %1527 = vmatprep.subr.mxu0 %v5333_v9  ;;  %1598 = vmatprep.subr.mxu1 %v5337_v10 }
 0x193   : > { %1528 = vmatpush1.msra.mxu0 %v5339_v11  ;;  %1599 = vmatpush1.msra.mxu1 %v5343_v12 }
 0x194   : > { %1529 = vmatprep.subr.mxu0 %v5345_v13  ;;  %1600 = vmatprep.subr.mxu1 %v6439_v14  ;;  %v6442_v14 = vld [vmem:[#allocation26_spill] sm:$0xff] }
 0x195   : > { %1530 = vmatpush1.msra.mxu0 %v5351_v15  ;;  %1601 = vmatpush1.msra.mxu1 %v6440_v18 }
 0x196   : > { %1531 = vmatprep.subr.mxu0 %v5357_v17  ;;  %1602 = vmatprep.subr.mxu1 %v6441_v7  ;;  %v559_v7 = vpop.f32.mrf.mxu1 }
 0x197   : > { %1532 = vmatpush1.msra.mxu0 %v5363_v19  ;;  %1603 = vmatpush1.msra.mxu1 %v5367_v20 }
 0x198   : > { %1533 = vmatprep.subr.mxu0 %v6435_v25  ;;  %1604 = vmatprep.subr.mxu1 %v6436_v31 }
 0x199   : > { %1534 = vmatpush1.msra.mxu0 %v5375_v23  ;;  %1605 = vmatpush1.msra.mxu1 %v5379_v24 }
 0x19a   : > { %1535 = vmatprep.subr.mxu0 %v6442_v14  ;;  %1606 = vmatprep.subr.mxu1 %v5385_v26  ;;  %v560_v14 = vadd.f32 %v559_v7, %v5426_v0  ;;  %v6443_v7 = vld [vmem:[#allocation20_spill] sm:$0xff] }
 0x19b   : > { %1536 = vmatpush1.msra.mxu0 %v6438_v16  ;;  %1607 = vmatpush1.msra.mxu1 %v5391_v28 }
 0x19c   : > { %1537 = vmatprep.subr.mxu0 %v6431_v32  ;;  %1608 = vmatprep.subr.mxu1 %v5397_v30 }
 0x19d   : > { %1538 = vmatpush1.msra.mxu0 %v6432_v21  ;;  %1609 = vmatpush1.msra.mxu1 %v6433_v22 }
 0x19e   : > { %1539 = vmatprep.subr.mxu0 %v5412_v33  ;;  %1610 = vmatprep.subr.mxu1 %v5414_v34 }
 0x19f   : > { %1540 = vmatpush1.msra.mxu0 %v5416_v35  ;;  %1573 = vmatprep.mubr.f32.mxu0 %v6434_v27 }
 0x1a0   : > { %1611 = vmatpush1.msra.mxu1 %v5420_v29  ;;  %1644 = vmatprep.mubr.f32.mxu1 %v6434_v27 }
 0x1a1   : > { %1574 = vmatmul.mubr.f32.vlgmr.msra.gmra.mxu0 %v560_v14  ;;  %1645 = vmatmul.mubr.f32.vlgmr.msra.gmra.mxu1 %v560_v14  ;;  %v6444_v14 = vld [vmem:[#allocation21_spill] sm:$0xff] }
 0x1a2   : > { %1755 = vmatprep.subr.mxu0 %v5227_v36  ;;  %1826 = vmatprep.subr.mxu1 %v5230_v37 }
 0x1a3   : > { %1756 = vmatpush1.msra.mxu0 %v5232_v38  ;;  %1827 = vmatpush1.msra.mxu1 %v5236_v39 }
 0x1a4   : > { %1757 = vmatprep.subr.mxu0 %v5238_v40  ;;  %1828 = vmatprep.subr.mxu1 %v5241_v41 }
 0x1a5   : > { %1758 = vmatpush1.msra.mxu0 %v5243_v42  ;;  %1829 = vmatpush1.msra.mxu1 %v5247_v43 }
 0x1a6   : > { %1759 = vmatprep.subr.mxu0 %v5249_v44  ;;  %1830 = vmatprep.subr.mxu1 %v5253_v45 }
 0x1a7   : > { %1760 = vmatpush1.msra.mxu0 %v5255_v46  ;;  %1831 = vmatpush1.msra.mxu1 %v5259_v47 }
 0x1a8   : > { %1761 = vmatprep.subr.mxu0 %v5261_v48  ;;  %1832 = vmatprep.subr.mxu1 %v5265_v49 }
 0x1a9   : > { %1762 = vmatpush1.msra.mxu0 %v5267_v50  ;;  %1833 = vmatpush1.msra.mxu1 %v5271_v51 }
 0x1aa   : > { %1763 = vmatprep.subr.mxu0 %v5273_v52  ;;  %1834 = vmatprep.subr.mxu1 %v5277_v53 }
 0x1ab   : > { %1764 = vmatpush1.msra.mxu0 %v5279_v54  ;;  %1835 = vmatpush1.msra.mxu1 %v5283_v55 }
 0x1ac   : > { %1765 = vmatprep.subr.mxu0 %v5285_v56  ;;  %1836 = vmatprep.subr.mxu1 %v5289_v57 }
 0x1ad   : > { %1766 = vmatpush1.msra.mxu0 %v5291_v58  ;;  %1837 = vmatpush1.msra.mxu1 %v5295_v59 }
 0x1ae   : > { %1767 = vmatprep.subr.mxu0 %v5297_v60  ;;  %1838 = vmatprep.subr.mxu1 %v5301_v61 }
 0x1af   : > { %1768 = vmatpush1.msra.mxu0 %v5303_v62  ;;  %1839 = vmatpush1.msra.mxu1 %v5307_v63 }
 0x1b0   : > { %1769 = vmatprep.subr.mxu0 %v5309_v1  ;;  %1840 = vmatprep.subr.mxu1 %v5313_v2 }
 0x1b1   : > { %1770 = vmatpush1.msra.mxu0 %v5315_v3  ;;  %1841 = vmatpush1.msra.mxu1 %v5319_v4 }
 0x1b2   : > { %1771 = vmatprep.subr.mxu0 %v5321_v5  ;;  %1842 = vmatprep.subr.mxu1 %v5325_v6 }
 0x1b3   : > { %1772 = vmatpush1.msra.mxu0 %v6443_v7  ;;  %1843 = vmatpush1.msra.mxu1 %v5331_v8  ;;  %v6445_v7 = vld [vmem:[#allocation23_spill] sm:$0xff] }
 0x1b4   : > { %1773 = vmatprep.subr.mxu0 %v5333_v9  ;;  %1844 = vmatprep.subr.mxu1 %v5337_v10 }
 0x1b5   : > { %1774 = vmatpush1.msra.mxu0 %v5339_v11  ;;  %1845 = vmatpush1.msra.mxu1 %v5343_v12 }
 0x1b6   : > { %1775 = vmatprep.subr.mxu0 %v5345_v13  ;;  %1846 = vmatprep.subr.mxu1 %v6444_v14  ;;  %v6446_v14 = vld [vmem:[#allocation26_spill] sm:$0xff] }
 0x1b7   : > { %1776 = vmatpush1.msra.mxu0 %v5351_v15  ;;  %1847 = vmatpush1.msra.mxu1 %v6440_v18 }
 0x1b8   : > { %1777 = vmatprep.subr.mxu0 %v5357_v17  ;;  %1848 = vmatprep.subr.mxu1 %v6445_v7  ;;  %v628_v7 = vpop.f32.mrf.mxu0 }
 0x1b9   : > { %1778 = vmatpush1.msra.mxu0 %v5363_v19  ;;  %1849 = vmatpush1.msra.mxu1 %v5367_v20 }
 0x1ba   : > { %1779 = vmatprep.subr.mxu0 %v6435_v25  ;;  %1850 = vmatprep.subr.mxu1 %v6436_v31 }
 0x1bb   : > { %1780 = vmatpush1.msra.mxu0 %v5375_v23  ;;  %1851 = vmatpush1.msra.mxu1 %v5379_v24 }
 0x1bc   : > { %1781 = vmatprep.subr.mxu0 %v6446_v14  ;;  %1852 = vmatprep.subr.mxu1 %v5385_v26  ;;  %v629_v14 = vadd.f32 %v628_v7, %v5426_v0  ;;  %v6447_v7 = vld [vmem:[#allocation20_spill] sm:$0xff] }
 0x1bd   : > { %1782 = vmatpush1.msra.mxu0 %v6438_v16  ;;  %1853 = vmatpush1.msra.mxu1 %v5391_v28 }
 0x1be   : > { %1783 = vmatprep.subr.mxu0 %v6431_v32  ;;  %1854 = vmatprep.subr.mxu1 %v5397_v30 }
 0x1bf   : > { %1784 = vmatpush1.msra.mxu0 %v6432_v21  ;;  %1855 = vmatpush1.msra.mxu1 %v6433_v22 }
 0x1c0   : > { %1785 = vmatprep.subr.mxu0 %v5412_v33  ;;  %1856 = vmatprep.subr.mxu1 %v5414_v34 }
 0x1c1   : > { %1786 = vmatpush1.msra.mxu0 %v5416_v35  ;;  %1819 = vmatprep.mubr.f32.mxu0 %v6434_v27 }
 0x1c2   : > { %1857 = vmatpush1.msra.mxu1 %v5420_v29  ;;  %1890 = vmatprep.mubr.f32.mxu1 %v6434_v27 }
 0x1c3   : > { %1820 = vmatmul.mubr.f32.vlgmr.msra.gmra.mxu0 %v629_v14  ;;  %1891 = vmatmul.mubr.f32.vlgmr.msra.gmra.mxu1 %v629_v14  ;;  %v6448_v14 = vld [vmem:[#allocation21_spill] sm:$0xff] }
 0x1c4   : > { %2001 = vmatprep.subr.mxu0 %v5227_v36  ;;  %2072 = vmatprep.subr.mxu1 %v5230_v37 }
 0x1c5   : > { %2002 = vmatpush1.msra.mxu0 %v5232_v38  ;;  %2073 = vmatpush1.msra.mxu1 %v5236_v39 }
 0x1c6   : > { %2003 = vmatprep.subr.mxu0 %v5238_v40  ;;  %2074 = vmatprep.subr.mxu1 %v5241_v41 }
 0x1c7   : > { %2004 = vmatpush1.msra.mxu0 %v5243_v42  ;;  %2075 = vmatpush1.msra.mxu1 %v5247_v43 }
 0x1c8   : > { %2005 = vmatprep.subr.mxu0 %v5249_v44  ;;  %2076 = vmatprep.subr.mxu1 %v5253_v45 }
 0x1c9   : > { %2006 = vmatpush1.msra.mxu0 %v5255_v46  ;;  %2077 = vmatpush1.msra.mxu1 %v5259_v47 }
 0x1ca   : > { %2007 = vmatprep.subr.mxu0 %v5261_v48  ;;  %2078 = vmatprep.subr.mxu1 %v5265_v49 }
 0x1cb   : > { %2008 = vmatpush1.msra.mxu0 %v5267_v50  ;;  %2079 = vmatpush1.msra.mxu1 %v5271_v51 }
 0x1cc   : > { %2009 = vmatprep.subr.mxu0 %v5273_v52  ;;  %2080 = vmatprep.subr.mxu1 %v5277_v53 }
 0x1cd   : > { %2010 = vmatpush1.msra.mxu0 %v5279_v54  ;;  %2081 = vmatpush1.msra.mxu1 %v5283_v55 }
 0x1ce   : > { %2011 = vmatprep.subr.mxu0 %v5285_v56  ;;  %2082 = vmatprep.subr.mxu1 %v5289_v57 }
 0x1cf   : > { %2012 = vmatpush1.msra.mxu0 %v5291_v58  ;;  %2083 = vmatpush1.msra.mxu1 %v5295_v59 }
 0x1d0   : > { %2013 = vmatprep.subr.mxu0 %v5297_v60  ;;  %2084 = vmatprep.subr.mxu1 %v5301_v61 }
 0x1d1   : > { %2014 = vmatpush1.msra.mxu0 %v5303_v62  ;;  %2085 = vmatpush1.msra.mxu1 %v5307_v63 }
 0x1d2   : > { %2015 = vmatprep.subr.mxu0 %v5309_v1  ;;  %2086 = vmatprep.subr.mxu1 %v5313_v2 }
 0x1d3   : > { %2016 = vmatpush1.msra.mxu0 %v5315_v3  ;;  %2087 = vmatpush1.msra.mxu1 %v5319_v4 }
 0x1d4   : > { %2017 = vmatprep.subr.mxu0 %v5321_v5  ;;  %2088 = vmatprep.subr.mxu1 %v5325_v6 }
 0x1d5   : > { %2018 = vmatpush1.msra.mxu0 %v6447_v7  ;;  %2089 = vmatpush1.msra.mxu1 %v5331_v8  ;;  %v6449_v7 = vld [vmem:[#allocation23_spill] sm:$0xff] }
 0x1d6   : > { %2019 = vmatprep.subr.mxu0 %v5333_v9  ;;  %2090 = vmatprep.subr.mxu1 %v5337_v10 }
 0x1d7   : > { %2020 = vmatpush1.msra.mxu0 %v5339_v11  ;;  %2091 = vmatpush1.msra.mxu1 %v5343_v12 }
 0x1d8   : > { %2021 = vmatprep.subr.mxu0 %v5345_v13  ;;  %2092 = vmatprep.subr.mxu1 %v6448_v14  ;;  %v6450_v14 = vld [vmem:[#allocation26_spill] sm:$0xff] }
 0x1d9   : > { %2022 = vmatpush1.msra.mxu0 %v5351_v15  ;;  %2093 = vmatpush1.msra.mxu1 %v6440_v18 }
 0x1da   : > { %2023 = vmatprep.subr.mxu0 %v5357_v17  ;;  %2094 = vmatprep.subr.mxu1 %v6449_v7  ;;  %v630_v7 = vpop.f32.mrf.mxu0 }
 0x1db   : > { %2024 = vmatpush1.msra.mxu0 %v5363_v19  ;;  %2095 = vmatpush1.msra.mxu1 %v5367_v20 }
 0x1dc   : > { %2025 = vmatprep.subr.mxu0 %v6435_v25  ;;  %2096 = vmatprep.subr.mxu1 %v6436_v31 }
 0x1dd   : > { %2026 = vmatpush1.msra.mxu0 %v5375_v23  ;;  %2097 = vmatpush1.msra.mxu1 %v5379_v24 }
 0x1de   : > { %2027 = vmatprep.subr.mxu0 %v6450_v14  ;;  %2098 = vmatprep.subr.mxu1 %v5385_v26  ;;  %v631_v14 = vadd.f32 %v630_v7, %v5426_v0  ;;  %v4650_v7 = vld [vmem:[#allocation6 + $0x140] sm:$0xff] }
 0x1df   : > { %2028 = vmatpush1.msra.mxu0 %v6438_v16  ;;  %2099 = vmatpush1.msra.mxu1 %v5391_v28 }
 0x1e0   : > { %2029 = vmatprep.subr.mxu0 %v6431_v32  ;;  %2100 = vmatprep.subr.mxu1 %v5397_v30 }
 0x1e1   : > { %2030 = vmatpush1.msra.mxu0 %v6432_v21  ;;  %2101 = vmatpush1.msra.mxu1 %v6433_v22 }
 0x1e2   : > { %2031 = vmatprep.subr.mxu0 %v5412_v33  ;;  %2102 = vmatprep.subr.mxu1 %v5414_v34 }
 0x1e3   : > { %2032 = vmatpush1.msra.mxu0 %v5416_v35  ;;  %2065 = vmatprep.mubr.f32.mxu0 %v6434_v27 }
 0x1e4   : > { %2103 = vmatpush1.msra.mxu1 %v5420_v29  ;;  %2136 = vmatprep.mubr.f32.mxu1 %v6434_v27 }
 0x1e5   : > { %2066 = vmatmul.mubr.f32.vlgmr.msra.gmra.mxu0 %v631_v14  ;;  %2137 = vmatmul.mubr.f32.vlgmr.msra.gmra.mxu1 %v631_v14  ;;  %v4651_v14 = vld [vmem:[#allocation6 + $0x150] sm:$0xff] }
 0x1e6   : > { %2247 = vmatprep.subr.mxu0 %v5227_v36  ;;  %2318 = vmatprep.subr.mxu1 %v5230_v37  ;;  %v4913_v36 = vmov 1966171168  }
 0x1e7   : > { %2248 = vmatpush1.msra.mxu0 %v5232_v38  ;;  %2319 = vmatpush1.msra.mxu1 %v5236_v39  ;;  %v919_v37 = vunpack.c.l.s4 %v4913_v36  ;;  %v921_v38 = vlaneseq  ;;  %v699_v39 = vpop.f32.mrf.mxu1  ;;  %v4652_v36 = vld [vmem:[#allocation6 + $0x128] sm:$0xff] }
 0x1e8   : > { %2249 = vmatprep.subr.mxu0 %v5238_v40  ;;  %2320 = vmatprep.subr.mxu1 %v5241_v41  ;;  %v6451_v40 = vld [vmem:[#allocation20_spill] sm:$0xff] }
 0x1e9   : > { %2250 = vmatpush1.msra.mxu0 %v5243_v42  ;;  %2321 = vmatpush1.msra.mxu1 %v5247_v43  ;;  %v920_v41 = vunpack.c.0.s8 %v919_v37  ;;  %v922_v42 = vshrl.u32 %v921_v38, 7  ;;  %v5802_v43 = vpop.f32.mrf.mxu1  ;;  %vm5832_vm1 = vcmp.lt.s32.totalorder %v921_v38, 512  ;;  %v4653_v37 = vld [vmem:[#allocation6 + $0x138] sm:$0xff]  ;;  %v4654_v38 = vld [vmem:[#allocation6 + $0x120] sm:$0xff] }
 0x1ea   : > { %2251 = vmatprep.subr.mxu0 %v5249_v44  ;;  %2322 = vmatprep.subr.mxu1 %v5253_v45  ;;  %v6452_v44 = vld [vmem:[#allocation21_spill] sm:$0xff]  ;;  %v6453_v45 = vld [vmem:[#allocation23_spill] sm:$0xff] }
 0x1eb   : > { %2252 = vmatpush1.msra.mxu0 %v5255_v46  ;;  %2323 = vmatpush1.msra.mxu1 %v5259_v47 }
 0x1ec   : > { %2253 = vmatprep.subr.mxu0 %v5261_v48  ;;  %2324 = vmatprep.subr.mxu1 %v5265_v49  ;;  %v5812_v48 = vsub.s32 %v920_v41, %v922_v42  ;;  %v4657_v41 = vld [vmem:[#allocation6 + $0x118] sm:$0xff]  ;;  %v4658_v42 = vld [vmem:[#allocation6 + $0x100] sm:$0xff] }
 0x1ed   : > { %2254 = vmatpush1.msra.mxu0 %v5267_v50  ;;  %2325 = vmatpush1.msra.mxu1 %v5271_v51 }
 0x1ee   : > { %2255 = vmatprep.subr.mxu0 %v5273_v52  ;;  %2326 = vmatprep.subr.mxu1 %v5277_v53 }
 0x1ef   : > { %2256 = vmatpush1.msra.mxu0 %v5279_v54  ;;  %2327 = vmatpush1.msra.mxu1 %v5283_v55  ;;  %v6454_v54 = vld [vmem:[#allocation26_spill] sm:$0xff] }
 0x1f0   : > { %2257 = vmatprep.subr.mxu0 %v5285_v56  ;;  %2328 = vmatprep.subr.mxu1 %v5289_v57 }
 0x1f1   : > { %2258 = vmatpush1.msra.mxu0 %v5291_v58  ;;  %2329 = vmatpush1.msra.mxu1 %v5295_v59 }
 0x1f2   : > { %2259 = vmatprep.subr.mxu0 %v5297_v60  ;;  %2330 = vmatprep.subr.mxu1 %v5301_v61 }
 0x1f3   : > { %2260 = vmatpush1.msra.mxu0 %v5303_v62  ;;  %2331 = vmatpush1.msra.mxu1 %v5307_v63 }
 0x1f4   : > { %2261 = vmatprep.subr.mxu0 %v5309_v1  ;;  %2332 = vmatprep.subr.mxu1 %v5313_v2  ;;  %v700_v2 = vadd.f32 %v699_v39, %v5426_v0  ;;  %v4655_v39 = vld [vmem:[#allocation6 + $0x130] sm:$0xff] }
 0x1f5   : > { %2262 = vmatpush1.msra.mxu0 %v5315_v3  ;;  %2333 = vmatpush1.msra.mxu1 %v5319_v4 }
 0x1f6   : > { %2263 = vmatprep.subr.mxu0 %v5321_v5  ;;  %2334 = vmatprep.subr.mxu1 %v5325_v6 }
 0x1f7   : > { %2264 = vmatpush1.msra.mxu0 %v6451_v40  ;;  %2335 = vmatpush1.msra.mxu1 %v5331_v8  ;;  %v4656_v40 = vld [vmem:[#allocation6 + $0x108] sm:$0xff] }
 0x1f8   : > { %2265 = vmatprep.subr.mxu0 %v5333_v9  ;;  %2336 = vmatprep.subr.mxu1 %v5337_v10  ;;  %v4628_v10 = vld [vmem:[#allocation6 + $0x1e8] sm:$0xff] }
 0x1f9   : > { %2266 = vmatpush1.msra.mxu0 %v5339_v11  ;;  %2337 = vmatpush1.msra.mxu1 %v5343_v12  ;;  %v4629_v11 = vld [vmem:[#allocation6 + $0x1f8] sm:$0xff] }
 0x1fa   : > { %2267 = vmatprep.subr.mxu0 %v5345_v13  ;;  %2338 = vmatprep.subr.mxu1 %v6452_v44  ;;  %v4659_v44 = vld [vmem:[#allocation6 + $0x110] sm:$0xff] }
 0x1fb   : > { %2268 = vmatpush1.msra.mxu0 %v5351_v15  ;;  %2339 = vmatpush1.msra.mxu1 %v6440_v18  ;;  %v4630_v15 = vld [vmem:[#allocation6 + $0x1e0] sm:$0xff]  ;;  %v4649_v18 = vld [vmem:[#allocation6 + $0x158] sm:$0xff] }
 0x1fc   : > { %2269 = vmatprep.subr.mxu0 %v5357_v17  ;;  %2340 = vmatprep.subr.mxu1 %v6453_v45  ;;  %v834_v46 = vpop.f32.mrf.mxu0  ;;  %v905_v47 = vpop.f32.mrf.mxu1  ;;  %v4632_v17 = vld [vmem:[#allocation6 + $0x1c8] sm:$0xff] }
 0x1fd   : > { %2270 = vmatpush1.msra.mxu0 %v5363_v19  ;;  %2341 = vmatpush1.msra.mxu1 %v5367_v20  ;;  %v4633_v19 = vld [vmem:[#allocation6 + $0x1d8] sm:$0xff]  ;;  %v4634_v20 = vld [vmem:[#allocation6 + $0x1c0] sm:$0xff]  ;;  %v4660_v45 = vld [vmem:[#allocation6 + $0xe8] sm:$0xff] }
 0x1fe   : > { %2271 = vmatprep.subr.mxu0 %v6435_v25  ;;  %2342 = vmatprep.subr.mxu1 %v6436_v31  ;;  %v836_v49 = vpop.f32.mrf.mxu0  ;;  %v907_v50 = vpop.f32.mrf.mxu1  ;;  %v4647_v25 = vld [vmem:[#allocation6 + $0x170] sm:$0xff]  ;;  %v4648_v31 = vld [vmem:[#allocation6 + $0x148] sm:$0xff] }
 0x1ff   : > { %2272 = vmatpush1.msra.mxu0 %v5375_v23  ;;  %2343 = vmatpush1.msra.mxu1 %v5379_v24  ;;  %v914_v51 = vcombine.low %v834_v46, %v836_v49  ;;  %v915_v52 = vcombine.high %v834_v46, %v836_v49  ;;  %v916_v53 = vcombine.low %v905_v47, %v907_v50  ;;  %v4637_v23 = vld [vmem:[#allocation6 + $0x1b8] sm:$0xff]  ;;  %v4638_v24 = vld [vmem:[#allocation6 + $0x1a0] sm:$0xff]  ;;  %v4663_v49 = vld [vmem:[#allocation6 + $0xf0] sm:$0xff] }
 0x200   : > { %2273 = vmatprep.subr.mxu0 %v6454_v54  ;;  %2344 = vmatprep.subr.mxu1 %v5385_v26  ;;  %v917_v55 = vcombine.high %v905_v47, %v907_v50  ;;  %v4639_v26 = vld [vmem:[#allocation6 + $0x1b0] sm:$0xff]  ;;  %v4661_v46 = vld [vmem:[#allocation6 + $0xf8] sm:$0xff]  ;;  %v4662_v47 = vld [vmem:[#allocation6 + $0xe0] sm:$0xff] }
 0x201   : > { %2274 = vmatpush1.msra.mxu0 %v6438_v16  ;;  %2345 = vmatpush1.msra.mxu1 %v5391_v28  ;;  %v924_v56 = vrot.slane %v914_v51, %v5812_v48  ;;  %v931_v57 = vrot.slane %v915_v52, %v5812_v48  ;;  %v938_v58 = vrot.slane %v916_v53, %v5812_v48  ;;  %v4631_v16 = vld [vmem:[#allocation6 + $0x1f0] sm:$0xff]  ;;  %v4640_v28 = vld [vmem:[#allocation6 + $0x188] sm:$0xff]  ;;  %v4665_v51 = vld [vmem:[#allocation6 + $0xd8] sm:$0xff] }
 0x202   : > { %2275 = vmatprep.subr.mxu0 %v6431_v32  ;;  %2346 = vmatprep.subr.mxu1 %v5397_v30  ;;  %v945_v59 = vrot.slane %v917_v55, %v5812_v48  ;;  %v4642_v30 = vld [vmem:[#allocation6 + $0x180] sm:$0xff]  ;;  %v4664_v50 = vld [vmem:[#allocation6 + $0xc8] sm:$0xff]  ;;  %v4667_v53 = vld [vmem:[#allocation6 + $0xd0] sm:$0xff] }
 0x203   : > { %2276 = vmatpush1.msra.mxu0 %v6432_v21  ;;  %2347 = vmatpush1.msra.mxu1 %v6433_v22  ;;  %v946_v60 = vcombine.low %v924_v56, %v938_v58  ;;  %v947_v61 = vcombine.high %v924_v56, %v938_v58  ;;  %v4635_v21 = vld [vmem:[#allocation6 + $0x1d0] sm:$0xff]  ;;  %v4636_v22 = vld [vmem:[#allocation6 + $0x1a8] sm:$0xff]  ;;  %v4646_v32 = vld [vmem:[#allocation6 + $0x160] sm:$0xff] }
 0x204   : > { %2277 = vmatprep.subr.mxu0 %v5412_v33  ;;  %2348 = vmatprep.subr.mxu1 %v5414_v34  ;;  %v948_v62 = vcombine.low %v931_v57, %v945_v59  ;;  %v949_v63 = vcombine.high %v931_v57, %v945_v59  ;;  %v4643_v33 = vld [vmem:[#allocation6 + $0x190] sm:$0xff]  ;;  %v4644_v34 = vld [vmem:[#allocation6 + $0x168] sm:$0xff]  ;;  %v4666_v52 = vld [vmem:[#allocation6 + $0xc0] sm:$0xff] }
 0x205   : > { %2278 = vmatpush1.msra.mxu0 %v5416_v35  ;;  %2311 = vmatprep.mubr.f32.mxu0 %v6434_v27  ;;  %v956_v3 = vrot.slane %v946_v60, %v5812_v48  ;;  %v970_v4 = vrot.slane %v947_v61, %v5812_v48  ;;  %v4645_v35 = vld [vmem:[#allocation6 + $0x178] sm:$0xff]  ;;  %v4668_v54 = vld [vmem:[#allocation6 + $0xa8] sm:$0xff]  ;;  %v4670_v56 = vld [vmem:[#allocation6 + $0xa0] sm:$0xff] }
 0x206   : > { %2349 = vmatpush1.msra.mxu1 %v5420_v29  ;;  %2382 = vmatprep.mubr.f32.mxu1 %v6434_v27  ;;  %v963_v5 = vrot.slane %v948_v62, %v5812_v48  ;;  %v977_v6 = vrot.slane %v949_v63, %v5812_v48  ;;  %v4641_v29 = vld [vmem:[#allocation6 + $0x198] sm:$0xff]  ;;  %v4671_v57 = vld [vmem:[#allocation6 + $0xb0] sm:$0xff]  ;;  %v4672_v60 = vld [vmem:[#allocation6 + $0x88] sm:$0xff] }
 0x207   : > { %2312 = vmatmul.mubr.f32.vlgmr.msra.gmra.mxu0 %v700_v2  ;;  %2383 = vmatmul.mubr.f32.vlgmr.msra.gmra.mxu1 %v700_v2  ;;  %v978_v8 = vcombine.high %v956_v3, %v956_v3  ;;  %v980_v9 = vcombine.high %v970_v4, %v970_v4  ;;  %994 = vst.msk [vmem:[#allocation2] ss:$8 sm:$0xf] %vm5832_vm1, %v956_v3  ;;  %997 = vst.msk [vmem:[#allocation2 + $0x20] ss:$8 sm:$0xf] %vm5832_vm1, %v970_v4 }
 0x208   : > { %2493 = vmatprep.subr.mxu0 %v4628_v10  ;;  %2564 = vmatprep.subr.mxu1 %v4629_v11  ;;  %v979_v12 = vcombine.high %v963_v5, %v963_v5  ;;  %v981_v13 = vcombine.high %v977_v6, %v977_v6  ;;  %1006 = vst.msk [vmem:[#allocation2 + $0x80] ss:$8 sm:$0xf] %vm5832_vm1, %v963_v5  ;;  %1009 = vst.msk [vmem:[#allocation2 + $0xa0] ss:$8 sm:$0xf] %vm5832_vm1, %v977_v6 }
 0x209   : > { %2494 = vmatpush1.msra.mxu0 %v4630_v15  ;;  %2565 = vmatpush1.msra.mxu1 %v4631_v16  ;;  %1000 = vst.msk [vmem:[#allocation2 + $0x40] ss:$8 sm:$0xf] %vm5832_vm1, %v978_v8  ;;  %1003 = vst.msk [vmem:[#allocation2 + $0x60] ss:$8 sm:$0xf] %vm5832_vm1, %v980_v9 }
 0x20a   : > { %2495 = vmatprep.subr.mxu0 %v4632_v17  ;;  %2566 = vmatprep.subr.mxu1 %v4633_v19  ;;  %1012 = vst.msk [vmem:[#allocation2 + $0xc0] ss:$8 sm:$0xf] %vm5832_vm1, %v979_v12  ;;  %1015 = vst.msk [vmem:[#allocation2 + $0xe0] ss:$8 sm:$0xf] %vm5832_vm1, %v981_v13 }
 0x20b   : > { %2496 = vmatpush1.msra.mxu0 %v4634_v20  ;;  %2567 = vmatpush1.msra.mxu1 %v4635_v21  ;;  %v4669_v55 = vld [vmem:[#allocation6 + $0xb8] sm:$0xff]  ;;  %v4674_v62 = vld [vmem:[#allocation6 + $0x80] sm:$0xff]  ;;  %v4675_v63 = vld [vmem:[#allocation6 + $0x90] sm:$0xff] }
 0x20c   : > { %2497 = vmatprep.subr.mxu0 %v4636_v22  ;;  %2568 = vmatprep.subr.mxu1 %v4637_v23  ;;  %v4673_v61 = vld [vmem:[#allocation6 + $0x98] sm:$0xff]  ;;  %v4676_v4 = vld [vmem:[#allocation6 + $0x68] sm:$0xff]  ;;  %v4678_v10 = vld [vmem:[#allocation6 + $0x60] sm:$0xff] }
 0x20d   : > { %2498 = vmatpush1.msra.mxu0 %v4638_v24  ;;  %2569 = vmatpush1.msra.mxu1 %v4639_v26  ;;  %v4677_v5 = vld [vmem:[#allocation6 + $0x78] sm:$0xff]  ;;  %v4679_v11 = vld [vmem:[#allocation6 + $0x70] sm:$0xff]  ;;  %v4680_v13 = vld [vmem:[#allocation6 + $0x48] sm:$0xff] }
 0x20e   : > { %2499 = vmatprep.subr.mxu0 %v4640_v28  ;;  %2570 = vmatprep.subr.mxu1 %v4641_v29  ;;  %v4681_v15 = vld [vmem:[#allocation6 + $0x58] sm:$0xff]  ;;  %v4682_v20 = vld [vmem:[#allocation6 + $0x40] sm:$0xff]  ;;  %v4683_v21 = vld [vmem:[#allocation6 + $0x50] sm:$0xff] }
 0x20f   : > { %2500 = vmatpush1.msra.mxu0 %v4642_v30  ;;  %2571 = vmatpush1.msra.mxu1 %v4643_v33  ;;  %v4684_v23 = vld [vmem:[#allocation6 + $0x28] sm:$0xff]  ;;  %v4685_v24 = vld [vmem:[#allocation6 + $0x38] sm:$0xff]  ;;  %v4686_v29 = vld [vmem:[#allocation6 + $0x20] sm:$0xff] }
 0x210   : > { %2501 = vmatprep.subr.mxu0 %v4644_v34  ;;  %2572 = vmatprep.subr.mxu1 %v4645_v35  ;;  %v4687_v30 = vld [vmem:[#allocation6 + $0x30] sm:$0xff]  ;;  %v4688_v35 = vld [vmem:[#allocation6 + $0x8] sm:$0xff] }
 0x211   : > { %2502 = vmatpush1.msra.mxu0 %v4646_v32  ;;  %2573 = vmatpush1.msra.mxu1 %v4647_v25  ;;  %v4689_v32 = vld [vmem:[#allocation6 + $0x18] sm:$0xff] }
 0x212   : > { %2503 = vmatprep.subr.mxu0 %v4648_v31  ;;  %2574 = vmatprep.subr.mxu1 %v4649_v18  ;;  %v702_v18 = vadd.f32 %v5802_v43, %v5426_v0 }
 0x213   : > { %2504 = vmatpush1.msra.mxu0 %v4650_v7  ;;  %2575 = vmatpush1.msra.mxu1 %v4651_v14  ;;  %v4690_v7 = vld [vmem:[#allocation6] sm:$0xff] }
 0x214   : > { %2505 = vmatprep.subr.mxu0 %v4652_v36  ;;  %2576 = vmatprep.subr.mxu1 %v4653_v37  ;;  %v4691_v37 = vld [vmem:[#allocation6 + $0x10] sm:$0xff] }
 0x215   : > { %2506 = vmatpush1.msra.mxu0 %v4654_v38  ;;  %2577 = vmatpush1.msra.mxu1 %v4655_v39 }
 0x216   : > { %2507 = vmatprep.subr.mxu0 %v4656_v40  ;;  %2578 = vmatprep.subr.mxu1 %v4657_v41 }
 0x217   : > { %2508 = vmatpush1.msra.mxu0 %v4658_v42  ;;  %2579 = vmatpush1.msra.mxu1 %v4659_v44 }
 0x218   : > { %2509 = vmatprep.subr.mxu0 %v4660_v45  ;;  %2580 = vmatprep.subr.mxu1 %v4661_v46 }
 0x219   : > { %2510 = vmatpush1.msra.mxu0 %v4662_v47  ;;  %2581 = vmatpush1.msra.mxu1 %v4663_v49 }
 0x21a   : > { %2511 = vmatprep.subr.mxu0 %v4664_v50  ;;  %2582 = vmatprep.subr.mxu1 %v4665_v51 }
 0x21b   : > { %2512 = vmatpush1.msra.mxu0 %v4666_v52  ;;  %2583 = vmatpush1.msra.mxu1 %v4667_v53 }
 0x21c   : > { %2513 = vmatprep.subr.mxu0 %v4668_v54  ;;  %2584 = vmatprep.subr.mxu1 %v4669_v55 }
 0x21d   : > { %2514 = vmatpush1.msra.mxu0 %v4670_v56  ;;  %2585 = vmatpush1.msra.mxu1 %v4671_v57  ;;  %v1083_v58 = vpop.f32.mrf.mxu0  ;;  %v1154_v59 = vpop.f32.mrf.mxu1 }
 0x21e   : > { %2515 = vmatprep.subr.mxu0 %v4672_v60  ;;  %2586 = vmatprep.subr.mxu1 %v4673_v61 }
 0x21f   : > { %2516 = vmatpush1.msra.mxu0 %v4674_v62  ;;  %2587 = vmatpush1.msra.mxu1 %v4675_v63  ;;  %v1085_v2 = vpop.f32.mrf.mxu0  ;;  %v1156_v3 = vpop.f32.mrf.mxu1 }
 0x220   : > { %2517 = vmatprep.subr.mxu0 %v4676_v4  ;;  %2588 = vmatprep.subr.mxu1 %v4677_v5  ;;  %v1163_v6 = vcombine.low %v1083_v58, %v1085_v2  ;;  %v1164_v8 = vcombine.high %v1083_v58, %v1085_v2  ;;  %v1165_v9 = vcombine.low %v1154_v59, %v1156_v3 }
 0x221   : > { %2518 = vmatpush1.msra.mxu0 %v4678_v10  ;;  %2589 = vmatpush1.msra.mxu1 %v4679_v11  ;;  %v1166_v12 = vcombine.high %v1154_v59, %v1156_v3 }
 0x222   : > { %2519 = vmatprep.subr.mxu0 %v4680_v13  ;;  %2590 = vmatprep.subr.mxu1 %v4681_v15  ;;  %v1173_v16 = vrot.slane %v1163_v6, %v5812_v48  ;;  %v1180_v17 = vrot.slane %v1164_v8, %v5812_v48  ;;  %v1187_v19 = vrot.slane %v1165_v9, %v5812_v48 }
 0x223   : > { %2520 = vmatpush1.msra.mxu0 %v4682_v20  ;;  %2591 = vmatpush1.msra.mxu1 %v4683_v21  ;;  %v1194_v22 = vrot.slane %v1166_v12, %v5812_v48 }
 0x224   : > { %2521 = vmatprep.subr.mxu0 %v4684_v23  ;;  %2592 = vmatprep.subr.mxu1 %v4685_v24  ;;  %v1195_v26 = vcombine.low %v1173_v16, %v1187_v19  ;;  %v1196_v28 = vcombine.high %v1173_v16, %v1187_v19 }
 0x225   : > { %2522 = vmatpush1.msra.mxu0 %v4686_v29  ;;  %2593 = vmatpush1.msra.mxu1 %v4687_v30  ;;  %v1197_v33 = vcombine.low %v1180_v17, %v1194_v22  ;;  %v1198_v34 = vcombine.high %v1180_v17, %v1194_v22 }
 0x226   : > { %2523 = vmatprep.subr.mxu0 %v4688_v35  ;;  %2594 = vmatprep.subr.mxu1 %v4689_v32  ;;  %v1205_v25 = vrot.slane %v1195_v26, %v5812_v48  ;;  %v1219_v31 = vrot.slane %v1196_v28, %v5812_v48 }
 0x227   : > { %2524 = vmatpush1.msra.mxu0 %v4690_v7  ;;  %2557 = vmatprep.mubr.f32.mxu0 %v6434_v27  ;;  %v1212_v14 = vrot.slane %v1197_v33, %v5812_v48  ;;  %v1226_v36 = vrot.slane %v1198_v34, %v5812_v48 }
 0x228   : > { %2595 = vmatpush1.msra.mxu1 %v4691_v37  ;;  %2628 = vmatprep.mubr.f32.mxu1 %v6434_v27  ;;  %v1227_v38 = vcombine.high %v1205_v25, %v1205_v25  ;;  %v1229_v39 = vcombine.high %v1219_v31, %v1219_v31  ;;  %1240 = vst.msk [vmem:[#allocation2 + $0x1] ss:$8 sm:$0xf] %vm5832_vm1, %v1205_v25  ;;  %1243 = vst.msk [vmem:[#allocation2 + $0x21] ss:$8 sm:$0xf] %vm5832_vm1, %v1219_v31 }
 0x229   : > { %2558 = vmatmul.mubr.f32.vlgmr.msra.gmra.mxu0 %v702_v18  ;;  %2629 = vmatmul.mubr.f32.vlgmr.msra.gmra.mxu1 %v702_v18  ;;  %v1228_v0 = vcombine.high %v1212_v14, %v1212_v14  ;;  %v1230_v43 = vcombine.high %v1226_v36, %v1226_v36  ;;  %1252 = vst.msk [vmem:[#allocation2 + $0x81] ss:$8 sm:$0xf] %vm5832_vm1, %v1212_v14  ;;  %1255 = vst.msk [vmem:[#allocation2 + $0xa1] ss:$8 sm:$0xf] %vm5832_vm1, %v1226_v36 }
 0x22a   : > { %1246 = vst.msk [vmem:[#allocation2 + $0x41] ss:$8 sm:$0xf] %vm5832_vm1, %v1227_v38  ;;  %1249 = vst.msk [vmem:[#allocation2 + $0x61] ss:$8 sm:$0xf] %vm5832_vm1, %v1229_v39  ;;  %2824 = vmatprep.mubr.f32.mxu0 %v6434_v27  ;;  %2901 = vmatprep.mubr.f32.mxu1 %v6434_v27 }
 0x22b   : > { %1258 = vst.msk [vmem:[#allocation2 + $0xc1] ss:$8 sm:$0xf] %vm5832_vm1, %v1228_v0  ;;  %1261 = vst.msk [vmem:[#allocation2 + $0xe1] ss:$8 sm:$0xf] %vm5832_vm1, %v1230_v43 }
 0x23f   : > { %v1329_v40 = vpop.f32.mrf.mxu0  ;;  %v1400_v41 = vpop.f32.mrf.mxu1 }
 0x241   : > { %v1331_v42 = vpop.f32.mrf.mxu0  ;;  %v1402_v44 = vpop.f32.mrf.mxu1 }
 0x242   : > { %v1409_v45 = vcombine.low %v1329_v40, %v1331_v42  ;;  %v1410_v46 = vcombine.high %v1329_v40, %v1331_v42  ;;  %v1411_v47 = vcombine.low %v1400_v41, %v1402_v44  ;;  %v1412_v49 = vcombine.high %v1400_v41, %v1402_v44 }
 0x244   : > { %v1419_v50 = vrot.slane %v1409_v45, %v5812_v48  ;;  %v1426_v51 = vrot.slane %v1410_v46, %v5812_v48  ;;  %v1433_v52 = vrot.slane %v1411_v47, %v5812_v48  ;;  %v1440_v53 = vrot.slane %v1412_v49, %v5812_v48 }
 0x246   : > { %v1441_v54 = vcombine.low %v1419_v50, %v1433_v52  ;;  %v1442_v55 = vcombine.high %v1419_v50, %v1433_v52  ;;  %v1443_v56 = vcombine.low %v1426_v51, %v1440_v53  ;;  %v1444_v57 = vcombine.high %v1426_v51, %v1440_v53 }
 0x248   : > { %v1451_v58 = vrot.slane %v1441_v54, %v5812_v48  ;;  %v1458_v59 = vrot.slane %v1443_v56, %v5812_v48  ;;  %v1465_v60 = vrot.slane %v1442_v55, %v5812_v48  ;;  %v1472_v61 = vrot.slane %v1444_v57, %v5812_v48 }
 0x24a   : > { %v1473_v62 = vcombine.high %v1451_v58, %v1451_v58  ;;  %v1474_v63 = vcombine.high %v1458_v59, %v1458_v59  ;;  %v1475_v2 = vcombine.high %v1465_v60, %v1465_v60  ;;  %v1476_v3 = vcombine.high %v1472_v61, %v1472_v61  ;;  %1486 = vst.msk [vmem:[#allocation2 + $0x2] ss:$8 sm:$0xf] %vm5832_vm1, %v1451_v58 }
 0x24b   : > { %1489 = vst.msk [vmem:[#allocation2 + $0x22] ss:$8 sm:$0xf] %vm5832_vm1, %v1465_v60  ;;  %1498 = vst.msk [vmem:[#allocation2 + $0x82] ss:$8 sm:$0xf] %vm5832_vm1, %v1458_v59 }
 0x24c   : > { %1501 = vst.msk [vmem:[#allocation2 + $0xa2] ss:$8 sm:$0xf] %vm5832_vm1, %v1472_v61  ;;  %1492 = vst.msk [vmem:[#allocation2 + $0x42] ss:$8 sm:$0xf] %vm5832_vm1, %v1473_v62 }
 0x24d   : > { %1495 = vst.msk [vmem:[#allocation2 + $0x62] ss:$8 sm:$0xf] %vm5832_vm1, %v1475_v2  ;;  %1504 = vst.msk [vmem:[#allocation2 + $0xc2] ss:$8 sm:$0xf] %vm5832_vm1, %v1474_v63 }
 0x24e   : > { %1507 = vst.msk [vmem:[#allocation2 + $0xe2] ss:$8 sm:$0xf] %vm5832_vm1, %v1476_v3 }
 0x261   : > { %v1575_v4 = vpop.f32.mrf.mxu0  ;;  %v1646_v5 = vpop.f32.mrf.mxu1 }
 0x263   : > { %v1577_v6 = vpop.f32.mrf.mxu0  ;;  %v1648_v8 = vpop.f32.mrf.mxu1 }
 0x264   : > { %v1655_v9 = vcombine.low %v1575_v4, %v1577_v6  ;;  %v1656_v10 = vcombine.high %v1575_v4, %v1577_v6  ;;  %v1657_v11 = vcombine.low %v1646_v5, %v1648_v8  ;;  %v1658_v12 = vcombine.high %v1646_v5, %v1648_v8 }
 0x266   : > { %v1665_v13 = vrot.slane %v1655_v9, %v5812_v48  ;;  %v1672_v15 = vrot.slane %v1656_v10, %v5812_v48  ;;  %v1679_v16 = vrot.slane %v1657_v11, %v5812_v48  ;;  %v1686_v17 = vrot.slane %v1658_v12, %v5812_v48 }
 0x268   : > { %v1687_v19 = vcombine.low %v1665_v13, %v1679_v16  ;;  %v1688_v20 = vcombine.high %v1665_v13, %v1679_v16  ;;  %v1689_v21 = vcombine.low %v1672_v15, %v1686_v17  ;;  %v1690_v22 = vcombine.high %v1672_v15, %v1686_v17 }
 0x26a   : > { %v1697_v23 = vrot.slane %v1687_v19, %v5812_v48  ;;  %v1704_v24 = vrot.slane %v1689_v21, %v5812_v48  ;;  %v1711_v26 = vrot.slane %v1688_v20, %v5812_v48  ;;  %v1718_v28 = vrot.slane %v1690_v22, %v5812_v48 }
 0x26c   : > { %v1719_v29 = vcombine.high %v1697_v23, %v1697_v23  ;;  %v1720_v30 = vcombine.high %v1704_v24, %v1704_v24  ;;  %v1721_v33 = vcombine.high %v1711_v26, %v1711_v26  ;;  %v1722_v34 = vcombine.high %v1718_v28, %v1718_v28  ;;  %1732 = vst.msk [vmem:[#allocation2 + $0x3] ss:$8 sm:$0xf] %vm5832_vm1, %v1697_v23 }
 0x26d   : > { %1735 = vst.msk [vmem:[#allocation2 + $0x23] ss:$8 sm:$0xf] %vm5832_vm1, %v1711_v26  ;;  %1744 = vst.msk [vmem:[#allocation2 + $0x83] ss:$8 sm:$0xf] %vm5832_vm1, %v1704_v24 }
 0x26e   : > { %1747 = vst.msk [vmem:[#allocation2 + $0xa3] ss:$8 sm:$0xf] %vm5832_vm1, %v1718_v28  ;;  %1738 = vst.msk [vmem:[#allocation2 + $0x43] ss:$8 sm:$0xf] %vm5832_vm1, %v1719_v29 }
 0x26f   : > { %1741 = vst.msk [vmem:[#allocation2 + $0x63] ss:$8 sm:$0xf] %vm5832_vm1, %v1721_v33  ;;  %1750 = vst.msk [vmem:[#allocation2 + $0xc3] ss:$8 sm:$0xf] %vm5832_vm1, %v1720_v30 }
 0x270   : > { %1753 = vst.msk [vmem:[#allocation2 + $0xe3] ss:$8 sm:$0xf] %vm5832_vm1, %v1722_v34 }
 0x283   : > { %v1821_v35 = vpop.f32.mrf.mxu0  ;;  %v1892_v32 = vpop.f32.mrf.mxu1 }
 0x285   : > { %v1823_v25 = vpop.f32.mrf.mxu0  ;;  %v1894_v31 = vpop.f32.mrf.mxu1 }
 0x286   : > { %v1901_v18 = vcombine.low %v1821_v35, %v1823_v25  ;;  %v1902_v7 = vcombine.high %v1821_v35, %v1823_v25  ;;  %v1903_v14 = vcombine.low %v1892_v32, %v1894_v31  ;;  %v1904_v36 = vcombine.high %v1892_v32, %v1894_v31 }
 0x288   : > { %v1911_v37 = vrot.slane %v1901_v18, %v5812_v48  ;;  %v1918_v38 = vrot.slane %v1902_v7, %v5812_v48  ;;  %v1925_v39 = vrot.slane %v1903_v14, %v5812_v48  ;;  %v1932_v0 = vrot.slane %v1904_v36, %v5812_v48 }
 0x28a   : > { %v1933_v43 = vcombine.low %v1911_v37, %v1925_v39  ;;  %v1934_v40 = vcombine.high %v1911_v37, %v1925_v39  ;;  %v1935_v41 = vcombine.low %v1918_v38, %v1932_v0  ;;  %v1936_v42 = vcombine.high %v1918_v38, %v1932_v0 }
 0x28c   : > { %v1943_v44 = vrot.slane %v1933_v43, %v5812_v48  ;;  %v1950_v45 = vrot.slane %v1935_v41, %v5812_v48  ;;  %v1957_v46 = vrot.slane %v1934_v40, %v5812_v48  ;;  %v1964_v47 = vrot.slane %v1936_v42, %v5812_v48 }
 0x28e   : > { %v1965_v49 = vcombine.high %v1943_v44, %v1943_v44  ;;  %v1966_v50 = vcombine.high %v1950_v45, %v1950_v45  ;;  %v1967_v51 = vcombine.high %v1957_v46, %v1957_v46  ;;  %v1968_v52 = vcombine.high %v1964_v47, %v1964_v47  ;;  %1978 = vst.msk [vmem:[#allocation2 + $0x4] ss:$8 sm:$0xf] %vm5832_vm1, %v1943_v44 }
 0x28f   : > { %1981 = vst.msk [vmem:[#allocation2 + $0x24] ss:$8 sm:$0xf] %vm5832_vm1, %v1957_v46  ;;  %1990 = vst.msk [vmem:[#allocation2 + $0x84] ss:$8 sm:$0xf] %vm5832_vm1, %v1950_v45 }
 0x290   : > { %1993 = vst.msk [vmem:[#allocation2 + $0xa4] ss:$8 sm:$0xf] %vm5832_vm1, %v1964_v47  ;;  %1984 = vst.msk [vmem:[#allocation2 + $0x44] ss:$8 sm:$0xf] %vm5832_vm1, %v1965_v49 }
 0x291   : > { %1987 = vst.msk [vmem:[#allocation2 + $0x64] ss:$8 sm:$0xf] %vm5832_vm1, %v1967_v51  ;;  %1996 = vst.msk [vmem:[#allocation2 + $0xc4] ss:$8 sm:$0xf] %vm5832_vm1, %v1966_v50 }
 0x292   : > { %1999 = vst.msk [vmem:[#allocation2 + $0xe4] ss:$8 sm:$0xf] %vm5832_vm1, %v1968_v52 }
 0x2a5   : > { %v2067_v53 = vpop.f32.mrf.mxu0  ;;  %v2138_v54 = vpop.f32.mrf.mxu1 }
 0x2a7   : > { %v2069_v55 = vpop.f32.mrf.mxu0  ;;  %v2140_v56 = vpop.f32.mrf.mxu1 }
 0x2a8   : > { %v2147_v57 = vcombine.low %v2067_v53, %v2069_v55  ;;  %v2148_v58 = vcombine.high %v2067_v53, %v2069_v55  ;;  %v2149_v59 = vcombine.low %v2138_v54, %v2140_v56  ;;  %v2150_v60 = vcombine.high %v2138_v54, %v2140_v56 }
 0x2aa   : > { %v2157_v61 = vrot.slane %v2147_v57, %v5812_v48  ;;  %v2164_v62 = vrot.slane %v2148_v58, %v5812_v48  ;;  %v2171_v63 = vrot.slane %v2149_v59, %v5812_v48  ;;  %v2178_v2 = vrot.slane %v2150_v60, %v5812_v48 }
 0x2ac   : > { %v2179_v3 = vcombine.low %v2157_v61, %v2171_v63  ;;  %v2180_v4 = vcombine.high %v2157_v61, %v2171_v63  ;;  %v2181_v5 = vcombine.low %v2164_v62, %v2178_v2  ;;  %v2182_v6 = vcombine.high %v2164_v62, %v2178_v2 }
 0x2ae   : > { %v2189_v8 = vrot.slane %v2179_v3, %v5812_v48  ;;  %v2196_v9 = vrot.slane %v2181_v5, %v5812_v48  ;;  %v2203_v10 = vrot.slane %v2180_v4, %v5812_v48  ;;  %v2210_v11 = vrot.slane %v2182_v6, %v5812_v48 }
 0x2b0   : > { %v2211_v12 = vcombine.high %v2189_v8, %v2189_v8  ;;  %v2212_v13 = vcombine.high %v2196_v9, %v2196_v9  ;;  %v2213_v15 = vcombine.high %v2203_v10, %v2203_v10  ;;  %v2214_v16 = vcombine.high %v2210_v11, %v2210_v11  ;;  %2224 = vst.msk [vmem:[#allocation2 + $0x5] ss:$8 sm:$0xf] %vm5832_vm1, %v2189_v8 }
 0x2b1   : > { %2227 = vst.msk [vmem:[#allocation2 + $0x25] ss:$8 sm:$0xf] %vm5832_vm1, %v2203_v10  ;;  %2236 = vst.msk [vmem:[#allocation2 + $0x85] ss:$8 sm:$0xf] %vm5832_vm1, %v2196_v9 }
 0x2b2   : > { %2239 = vst.msk [vmem:[#allocation2 + $0xa5] ss:$8 sm:$0xf] %vm5832_vm1, %v2210_v11  ;;  %2230 = vst.msk [vmem:[#allocation2 + $0x45] ss:$8 sm:$0xf] %vm5832_vm1, %v2211_v12 }
 0x2b3   : > { %2233 = vst.msk [vmem:[#allocation2 + $0x65] ss:$8 sm:$0xf] %vm5832_vm1, %v2213_v15  ;;  %2242 = vst.msk [vmem:[#allocation2 + $0xc5] ss:$8 sm:$0xf] %vm5832_vm1, %v2212_v13 }
 0x2b4   : > { %2245 = vst.msk [vmem:[#allocation2 + $0xe5] ss:$8 sm:$0xf] %vm5832_vm1, %v2214_v16  ;;  %v6047_v12 = vld [vmem:[%s6457_s1 + $0x8] sm:$0xff] }
 0x2c7   : > { %v2313_v17 = vpop.f32.mrf.mxu0  ;;  %v2384_v19 = vpop.f32.mrf.mxu1 }
 0x2c9   : > { %v2315_v20 = vpop.f32.mrf.mxu0  ;;  %v2386_v21 = vpop.f32.mrf.mxu1 }
 0x2ca   : > { %v2393_v22 = vcombine.low %v2313_v17, %v2315_v20  ;;  %v2394_v23 = vcombine.high %v2313_v17, %v2315_v20  ;;  %v2395_v24 = vcombine.low %v2384_v19, %v2386_v21  ;;  %v2396_v26 = vcombine.high %v2384_v19, %v2386_v21 }
 0x2cc   : > { %v2403_v28 = vrot.slane %v2393_v22, %v5812_v48  ;;  %v2410_v29 = vrot.slane %v2394_v23, %v5812_v48  ;;  %v2417_v30 = vrot.slane %v2395_v24, %v5812_v48  ;;  %v2424_v33 = vrot.slane %v2396_v26, %v5812_v48 }
 0x2ce   : > { %v2425_v34 = vcombine.low %v2403_v28, %v2417_v30  ;;  %v2426_v35 = vcombine.high %v2403_v28, %v2417_v30  ;;  %v2427_v32 = vcombine.low %v2410_v29, %v2424_v33  ;;  %v2428_v25 = vcombine.high %v2410_v29, %v2424_v33 }
 0x2d0   : > { %v2435_v31 = vrot.slane %v2425_v34, %v5812_v48  ;;  %v2442_v18 = vrot.slane %v2427_v32, %v5812_v48  ;;  %v2449_v7 = vrot.slane %v2426_v35, %v5812_v48  ;;  %v2456_v14 = vrot.slane %v2428_v25, %v5812_v48 }
 0x2d2   : > { %v2457_v36 = vcombine.high %v2435_v31, %v2435_v31  ;;  %v2458_v37 = vcombine.high %v2442_v18, %v2442_v18  ;;  %v2459_v38 = vcombine.high %v2449_v7, %v2449_v7  ;;  %v2460_v39 = vcombine.high %v2456_v14, %v2456_v14  ;;  %2470 = vst.msk [vmem:[#allocation2 + $0x6] ss:$8 sm:$0xf] %vm5832_vm1, %v2435_v31 }
 0x2d3   : > { %2473 = vst.msk [vmem:[#allocation2 + $0x26] ss:$8 sm:$0xf] %vm5832_vm1, %v2449_v7  ;;  %2482 = vst.msk [vmem:[#allocation2 + $0x86] ss:$8 sm:$0xf] %vm5832_vm1, %v2442_v18 }
 0x2d4   : > { %2485 = vst.msk [vmem:[#allocation2 + $0xa6] ss:$8 sm:$0xf] %vm5832_vm1, %v2456_v14  ;;  %2476 = vst.msk [vmem:[#allocation2 + $0x46] ss:$8 sm:$0xf] %vm5832_vm1, %v2457_v36 }
 0x2d5   : > { %2479 = vst.msk [vmem:[#allocation2 + $0x66] ss:$8 sm:$0xf] %vm5832_vm1, %v2459_v38  ;;  %2488 = vst.msk [vmem:[#allocation2 + $0xc6] ss:$8 sm:$0xf] %vm5832_vm1, %v2458_v37 }
 0x2d6   : > { %2491 = vst.msk [vmem:[#allocation2 + $0xe6] ss:$8 sm:$0xf] %vm5832_vm1, %v2460_v39  ;;  %v2745_v14 = vld [vmem:[%s5169_s24] sm:$0xff]  ;;  %v2747_v36 = vld [vmem:[%s5169_s24 + $0x10] sm:$0xff]  ;;  %v2746_v39 = vld [vmem:[%s5169_s24 + $0x8] sm:$0xff] }
 0x2e9   : > { %v2559_v0 = vpop.f32.mrf.mxu0  ;;  %v2630_v43 = vpop.f32.mrf.mxu1 }
 0x2eb   : > { %v2561_v40 = vpop.f32.mrf.mxu0  ;;  %v2632_v41 = vpop.f32.mrf.mxu1 }
 0x2ec   : > { %v2639_v42 = vcombine.low %v2559_v0, %v2561_v40  ;;  %v2640_v44 = vcombine.high %v2559_v0, %v2561_v40  ;;  %v2641_v45 = vcombine.low %v2630_v43, %v2632_v41  ;;  %v2642_v46 = vcombine.high %v2630_v43, %v2632_v41  ;;  %v2748_v0 = vld [vmem:[%s5169_s24 + $0x18] sm:$0xff] }
 0x2ee   : > { %v2649_v47 = vrot.slane %v2639_v42, %v5812_v48  ;;  %v2656_v49 = vrot.slane %v2640_v44, %v5812_v48  ;;  %v2663_v50 = vrot.slane %v2641_v45, %v5812_v48  ;;  %v2670_v51 = vrot.slane %v2642_v46, %v5812_v48  ;;  %v2749_v45 = vld [vmem:[%s5169_s24 + $0x20] sm:$0xff]  ;;  %v2751_v46 = vld [vmem:[%s5169_s24 + $0x30] sm:$0xff] }
 0x2f0   : > { %v2671_v52 = vcombine.low %v2649_v47, %v2663_v50  ;;  %v2672_v53 = vcombine.high %v2649_v47, %v2663_v50  ;;  %v2673_v54 = vcombine.low %v2656_v49, %v2670_v51  ;;  %v2674_v55 = vcombine.high %v2656_v49, %v2670_v51  ;;  %v2750_v50 = vld [vmem:[%s5169_s24 + $0x28] sm:$0xff]  ;;  %v2752_v51 = vld [vmem:[%s5169_s24 + $0x38] sm:$0xff] }
 0x2f2   : > { %v2681_v56 = vrot.slane %v2671_v52, %v5812_v48  ;;  %v2688_v57 = vrot.slane %v2673_v54, %v5812_v48  ;;  %v2695_v58 = vrot.slane %v2672_v53, %v5812_v48  ;;  %v2702_v59 = vrot.slane %v2674_v55, %v5812_v48  ;;  %v6038_v48 = vld [vmem:[%s6457_s1] sm:$0xff] }
 0x2f4   : > { %v2703_v60 = vcombine.high %v2681_v56, %v2681_v56  ;;  %v2704_v61 = vcombine.high %v2688_v57, %v2688_v57  ;;  %v2705_v62 = vcombine.high %v2695_v58, %v2695_v58  ;;  %v2706_v63 = vcombine.high %v2702_v59, %v2702_v59  ;;  %2716 = vst.msk [vmem:[#allocation2 + $0x7] ss:$8 sm:$0xf] %vm5832_vm1, %v2681_v56  ;;  %v4350_v56 = vld [vmem:[%s5169_s24 + $0x40] sm:$0xff] }
 0x2f5   : > { %2719 = vst.msk [vmem:[#allocation2 + $0x27] ss:$8 sm:$0xf] %vm5832_vm1, %v2695_v58  ;;  %2728 = vst.msk [vmem:[#allocation2 + $0x87] ss:$8 sm:$0xf] %vm5832_vm1, %v2688_v57 }
 0x2f6   : > { %2731 = vst.msk [vmem:[#allocation2 + $0xa7] ss:$8 sm:$0xf] %vm5832_vm1, %v2702_v59  ;;  %2722 = vst.msk [vmem:[#allocation2 + $0x47] ss:$8 sm:$0xf] %vm5832_vm1, %v2703_v60 }
 0x2f7   : > { %2725 = vst.msk [vmem:[#allocation2 + $0x67] ss:$8 sm:$0xf] %vm5832_vm1, %v2705_v62  ;;  %2734 = vst.msk [vmem:[#allocation2 + $0xc7] ss:$8 sm:$0xf] %vm5832_vm1, %v2704_v61 }
 0x2f8   : > { %2737 = vst.msk [vmem:[#allocation2 + $0xe7] ss:$8 sm:$0xf] %vm5832_vm1, %v2706_v63  ;;  %v4352_v57 = vld [vmem:[%s5169_s24 + $0x50] sm:$0xff]  ;;  %v4351_v62 = vld [vmem:[%s5169_s24 + $0x48] sm:$0xff]  ;;  %v4353_v63 = vld [vmem:[%s5169_s24 + $0x58] sm:$0xff] }
 0x2fb   : > { %v2742_v2 = vld [vmem:[#allocation2 + $0x8] sm:$0xff]  ;;  %v2744_v3 = vld [vmem:[#allocation2 + $0x18] sm:$0xff]  ;;  %v2741_v4 = vld [vmem:[#allocation2] sm:$0xff] }
 0x2fc   : > { %2790 = vmatprep.subr.mxu0 %v2742_v2  ;;  %2867 = vmatprep.subr.mxu1 %v2744_v3  ;;  %v2743_v5 = vld [vmem:[#allocation2 + $0x10] sm:$0xff]  ;;  %v2924_v1 = vld [vmem:[#allocation2 + $0x28] sm:$0xff]  ;;  %v2926_v6 = vld [vmem:[#allocation2 + $0x38] sm:$0xff] }
 0x2fd   : > { %2791 = vmatpush1.msra.mxu0 %v2741_v4  ;;  %2868 = vmatpush1.msra.mxu1 %v2743_v5  ;;  %v2923_v8 = vld [vmem:[#allocation2 + $0x20] sm:$0xff]  ;;  %v2925_v9 = vld [vmem:[#allocation2 + $0x30] sm:$0xff]  ;;  %v3101_v10 = vld [vmem:[#allocation2 + $0x48] sm:$0xff] }
 0x2fe   : > { %4346 = vmatmul.mubr.msk.f32.vlgmr.msra.gmra.mxu0 %vm2753_vm2, %v6038_v48  ;;  %4348 = vmatmul.mubr.msk.f32.vlgmr.msra.gmra.mxu1 %vm2753_vm2, %v6038_v48  ;;  %v3103_v11 = vld [vmem:[#allocation2 + $0x58] sm:$0xff]  ;;  %v3100_v13 = vld [vmem:[#allocation2 + $0x40] sm:$0xff]  ;;  %v3102_v15 = vld [vmem:[#allocation2 + $0x50] sm:$0xff] }
 0x2ff   : > { %2966 = vmatprep.subr.mxu0 %v2924_v1  ;;  %3043 = vmatprep.subr.mxu1 %v2926_v6  ;;  %v3278_v16 = vld [vmem:[#allocation2 + $0x68] sm:$0xff]  ;;  %v3280_v17 = vld [vmem:[#allocation2 + $0x78] sm:$0xff]  ;;  %v3277_v19 = vld [vmem:[#allocation2 + $0x60] sm:$0xff] }
 0x300   : > { %2967 = vmatpush1.msra.mxu0 %v2923_v8  ;;  %3044 = vmatpush1.msra.mxu1 %v2925_v9  ;;  %v3279_v20 = vld [vmem:[#allocation2 + $0x70] sm:$0xff]  ;;  %v3455_v21 = vld [vmem:[#allocation2 + $0x88] sm:$0xff]  ;;  %v3457_v22 = vld [vmem:[#allocation2 + $0x98] sm:$0xff] }
 0x301   : > { %3143 = vmatprep.subr.mxu0 %v3101_v10  ;;  %3220 = vmatprep.subr.mxu1 %v3103_v11  ;;  %v3454_v23 = vld [vmem:[#allocation2 + $0x80] sm:$0xff]  ;;  %v3456_v24 = vld [vmem:[#allocation2 + $0x90] sm:$0xff]  ;;  %v3632_v26 = vld [vmem:[#allocation2 + $0xa8] sm:$0xff] }
 0x302   : > { %2830 = vmatprep.mubr.f32.mxu0 %v6434_v27  ;;  %2907 = vmatprep.mubr.f32.mxu1 %v6434_v27  ;;  %v3634_v28 = vld [vmem:[#allocation2 + $0xb8] sm:$0xff]  ;;  %v3631_v29 = vld [vmem:[#allocation2 + $0xa0] sm:$0xff]  ;;  %v3633_v30 = vld [vmem:[#allocation2 + $0xb0] sm:$0xff] }
 0x303   : > { %4347 = vmatmul.mubr.msk.f32.gmra.mxu0 %vm2753_vm2, %v6047_v12  ;;  %4349 = vmatmul.mubr.msk.f32.gmra.mxu1 %vm2753_vm2, %v6047_v12  ;;  %v3809_v33 = vld [vmem:[#allocation2 + $0xc8] sm:$0xff]  ;;  %v3811_v34 = vld [vmem:[#allocation2 + $0xd8] sm:$0xff]  ;;  %v3808_v35 = vld [vmem:[#allocation2 + $0xc0] sm:$0xff] }
 0x304   : > { %3000 = vmatprep.mubr.f32.mxu0 %v6434_v27  ;;  %3077 = vmatprep.mubr.f32.mxu1 %v6434_v27  ;;  %v3810_v32 = vld [vmem:[#allocation2 + $0xd0] sm:$0xff]  ;;  %v3986_v25 = vld [vmem:[#allocation2 + $0xe8] sm:$0xff]  ;;  %v3988_v31 = vld [vmem:[#allocation2 + $0xf8] sm:$0xff] }
 0x305   : > { %v3985_v18 = vld [vmem:[#allocation2 + $0xe0] sm:$0xff]  ;;  %v3987_v7 = vld [vmem:[#allocation2 + $0xf0] sm:$0xff]  ;;  %v4355_v11 = vld [vmem:[%s5169_s24 + $0x68] sm:$0xff] }
 0x306   : > { %v4354_v5 = vld [vmem:[%s5169_s24 + $0x60] sm:$0xff]  ;;  %v4356_v1 = vld [vmem:[%s5169_s24 + $0x70] sm:$0xff] }
 0x307   : > { %4358 = vmatmul.mubr.msk.f32.vlgmr.msra.gmra.mxu0 %vm2753_vm2, %v6038_v48  ;;  %4360 = vmatmul.mubr.msk.f32.vlgmr.msra.gmra.mxu1 %vm2753_vm2, %v6038_v48 }
 0x308   : > { %3144 = vmatpush1.msra.mxu0 %v3100_v13  ;;  %3221 = vmatpush1.msra.mxu1 %v3102_v15 }
 0x309   : > { %3320 = vmatprep.subr.mxu0 %v3278_v16  ;;  %3397 = vmatprep.subr.mxu1 %v3280_v17 }
 0x30a   : > { %3006 = vmatprep.mubr.f32.mxu0 %v6434_v27  ;;  %3083 = vmatprep.mubr.f32.mxu1 %v6434_v27 }
 0x30b   : > { %4359 = vmatmul.mubr.msk.f32.gmra.mxu0 %vm2753_vm2, %v6047_v12  ;;  %4361 = vmatmul.mubr.msk.f32.gmra.mxu1 %vm2753_vm2, %v6047_v12 }
 0x30c   : > { %3177 = vmatprep.mubr.f32.mxu0 %v6434_v27  ;;  %3254 = vmatprep.mubr.f32.mxu1 %v6434_v27 }
 0x30f   : > { %4378 = vmatmul.mubr.msk.f32.vlgmr.msra.gmra.mxu0 %vm2753_vm2, %v6038_v48  ;;  %4380 = vmatmul.mubr.msk.f32.vlgmr.msra.gmra.mxu1 %vm2753_vm2, %v6038_v48 }
 0x310   : > { %3321 = vmatpush1.msra.mxu0 %v3277_v19  ;;  %3398 = vmatpush1.msra.mxu1 %v3279_v20  ;;  %v4370_v19 = vld [vmem:[%s5169_s24 + $0x80] sm:$0xff]  ;;  %v4372_v20 = vld [vmem:[%s5169_s24 + $0x90] sm:$0xff] }
 0x311   : > { %3497 = vmatprep.subr.mxu0 %v3455_v21  ;;  %3574 = vmatprep.subr.mxu1 %v3457_v22 }
 0x312   : > { %3183 = vmatprep.mubr.f32.mxu0 %v6434_v27  ;;  %3260 = vmatprep.mubr.f32.mxu1 %v6434_v27 }
 0x313   : > { %4379 = vmatmul.mubr.msk.f32.gmra.mxu0 %vm2753_vm2, %v6047_v12  ;;  %4381 = vmatmul.mubr.msk.f32.gmra.mxu1 %vm2753_vm2, %v6047_v12 }
 0x314   : > { %3354 = vmatprep.mubr.f32.mxu0 %v6434_v27  ;;  %3431 = vmatprep.mubr.f32.mxu1 %v6434_v27 }
 0x317   : > { %4398 = vmatmul.mubr.msk.f32.vlgmr.msra.gmra.mxu0 %vm2753_vm2, %v6038_v48  ;;  %4400 = vmatmul.mubr.msk.f32.vlgmr.msra.gmra.mxu1 %vm2753_vm2, %v6038_v48 }
 0x318   : > { %3498 = vmatpush1.msra.mxu0 %v3454_v23  ;;  %3575 = vmatpush1.msra.mxu1 %v3456_v24 }
 0x319   : > { %3674 = vmatprep.subr.mxu0 %v3632_v26  ;;  %3751 = vmatprep.subr.mxu1 %v3634_v28  ;;  %v4371_v26 = vld [vmem:[%s5169_s24 + $0x88] sm:$0xff]  ;;  %v4373_v28 = vld [vmem:[%s5169_s24 + $0x98] sm:$0xff] }
 0x31a   : > { %3360 = vmatprep.mubr.f32.mxu0 %v6434_v27  ;;  %3437 = vmatprep.mubr.f32.mxu1 %v6434_v27 }
 0x31b   : > { %4399 = vmatmul.mubr.msk.f32.gmra.mxu0 %vm2753_vm2, %v6047_v12  ;;  %4401 = vmatmul.mubr.msk.f32.gmra.mxu1 %vm2753_vm2, %v6047_v12 }
 0x31c   : > { %3531 = vmatprep.mubr.f32.mxu0 %v6434_v27  ;;  %3608 = vmatprep.mubr.f32.mxu1 %v6434_v27 }
 0x31f   : > { %4418 = vmatmul.mubr.msk.f32.vlgmr.msra.gmra.mxu0 %vm2753_vm2, %v6038_v48  ;;  %4420 = vmatmul.mubr.msk.f32.vlgmr.msra.gmra.mxu1 %vm2753_vm2, %v6038_v48 }
 0x320   : > { %3675 = vmatpush1.msra.mxu0 %v3631_v29  ;;  %3752 = vmatpush1.msra.mxu1 %v3633_v30 }
 0x321   : > { %3851 = vmatprep.subr.mxu0 %v3809_v33  ;;  %3928 = vmatprep.subr.mxu1 %v3811_v34 }
 0x322   : > { %3537 = vmatprep.mubr.f32.mxu0 %v6434_v27  ;;  %3614 = vmatprep.mubr.f32.mxu1 %v6434_v27 }
 0x323   : > { %4419 = vmatmul.mubr.msk.f32.gmra.mxu0 %vm2753_vm2, %v6047_v12  ;;  %4421 = vmatmul.mubr.msk.f32.gmra.mxu1 %vm2753_vm2, %v6047_v12 }
 0x324   : > { %3708 = vmatprep.mubr.f32.mxu0 %v6434_v27  ;;  %3785 = vmatprep.mubr.f32.mxu1 %v6434_v27 }
 0x327   : > { %4438 = vmatmul.mubr.msk.f32.vlgmr.msra.gmra.mxu0 %vm2753_vm2, %v6038_v48  ;;  %4440 = vmatmul.mubr.msk.f32.vlgmr.msra.gmra.mxu1 %vm2753_vm2, %v6038_v48 }
 0x328   : > { %3852 = vmatpush1.msra.mxu0 %v3808_v35  ;;  %3929 = vmatpush1.msra.mxu1 %v3810_v32  ;;  %v4374_v35 = vld [vmem:[%s5169_s24 + $0xa0] sm:$0xff]  ;;  %v4376_v32 = vld [vmem:[%s5169_s24 + $0xb0] sm:$0xff] }
 0x329   : > { %4028 = vmatprep.subr.mxu0 %v3986_v25  ;;  %4105 = vmatprep.subr.mxu1 %v3988_v31 }
 0x32a   : > { %3714 = vmatprep.mubr.f32.mxu0 %v6434_v27  ;;  %3791 = vmatprep.mubr.f32.mxu1 %v6434_v27 }
 0x32b   : > { %4439 = vmatmul.mubr.msk.f32.gmra.mxu0 %vm2753_vm2, %v6047_v12  ;;  %4441 = vmatmul.mubr.msk.f32.gmra.mxu1 %vm2753_vm2, %v6047_v12 }
 0x32c   : > { %3885 = vmatprep.mubr.f32.mxu0 %v6434_v27  ;;  %3962 = vmatprep.mubr.f32.mxu1 %v6434_v27 }
 0x32f   : > { %4458 = vmatmul.mubr.msk.f32.vlgmr.msra.gmra.mxu0 %vm2753_vm2, %v6038_v48  ;;  %4460 = vmatmul.mubr.msk.f32.vlgmr.msra.gmra.mxu1 %vm2753_vm2, %v6038_v48 }
 0x330   : > { %4029 = vmatpush1.msra.mxu0 %v3985_v18  ;;  %4106 = vmatpush1.msra.mxu1 %v3987_v7 }
 0x331   : > { %3891 = vmatprep.mubr.f32.mxu0 %v6434_v27  ;;  %3968 = vmatprep.mubr.f32.mxu1 %v6434_v27 }
 0x333   : > { %4459 = vmatmul.mubr.msk.f32.gmra.mxu0 %vm2753_vm2, %v6047_v12  ;;  %4461 = vmatmul.mubr.msk.f32.gmra.mxu1 %vm2753_vm2, %v6047_v12 }
 0x334   : > { %4062 = vmatprep.mubr.f32.mxu0 %v6434_v27  ;;  %4139 = vmatprep.mubr.f32.mxu1 %v6434_v27 }
 0x337   : > { %4478 = vmatmul.mubr.msk.f32.vlgmr.msra.gmra.mxu0 %vm2753_vm2, %v6038_v48  ;;  %4480 = vmatmul.mubr.msk.f32.vlgmr.msra.gmra.mxu1 %vm2753_vm2, %v6038_v48 }
 0x338   : > { %4068 = vmatprep.mubr.f32.mxu0 %v6434_v27  ;;  %4145 = vmatprep.mubr.f32.mxu1 %v6434_v27 }
 0x33b   : > { %4479 = vmatmul.mubr.msk.f32.gmra.mxu0 %vm2753_vm2, %v6047_v12  ;;  %4481 = vmatmul.mubr.msk.f32.gmra.mxu1 %vm2753_vm2, %v6047_v12  ;;  %v4357_v12 = vld [vmem:[%s5169_s24 + $0x78] sm:$0xff] }
 0x3be   : > { %v2826_v37 = vpop.f32.mrf.mxu0  ;;  %v2903_v38 = vpop.f32.mrf.mxu1 }
 0x3bf   : > { %v2827_v43 = vadd.f32 %v2826_v37, %v2745_v14  ;;  %v2904_v40 = vadd.f32 %v2903_v38, %v2747_v36  ;;  %v4375_v14 = vld [vmem:[%s5169_s24 + $0xa8] sm:$0xff]  ;;  %v4377_v36 = vld [vmem:[%s5169_s24 + $0xb8] sm:$0xff] }
 0x3c0   : > { %v2828_v41 = vpop.f32.mrf.mxu0  ;;  %v2905_v27 = vpop.f32.mrf.mxu1 }
 0x3c1   : > { %2914 = vst [vmem:[%s6144_s10] sm:$0xff] %v2827_v43  ;;  %2916 = vst [vmem:[%s6144_s10 + $0x10] sm:$0xff] %v2904_v40  ;;  %v2829_v42 = vadd.f32 %v2828_v41, %v2746_v39  ;;  %v2906_v44 = vadd.f32 %v2905_v27, %v2748_v0  ;;  %v4390_v43 = vld [vmem:[%s5169_s24 + $0xc0] sm:$0xff]  ;;  %v4392_v40 = vld [vmem:[%s5169_s24 + $0xd0] sm:$0xff] }
 0x3c3   : > { %2915 = vst [vmem:[%s6144_s10 + $0x8] sm:$0xff] %v2829_v42  ;;  %2917 = vst [vmem:[%s6144_s10 + $0x18] sm:$0xff] %v2906_v44  ;;  %v2832_v47 = vpop.f32.mrf.mxu0  ;;  %v2909_v49 = vpop.f32.mrf.mxu1 }
 0x3c4   : > { %v2833_v52 = vadd.f32 %v2832_v47, %v2749_v45  ;;  %v2910_v53 = vadd.f32 %v2909_v49, %v2751_v46  ;;  %v4391_v45 = vld [vmem:[%s5169_s24 + $0xc8] sm:$0xff]  ;;  %v4393_v46 = vld [vmem:[%s5169_s24 + $0xd8] sm:$0xff] }
 0x3c5   : > { %v2834_v54 = vpop.f32.mrf.mxu0  ;;  %v2911_v55 = vpop.f32.mrf.mxu1 }
 0x3c6   : > { %2918 = vst [vmem:[%s6144_s10 + $0x20] sm:$0xff] %v2833_v52  ;;  %2920 = vst [vmem:[%s6144_s10 + $0x30] sm:$0xff] %v2910_v53  ;;  %v2835_v58 = vadd.f32 %v2834_v54, %v2750_v50  ;;  %v2912_v59 = vadd.f32 %v2911_v55, %v2752_v51  ;;  %v4394_v52 = vld [vmem:[%s5169_s24 + $0xe0] sm:$0xff]  ;;  %v4396_v53 = vld [vmem:[%s5169_s24 + $0xf0] sm:$0xff] }
 0x3c7   : > { %v3002_v60 = vpop.f32.mrf.mxu0  ;;  %v3079_v61 = vpop.f32.mrf.mxu1 }
 0x3c8   : > { %2919 = vst [vmem:[%s6144_s10 + $0x28] sm:$0xff] %v2835_v58  ;;  %2921 = vst [vmem:[%s6144_s10 + $0x38] sm:$0xff] %v2912_v59  ;;  %v3003_v48 = vadd.f32 %v4350_v56, %v3002_v60  ;;  %v3080_v2 = vadd.f32 %v4352_v57, %v3079_v61  ;;  %v4395_v58 = vld [vmem:[%s5169_s24 + $0xe8] sm:$0xff]  ;;  %v4397_v59 = vld [vmem:[%s5169_s24 + $0xf8] sm:$0xff] }
 0x3c9   : > { %v3004_v3 = vpop.f32.mrf.mxu0  ;;  %v3081_v4 = vpop.f32.mrf.mxu1 }
 0x3ca   : > { %4362 = vst [vmem:[%s6144_s10 + $0x40] sm:$0xff] %v3003_v48  ;;  %4364 = vst [vmem:[%s6144_s10 + $0x50] sm:$0xff] %v3080_v2  ;;  %v3005_v6 = vadd.f32 %v4351_v62, %v3004_v3  ;;  %v3082_v8 = vadd.f32 %v4353_v63, %v3081_v4  ;;  %v4410_v48 = vld [vmem:[%s5169_s24 + $0x100] sm:$0xff]  ;;  %v4412_v2 = vld [vmem:[%s5169_s24 + $0x110] sm:$0xff] }
 0x3cb   : > { %v3008_v9 = vpop.f32.mrf.mxu0  ;;  %v3085_v10 = vpop.f32.mrf.mxu1 }
 0x3cc   : > { %4363 = vst [vmem:[%s6144_s10 + $0x48] sm:$0xff] %v3005_v6  ;;  %4365 = vst [vmem:[%s6144_s10 + $0x58] sm:$0xff] %v3082_v8  ;;  %v3009_v13 = vadd.f32 %v4354_v5, %v3008_v9  ;;  %v3086_v15 = vadd.f32 %v4356_v1, %v3085_v10  ;;  %v4411_v6 = vld [vmem:[%s5169_s24 + $0x108] sm:$0xff]  ;;  %v4413_v8 = vld [vmem:[%s5169_s24 + $0x118] sm:$0xff] }
 0x3cd   : > { %v3010_v16 = vpop.f32.mrf.mxu0  ;;  %v3087_v17 = vpop.f32.mrf.mxu1 }
 0x3ce   : > { %4366 = vst [vmem:[%s6144_s10 + $0x60] sm:$0xff] %v3009_v13  ;;  %4368 = vst [vmem:[%s6144_s10 + $0x70] sm:$0xff] %v3086_v15  ;;  %v3011_v21 = vadd.f32 %v4355_v11, %v3010_v16  ;;  %v3088_v22 = vadd.f32 %v4357_v12, %v3087_v17  ;;  %v4414_v13 = vld [vmem:[%s5169_s24 + $0x120] sm:$0xff]  ;;  %v4416_v15 = vld [vmem:[%s5169_s24 + $0x130] sm:$0xff] }
 0x3cf   : > { %v3179_v23 = vpop.f32.mrf.mxu0  ;;  %v3256_v24 = vpop.f32.mrf.mxu1 }
 0x3d0   : > { %4367 = vst [vmem:[%s6144_s10 + $0x68] sm:$0xff] %v3011_v21  ;;  %4369 = vst [vmem:[%s6144_s10 + $0x78] sm:$0xff] %v3088_v22  ;;  %v3180_v29 = vadd.f32 %v4370_v19, %v3179_v23  ;;  %v3257_v30 = vadd.f32 %v4372_v20, %v3256_v24  ;;  %v4415_v21 = vld [vmem:[%s5169_s24 + $0x128] sm:$0xff]  ;;  %v4417_v22 = vld [vmem:[%s5169_s24 + $0x138] sm:$0xff] }
 0x3d1   : > { %v3181_v33 = vpop.f32.mrf.mxu0  ;;  %v3258_v34 = vpop.f32.mrf.mxu1 }
 0x3d2   : > { %4382 = vst [vmem:[%s6144_s10 + $0x80] sm:$0xff] %v3180_v29  ;;  %4384 = vst [vmem:[%s6144_s10 + $0x90] sm:$0xff] %v3257_v30  ;;  %v3182_v25 = vadd.f32 %v4371_v26, %v3181_v33  ;;  %v3259_v31 = vadd.f32 %v4373_v28, %v3258_v34  ;;  %v4430_v29 = vld [vmem:[%s5169_s24 + $0x140] sm:$0xff]  ;;  %v4432_v30 = vld [vmem:[%s5169_s24 + $0x150] sm:$0xff] }
 0x3d3   : > { %v3185_v18 = vpop.f32.mrf.mxu0  ;;  %v3262_v7 = vpop.f32.mrf.mxu1 }
 0x3d4   : > { %4383 = vst [vmem:[%s6144_s10 + $0x88] sm:$0xff] %v3182_v25  ;;  %4385 = vst [vmem:[%s6144_s10 + $0x98] sm:$0xff] %v3259_v31  ;;  %v3186_v37 = vadd.f32 %v4374_v35, %v3185_v18  ;;  %v3263_v38 = vadd.f32 %v4376_v32, %v3262_v7  ;;  %v4431_v25 = vld [vmem:[%s5169_s24 + $0x148] sm:$0xff]  ;;  %v4433_v31 = vld [vmem:[%s5169_s24 + $0x158] sm:$0xff] }
 0x3d5   : > { %v3187_v39 = vpop.f32.mrf.mxu0  ;;  %v3264_v0 = vpop.f32.mrf.mxu1 }
 0x3d6   : > { %4386 = vst [vmem:[%s6144_s10 + $0xa0] sm:$0xff] %v3186_v37  ;;  %4388 = vst [vmem:[%s6144_s10 + $0xb0] sm:$0xff] %v3263_v38  ;;  %v3188_v41 = vadd.f32 %v4375_v14, %v3187_v39  ;;  %v3265_v27 = vadd.f32 %v4377_v36, %v3264_v0  ;;  %v4434_v37 = vld [vmem:[%s5169_s24 + $0x160] sm:$0xff]  ;;  %v4436_v38 = vld [vmem:[%s5169_s24 + $0x170] sm:$0xff] }
 0x3d7   : > { %v3356_v42 = vpop.f32.mrf.mxu0  ;;  %v3433_v44 = vpop.f32.mrf.mxu1 }
 0x3d8   : > { %4387 = vst [vmem:[%s6144_s10 + $0xa8] sm:$0xff] %v3188_v41  ;;  %4389 = vst [vmem:[%s6144_s10 + $0xb8] sm:$0xff] %v3265_v27  ;;  %v3357_v47 = vadd.f32 %v4390_v43, %v3356_v42  ;;  %v3434_v49 = vadd.f32 %v4392_v40, %v3433_v44  ;;  %v4435_v41 = vld [vmem:[%s5169_s24 + $0x168] sm:$0xff]  ;;  %v4437_v27 = vld [vmem:[%s5169_s24 + $0x178] sm:$0xff] }
 0x3d9   : > { %v3358_v50 = vpop.f32.mrf.mxu0  ;;  %v3435_v51 = vpop.f32.mrf.mxu1 }
 0x3da   : > { %4402 = vst [vmem:[%s6144_s10 + $0xc0] sm:$0xff] %v3357_v47  ;;  %4404 = vst [vmem:[%s6144_s10 + $0xd0] sm:$0xff] %v3434_v49  ;;  %v3359_v54 = vadd.f32 %v4391_v45, %v3358_v50  ;;  %v3436_v55 = vadd.f32 %v4393_v46, %v3435_v51  ;;  %v4450_v47 = vld [vmem:[%s5169_s24 + $0x180] sm:$0xff]  ;;  %v4452_v49 = vld [vmem:[%s5169_s24 + $0x190] sm:$0xff] }
 0x3db   : > { %v3362_v56 = vpop.f32.mrf.mxu0  ;;  %v3439_v57 = vpop.f32.mrf.mxu1 }
 0x3dc   : > { %4403 = vst [vmem:[%s6144_s10 + $0xc8] sm:$0xff] %v3359_v54  ;;  %4405 = vst [vmem:[%s6144_s10 + $0xd8] sm:$0xff] %v3436_v55  ;;  %v3363_v60 = vadd.f32 %v4394_v52, %v3362_v56  ;;  %v3440_v61 = vadd.f32 %v4396_v53, %v3439_v57  ;;  %v4451_v54 = vld [vmem:[%s5169_s24 + $0x188] sm:$0xff]  ;;  %v4453_v55 = vld [vmem:[%s5169_s24 + $0x198] sm:$0xff] }
 0x3dd   : > { %v3364_v62 = vpop.f32.mrf.mxu0  ;;  %v3441_v63 = vpop.f32.mrf.mxu1 }
 0x3de   : > { %4406 = vst [vmem:[%s6144_s10 + $0xe0] sm:$0xff] %v3363_v60  ;;  %4408 = vst [vmem:[%s6144_s10 + $0xf0] sm:$0xff] %v3440_v61  ;;  %v3365_v3 = vadd.f32 %v4395_v58, %v3364_v62  ;;  %v3442_v4 = vadd.f32 %v4397_v59, %v3441_v63  ;;  %v4454_v60 = vld [vmem:[%s5169_s24 + $0x1a0] sm:$0xff]  ;;  %v4456_v61 = vld [vmem:[%s5169_s24 + $0x1b0] sm:$0xff] }
 0x3df   : > { %v3533_v5 = vpop.f32.mrf.mxu0  ;;  %v3610_v1 = vpop.f32.mrf.mxu1 }
 0x3e0   : > { %4407 = vst [vmem:[%s6144_s10 + $0xe8] sm:$0xff] %v3365_v3  ;;  %4409 = vst [vmem:[%s6144_s10 + $0xf8] sm:$0xff] %v3442_v4  ;;  %v3534_v9 = vadd.f32 %v4410_v48, %v3533_v5  ;;  %v3611_v10 = vadd.f32 %v4412_v2, %v3610_v1  ;;  %v4455_v3 = vld [vmem:[%s5169_s24 + $0x1a8] sm:$0xff]  ;;  %v4457_v4 = vld [vmem:[%s5169_s24 + $0x1b8] sm:$0xff] }
 0x3e1   : > { %v3535_v11 = vpop.f32.mrf.mxu0  ;;  %v3612_v12 = vpop.f32.mrf.mxu1 }
 0x3e2   : > { %4422 = vst [vmem:[%s6144_s10 + $0x100] sm:$0xff] %v3534_v9  ;;  %4424 = vst [vmem:[%s6144_s10 + $0x110] sm:$0xff] %v3611_v10  ;;  %v3536_v16 = vadd.f32 %v4411_v6, %v3535_v11  ;;  %v3613_v17 = vadd.f32 %v4413_v8, %v3612_v12  ;;  %v4470_v9 = vld [vmem:[%s5169_s24 + $0x1c0] sm:$0xff]  ;;  %v4472_v10 = vld [vmem:[%s5169_s24 + $0x1d0] sm:$0xff] }
 0x3e3   : > { %v3539_v19 = vpop.f32.mrf.mxu0  ;;  %v3616_v20 = vpop.f32.mrf.mxu1 }
 0x3e4   : > { %4423 = vst [vmem:[%s6144_s10 + $0x108] sm:$0xff] %v3536_v16  ;;  %4425 = vst [vmem:[%s6144_s10 + $0x118] sm:$0xff] %v3613_v17  ;;  %v3540_v23 = vadd.f32 %v4414_v13, %v3539_v19  ;;  %v3617_v24 = vadd.f32 %v4416_v15, %v3616_v20  ;;  %v4471_v16 = vld [vmem:[%s5169_s24 + $0x1c8] sm:$0xff]  ;;  %v4473_v17 = vld [vmem:[%s5169_s24 + $0x1d8] sm:$0xff] }
 0x3e5   : > { %v3541_v26 = vpop.f32.mrf.mxu0  ;;  %v3618_v28 = vpop.f32.mrf.mxu1 }
 0x3e6   : > { %4426 = vst [vmem:[%s6144_s10 + $0x120] sm:$0xff] %v3540_v23  ;;  %4428 = vst [vmem:[%s6144_s10 + $0x130] sm:$0xff] %v3617_v24  ;;  %v3542_v33 = vadd.f32 %v4415_v21, %v3541_v26  ;;  %v3619_v34 = vadd.f32 %v4417_v22, %v3618_v28  ;;  %v4474_v23 = vld [vmem:[%s5169_s24 + $0x1e0] sm:$0xff]  ;;  %v4476_v24 = vld [vmem:[%s5169_s24 + $0x1f0] sm:$0xff] }
 0x3e7   : > { %v3710_v35 = vpop.f32.mrf.mxu0  ;;  %v3787_v32 = vpop.f32.mrf.mxu1 }
 0x3e8   : > { %4427 = vst [vmem:[%s6144_s10 + $0x128] sm:$0xff] %v3542_v33  ;;  %4429 = vst [vmem:[%s6144_s10 + $0x138] sm:$0xff] %v3619_v34  ;;  %v3711_v18 = vadd.f32 %v4430_v29, %v3710_v35  ;;  %v3788_v7 = vadd.f32 %v4432_v30, %v3787_v32  ;;  %v4475_v33 = vld [vmem:[%s5169_s24 + $0x1e8] sm:$0xff]  ;;  %v4477_v34 = vld [vmem:[%s5169_s24 + $0x1f8] sm:$0xff] }
 0x3e9   : > { %v3712_v14 = vpop.f32.mrf.mxu0  ;;  %v3789_v36 = vpop.f32.mrf.mxu1 }
 0x3ea   : > { %4442 = vst [vmem:[%s6144_s10 + $0x140] sm:$0xff] %v3711_v18  ;;  %4444 = vst [vmem:[%s6144_s10 + $0x150] sm:$0xff] %v3788_v7  ;;  %v3713_v39 = vadd.f32 %v4431_v25, %v3712_v14  ;;  %v3790_v0 = vadd.f32 %v4433_v31, %v3789_v36 }
 0x3eb   : > { %v3716_v43 = vpop.f32.mrf.mxu0  ;;  %v3793_v40 = vpop.f32.mrf.mxu1 }
 0x3ec   : > { %4443 = vst [vmem:[%s6144_s10 + $0x148] sm:$0xff] %v3713_v39  ;;  %4445 = vst [vmem:[%s6144_s10 + $0x158] sm:$0xff] %v3790_v0  ;;  %v3717_v42 = vadd.f32 %v4434_v37, %v3716_v43  ;;  %v3794_v44 = vadd.f32 %v4436_v38, %v3793_v40 }
 0x3ed   : > { %v3718_v45 = vpop.f32.mrf.mxu0  ;;  %v3795_v46 = vpop.f32.mrf.mxu1 }
 0x3ee   : > { %4446 = vst [vmem:[%s6144_s10 + $0x160] sm:$0xff] %v3717_v42  ;;  %4448 = vst [vmem:[%s6144_s10 + $0x170] sm:$0xff] %v3794_v44  ;;  %v3719_v50 = vadd.f32 %v4435_v41, %v3718_v45  ;;  %v3796_v51 = vadd.f32 %v4437_v27, %v3795_v46 }
 0x3ef   : > { %v3887_v52 = vpop.f32.mrf.mxu0  ;;  %v3964_v53 = vpop.f32.mrf.mxu1 }
 0x3f0   : > { %4447 = vst [vmem:[%s6144_s10 + $0x168] sm:$0xff] %v3719_v50  ;;  %4449 = vst [vmem:[%s6144_s10 + $0x178] sm:$0xff] %v3796_v51  ;;  %v3888_v56 = vadd.f32 %v4450_v47, %v3887_v52  ;;  %v3965_v57 = vadd.f32 %v4452_v49, %v3964_v53 }
 0x3f1   : > { %v3889_v58 = vpop.f32.mrf.mxu0  ;;  %v3966_v59 = vpop.f32.mrf.mxu1 }
 0x3f2   : > { %4462 = vst [vmem:[%s6144_s10 + $0x180] sm:$0xff] %v3888_v56  ;;  %4464 = vst [vmem:[%s6144_s10 + $0x190] sm:$0xff] %v3965_v57  ;;  %v3890_v62 = vadd.f32 %v4451_v54, %v3889_v58  ;;  %v3967_v63 = vadd.f32 %v4453_v55, %v3966_v59 }
 0x3f3   : > { %v3893_v48 = vpop.f32.mrf.mxu0  ;;  %v3970_v2 = vpop.f32.mrf.mxu1 }
 0x3f4   : > { %4463 = vst [vmem:[%s6144_s10 + $0x188] sm:$0xff] %v3890_v62  ;;  %4465 = vst [vmem:[%s6144_s10 + $0x198] sm:$0xff] %v3967_v63  ;;  %v3894_v5 = vadd.f32 %v4454_v60, %v3893_v48  ;;  %v3971_v1 = vadd.f32 %v4456_v61, %v3970_v2 }
 0x3f5   : > { %v3895_v6 = vpop.f32.mrf.mxu0  ;;  %v3972_v8 = vpop.f32.mrf.mxu1 }
 0x3f6   : > { %4466 = vst [vmem:[%s6144_s10 + $0x1a0] sm:$0xff] %v3894_v5  ;;  %4468 = vst [vmem:[%s6144_s10 + $0x1b0] sm:$0xff] %v3971_v1  ;;  %v3896_v11 = vadd.f32 %v4455_v3, %v3895_v6  ;;  %v3973_v12 = vadd.f32 %v4457_v4, %v3972_v8 }
 0x3f7   : > { %v4064_v13 = vpop.f32.mrf.mxu0  ;;  %v4141_v15 = vpop.f32.mrf.mxu1 }
 0x3f8   : > { %4467 = vst [vmem:[%s6144_s10 + $0x1a8] sm:$0xff] %v3896_v11  ;;  %4469 = vst [vmem:[%s6144_s10 + $0x1b8] sm:$0xff] %v3973_v12  ;;  %v4065_v19 = vadd.f32 %v4470_v9, %v4064_v13  ;;  %v4142_v20 = vadd.f32 %v4472_v10, %v4141_v15 }
 0x3f9   : > { %v4066_v21 = vpop.f32.mrf.mxu0  ;;  %v4143_v22 = vpop.f32.mrf.mxu1 }
 0x3fa   : > { %4482 = vst [vmem:[%s6144_s10 + $0x1c0] sm:$0xff] %v4065_v19  ;;  %4484 = vst [vmem:[%s6144_s10 + $0x1d0] sm:$0xff] %v4142_v20  ;;  %v4067_v26 = vadd.f32 %v4471_v16, %v4066_v21  ;;  %v4144_v28 = vadd.f32 %v4473_v17, %v4143_v22 }
 0x3fb   : > { %v4070_v29 = vpop.f32.mrf.mxu0  ;;  %v4147_v30 = vpop.f32.mrf.mxu1 }
 0x3fc   : > { %4483 = vst [vmem:[%s6144_s10 + $0x1c8] sm:$0xff] %v4067_v26  ;;  %4485 = vst [vmem:[%s6144_s10 + $0x1d8] sm:$0xff] %v4144_v28  ;;  %v4071_v35 = vadd.f32 %v4474_v23, %v4070_v29  ;;  %v4148_v32 = vadd.f32 %v4476_v24, %v4147_v30 }
 0x3fd   : > { %v4072_v25 = vpop.f32.mrf.mxu0  ;;  %v4149_v31 = vpop.f32.mrf.mxu1 }
 0x3fe   : > { %4486 = vst [vmem:[%s6144_s10 + $0x1e0] sm:$0xff] %v4071_v35  ;;  %4488 = vst [vmem:[%s6144_s10 + $0x1f0] sm:$0xff] %v4148_v32  ;;  %v4073_v18 = vadd.f32 %v4475_v33, %v4072_v25  ;;  %v4150_v7 = vadd.f32 %v4477_v34, %v4149_v31 }
 0x400   : > { %4487 = vst [vmem:[%s6144_s10 + $0x1e8] sm:$0xff] %v4073_v18  ;;  %4489 = vst [vmem:[%s6144_s10 + $0x1f8] sm:$0xff] %v4150_v7 }
 0x401   : > { %4787 = shalt.err (!%p4784_p5)
}
 0x402   : > { %s4788_s4 = scalar_lea.hbm %s6276_s19, 8192  ;;  %s4792_s10 = scalar_lea.hbm %s6460_s9, 32768 }
 0x403   : > { %p4789_p9 = scmp.ne.s32.totalorder %s6276_s19, %s4788_s4  ;;  %p4793_p3 = scmp.lt.s32.totalorder %s6276_s19, %s6460_s9 }
 0x404   : > { %p4794_p11 = scmp.lt.s32.totalorder %s4792_s10, %s4788_s4 }
 0x405   : > { %p4790_p4 = pnand %p4789_p9, %p5115_p12 }
 0x406   : > { %p4795_p0 = por %p4794_p11, %p4793_p3 }
 0x407   : > { %p4791_p13 = pneg %p4790_p4 }
 0x409   : > { %p4796_p6 = pnand %p4795_p0, %p4791_p13 }
 0x40b   : > { %4799 = shalt.err (!%p4796_p6)
}
 0x40c   : > { %s4915_s15 = smov 512   ;;  %s4916_s27 = smov 32  }
 0x40d   : > { %4508 = dma.vmem_to_hbm [thread:$0]  (%p5115_p12), %s6269_s17, 8192, %s6276_s19, %s6282_s6, %s4915_s15, %s4915_s15, %s4916_s27  }
 0x40e PF: > { %s6461_s16 = sld [smem:[#allocation14_spill]]  ;;  %p4528_p7 = scmp.ge.s32.totalorder %s4902_s7, 2 }
 0x40f   : > { %s6462_s18 = sld [smem:[#allocation17_spill]] }
 0x414   : > { %s4193_s24 = sand.u32 1, %s6461_s16  }
 0x415   : > { %p6463_p8 = scmp.ne.s32.totalorder %s6462_s18, 0  ;;  %s4194_s28 = scalar_lea.sflag [#allocation5], %s4193_s24 }
 0x417   : > { %p4522_p10 = pnand %p4528_p7, %p6463_p8 }
 0x419   : > { %p4523_p1 = pneg %p4522_p10 }
 0x41b   : > { %4857 = dma.done.wait (%p4523_p1), %s4194_s28, 8192  }
 0x41c   : > { %4859 = vsyncadd (%p4523_p1), %s4194_s28, 4294959104  ;;  %s23_s7 = sadd.s32 1, %s4902_s7   ;;  %s6464_s27 = sld [smem:[#allocation16_spill]] }
 0x41d   : > { %p20_p2 = scmp.ge.s32.totalorder %s23_s7, 6   ;;  %s6465_s29 = sld [smem:[#allocation18_spill]] }
 0x41e   : > { %s6466_s21 = smov %s4866_s22  ;;  %s6467_s22 = smov %s4870_s23 }
 0x41f   : > { %s6468_s23 = smov %s5127_s12  ;;  %s6469_s24 = smov %s4878_s25 }
 0x420   : > { %s6470_s25 = smov %s4882_s26  ;;  %s6471_s26 = smov %s5124_s3 }
 0x421   : > { %s6472_s28 = smov %s4898_s30  ;;  %s6473_s30 = smov %s6479_s0 }
 0x422   :  { %22 = sbr.rel (!%p20_p2) target bundleno = 17 (0x11), region = 194 }
 0x427   :  { %4199 = vsyncpa [#allocation4], 1 }
 0x428   :  { %4201 = vsyncpa [#allocation4 + $0x1], 1 }
 0x429   :  { %4202 = vsyncpa [#allocation7], 1 }
 0x42a   :  { %4203 = vsyncpa [#allocation5], 1 }
 0x42b   :  { %4205 = vsyncpa [#allocation5 + $0x1], 1 }

</bundles_post_ra>
